<compile_context>
chip_gen: v7x
topology: tpu7x:2x2x1
jax: 0.10.0
libtpu: 0.0.40
codegen_flags: <defaults>
</compile_context>

<pallas_src>
import functools
import math

import jax
import jax.numpy as jnp
import numpy as np
from jax.experimental import pallas as pl
from jax.experimental.pallas import tpu as pltpu


# Row layout of the packed (11, D) small-parameter array.
_ROWS = dict(s_bq=0, s_bo=1, c_bq=2, c_bo=3, ff_b2=4,
             g1=5, be1=6, g2=7, be2=8, g3=9, be3=10)


# ----------------------------- shared math (kernel + reference) -------------
# `recip` is pl.reciprocal(approx=True) inside the kernel and exact 1/x in the
# pure-JAX reference; everything else is identical so the self-check is tight.

def _layernorm(z, gamma, beta, eps=1e-6):
    d = z.shape[-1]
    mean = jnp.mean(z, axis=-1, keepdims=True)
    # torch.Tensor.std() is unbiased (N-1); module divides by std + eps.
    var = jnp.sum((z - mean) ** 2, axis=-1, keepdims=True) / (d - 1)
    std = jnp.sqrt(var)
    return gamma * (z - mean) / (std + eps) + beta      # exact division


def _mask_bias(mask_i8):
    # mask entries are exactly {0, 1} (wrapper sanitizes via `mask != 0`):
    #   1 -> 0.0 (keep), 0 -> -1e9 (masked_fill)
    return (mask_i8.astype(jnp.float32) - 1.0) * jnp.float32(1e9)


def _attention(q_in, bias, load_k, load_v, wq, bq, wo, bo, *,
               n_heads, d_k, s_k, kv_chunk, recip):
    """q_in: (TQ, D) f32; K/V via accessor closures; weights bf16, scale folded."""
    bf = jnp.bfloat16
    tq, d_model = q_in.shape
    n_chunks = s_k // kv_chunk
    # Fused Q projection; 1/sqrt(d_k) already folded into wq / bq.
    q = jnp.dot(q_in.astype(bf), wq, preferred_element_type=jnp.float32) + bq
    out = jnp.zeros((tq, d_model), jnp.float32)
    for h in range(n_heads):                             # static head loop
        lo = h * d_k
        qh = q[:, lo:lo + d_k].astype(bf)
        m = jnp.full((tq, 1), -1e30, jnp.float32)
        l = jnp.zeros((tq, 1), jnp.float32)
        acc = jnp.zeros((tq, d_k), jnp.float32)
        for c in range(n_chunks):                        # online softmax over KV
            c0 = c * kv_chunk
            kh = load_k(h, c0, kv_chunk)                 # (d_k, C)  bf16
            vh = load_v(h, c0, kv_chunk)                 # (C, d_k)  bf16
            s = jnp.dot(qh, kh, preferred_element_type=jnp.float32)
            s = s + bias[:, c0:c0 + kv_chunk]
            m_new = jnp.maximum(m, jnp.max(s, axis=-1, keepdims=True))
            alpha = jnp.exp(m - m_new)
            p = jnp.exp(s - m_new)
            l = alpha * l + jnp.sum(p, axis=-1, keepdims=True)
            acc = alpha * acc + jnp.dot(p.astype(bf), vh,
                                        preferred_element_type=jnp.float32)
            m = m_new
        ctx = (acc * recip(l)).astype(bf)
        # Per-head slice of the output projection: avoids a lane-dim concat.
        out = out + jnp.dot(ctx, wo[lo:lo + d_k, :],
                            preferred_element_type=jnp.float32)
    return out + bo


def _decoder_tile(xq, tbias, sbias, load_ks, load_vs, load_kc, load_vc,
                  kernel_params, *, n_heads, d_k, s_k, se_k,
                  kv_chunk_self, kv_chunk_cross, recip):
    (s_wq, s_wo, c_wq, c_wo, w1, b1, w2, vecs) = kernel_params
    s_bq, s_bo = vecs[_ROWS["s_bq"]], vecs[_ROWS["s_bo"]]
    c_bq, c_bo = vecs[_ROWS["c_bq"]], vecs[_ROWS["c_bo"]]
    ff_b2 = vecs[_ROWS["ff_b2"]]
    g1, be1 = vecs[_ROWS["g1"]], vecs[_ROWS["be1"]]
    g2, be2 = vecs[_ROWS["g2"]], vecs[_ROWS["be2"]]
    g3, be3 = vecs[_ROWS["g3"]], vecs[_ROWS["be3"]]

    # 1) self attention + residual + norm1        (dropout == identity)
    a1 = _attention(xq, tbias, load_ks, load_vs, s_wq, s_bq, s_wo, s_bo,
                    n_heads=n_heads, d_k=d_k, s_k=s_k,
                    kv_chunk=kv_chunk_self, recip=recip)
    x1 = _layernorm(xq + a1, g1, be1)

    # 2) cross attention + residual + norm2
    a2 = _attention(x1, sbias, load_kc, load_vc, c_wq, c_bq, c_wo, c_bo,
                    n_heads=n_heads, d_k=d_k, s_k=se_k,
                    kv_chunk=kv_chunk_cross, recip=recip)
    x2 = _layernorm(x1 + a2, g2, be2)

    # 3) position-wise feed forward + residual + norm3
    hdn = jnp.maximum(jnp.dot(x2.astype(jnp.bfloat16), w1,
                              preferred_element_type=jnp.float32) + b1, 0.0)
    ff = jnp.dot(hdn.astype(jnp.bfloat16), w2,
                 preferred_element_type=jnp.float32) + ff_b2
    return _layernorm(x2 + ff, g3, be3)


# ----------------------------- Pallas kernel --------------------------------

def decoder_layer_kernel(
    xq_ref, ks_ref, vs_ref, kc_ref, vc_ref, tmask_ref, smask_ref,
    s_wq_ref, s_wo_ref, c_wq_ref, c_wo_ref, w1_ref, b1_ref, w2_ref, vecs_ref,
    out_ref, *, n_heads, d_k, kv_chunk_self, kv_chunk_cross,
):
    kernel_params = (s_wq_ref[...], s_wo_ref[...], c_wq_ref[...], c_wo_ref[...],
                     w1_ref[...], b1_ref[...], w2_ref[...], vecs_ref[...])
    tbias = _mask_bias(tmask_ref[...])       # (tq, S)  built once per tile
    sbias = _mask_bias(smask_ref[...])       # (tq, Se)
    # Per-head K/V selection is a leading-axis ref index; KV chunks are static
    # ref slices, so only the current chunk is pulled into vregs.
    load_ks = lambda h, c0, C: ks_ref[h, :, c0:c0 + C]
    load_vs = lambda h, c0, C: vs_ref[h, c0:c0 + C, :]
    load_kc = lambda h, c0, C: kc_ref[h, :, c0:c0 + C]
    load_vc = lambda h, c0, C: vc_ref[h, c0:c0 + C, :]
    y = _decoder_tile(
        xq_ref[...], tbias, sbias, load_ks, load_vs, load_kc, load_vc,
        kernel_params, n_heads=n_heads, d_k=d_k,
        s_k=ks_ref.shape[-1], se_k=kc_ref.shape[-1],
        kv_chunk_self=kv_chunk_self, kv_chunk_cross=kv_chunk_cross,
        recip=lambda t: pl.reciprocal(t, approx=True))   # EUP slot, ~free
    out_ref[...] = y.astype(out_ref.dtype)


# ----------------------------- parameter fusion / packing -------------------

def fuse_decoder_params(raw, n_heads):
    """Module-layout params -> (kernel params, wrapper-side KV-projection params)."""
    (s_wq, s_bq, s_wk, s_bk, s_wv, s_bv, s_wo, s_bo,
     c_wq, c_bq, c_wk, c_bk, c_wv, c_bv, c_wo, c_bo,
     w1, b1, w2, b2, g1, be1, g2, be2, g3, be3) = raw
    bf = jnp.bfloat16
    d_model = s_wq.shape[0]
    scale = 1.0 / math.sqrt(d_model // n_heads)          # folded into Q proj
    vecs = jnp.stack([s_bq * scale, s_bo, c_bq * scale, c_bo, b2,
                      g1, be1, g2, be2, g3, be3])        # (11, D)  f32
    kernel_params = (
        (s_wq * scale).astype(bf), s_wo.astype(bf),
        (c_wq * scale).astype(bf), c_wo.astype(bf),
        w1.astype(bf), b1[None, :], w2.astype(bf), vecs)
    kv_params = (                                        # applied in the wrapper
        jnp.concatenate([s_wk, s_wv], axis=1).astype(bf),    # (D, 2D)
        jnp.concatenate([s_bk, s_bv]),                       # (2D,)  f32
        jnp.concatenate([c_wk, c_wv], axis=1).astype(bf),
        jnp.concatenate([c_bk, c_bv]))
    return kernel_params, kv_params


def _project_kv(x_bf, wkv, bkv, n_heads):
    """x_bf: (B, S, D) bf16 -> K (B, H, dk, S), V (B, H, S, dk), both bf16."""
    B, S, D = x_bf.shape
    d_k = D // n_heads
    kv = jnp.dot(x_bf, wkv, preferred_element_type=jnp.float32) + bkv   # (B,S,2D)
    k = kv[..., :D].reshape(B, S, n_heads, d_k).astype(jnp.bfloat16)
    v = kv[..., D:].reshape(B, S, n_heads, d_k).astype(jnp.bfloat16)
    return k.transpose(0, 2, 3, 1), v.transpose(0, 2, 1, 3)


def _as_int8_mask(mask, shape):
    if mask is None:
        return jnp.ones(shape, jnp.int8)
    return (mask != 0).astype(jnp.int8)     # nonzero == keep (torch semantics)


# ----------------------------- tiling heuristics -----------------------------

def _vmem_budget():
    cap = 128 * 1024 * 1024
    try:
        cap = int(getattr(pltpu.get_tpu_info(), "vmem_capacity_bytes", cap))
    except Exception:
        pass
    if cap <= 64 * 1024 * 1024:             # v7x-class: leave Mosaic headroom
        return cap, 52 * 1024 * 1024
    return cap, min(cap - 24 * 1024 * 1024, 104 * 1024 * 1024)


def _pick_q_tile(S, B, vmem_cap):
    # Bigger tiles on 128-MiB chips; always try to give the grid >= 2 steps so
    # both v7x TensorCores get work.
    cands = (512, 256, 128) if vmem_cap >= 96 * 1024 * 1024 else (256, 128)
    for c in cands:
        if S % c == 0 and B * (S // c) >= 2:
            return c
    if B == 1 and S % 2 == 0 and (S // 2) % 8 == 0:
        return S // 2
    return S


def _pick_kv_chunk(s_k):
    for c in (512, 256, 128):
        if s_k % c == 0:
            return c
    return s_k


# ----------------------------- wrapper ---------------------------------------

def decoder_layer(x, enc_output, tgt_mask, src_mask, raw_params, *,
                  n_heads, q_tile=None):
    """x: (B, S, D); enc_output: (B, Se, D); masks: (B,S,S) / (B,S,Se) or None."""
    B, S, D = x.shape
    Se = enc_output.shape[1]
    assert D % n_heads == 0
    d_k = D // n_heads
    H = n_heads

    kernel_params, kv_params = fuse_decoder_params(raw_params, n_heads)
    s_wkv, s_bkv, c_wkv, c_bkv = kv_params
    d_ff = kernel_params[4].shape[1]

    # K/V projections hoisted out of the grid (computed once per batch by XLA).
    k_s, v_s = _project_kv(x.astype(jnp.bfloat16), s_wkv, s_bkv, n_heads)
    k_c, v_c = _project_kv(enc_output.astype(jnp.bfloat16), c_wkv, c_bkv, n_heads)

    tmask_i8 = _as_int8_mask(tgt_mask, (B, S, S))
    smask_i8 = _as_int8_mask(src_mask, (B, S, Se))

    vmem_cap, vmem_limit = _vmem_budget()
    if q_tile is None:
        q_tile = _pick_q_tile(S, B, vmem_cap)
    tq = q_tile
    assert S % tq == 0, "sequence length must be divisible by q_tile"
    kvc_s = _pick_kv_chunk(S)
    kvc_c = _pick_kv_chunk(Se)

    operands = (x, k_s, v_s, k_c, v_c, tmask_i8, smask_i8) + kernel_params

    cost = pl.CostEstimate(
        flops=int(2 * B * S * (4 * D * D + 2 * (S + Se) * D + 2 * D * d_ff)),
        transcendentals=int(B * S * n_heads * (S + Se)),
        bytes_accessed=int(8 * B * S * D                       # x in + out (f32)
                           + 4 * B * (S + Se) * D              # K/V (bf16)
                           + B * S * (S + Se)                  # int8 masks
                           + 2 * (4 * D * D + 2 * D * d_ff)))  # resident weights

    kernel = functools.partial(decoder_layer_kernel, n_heads=n_heads, d_k=d_k,
                               kv_chunk_self=kvc_s, kv_chunk_cross=kvc_c)

    def build(single_buffer_weights):
        def const_spec(arr):
            nd = arr.ndim
            idx = lambda b, q, _nd=nd: (0,) * _nd
            if single_buffer_weights:
                # Grid-invariant weights: one resident copy instead of the
                # default double buffer (halves weight VMEM; decisive on v7x).
                return pl.BlockSpec(arr.shape, idx, pipeline_mode=pl.Buffered(1))
            return pl.BlockSpec(arr.shape, idx)

        in_specs = [
            pl.BlockSpec((None, tq, D), lambda b, q: (b, q, 0)),          # x q-tile
            pl.BlockSpec((None, H, d_k, S), lambda b, q: (b, 0, 0, 0)),   # K self
            pl.BlockSpec((None, H, S, d_k), lambda b, q: (b, 0, 0, 0)),   # V self
            pl.BlockSpec((None, H, d_k, Se), lambda b, q: (b, 0, 0, 0)),  # K cross
            pl.BlockSpec((None, H, Se, d_k), lambda b, q: (b, 0, 0, 0)),  # V cross
            pl.BlockSpec((None, tq, S), lambda b, q: (b, q, 0)),          # tgt mask
            pl.BlockSpec((None, tq, Se), lambda b, q: (b, q, 0)),         # src mask
        ] + [const_spec(p) for p in kernel_params]

        return pl.pallas_call(
            kernel,
            out_shape=jax.ShapeDtypeStruct((B, S, D), x.dtype),
            grid=(B, S // tq),
            in_specs=in_specs,
            out_specs=pl.BlockSpec((None, tq, D), lambda b, q: (b, q, 0)),
            compiler_params=pltpu.CompilerParams(
                dimension_semantics=("parallel", "parallel"),
                vmem_limit_bytes=vmem_limit),
            cost_estimate=cost,
        )

    try:
        return build(True)(*operands)
    except Exception:
        # pl.Buffered(1) single-buffering unavailable on this jax version:
        # fall back to default double-buffered weights (correctness identical).
        return build(False)(*operands)


# ----------------------------- pure-JAX reference ---------------------------

def decoder_layer_ref(x, enc_output, tgt_mask, src_mask, raw_params, *, n_heads):
    B, S, D = x.shape
    Se = enc_output.shape[1]
    d_k = D // n_heads
    kernel_params, kv_params = fuse_decoder_params(raw_params, n_heads)
    s_wkv, s_bkv, c_wkv, c_bkv = kv_params
    k_s, v_s = _project_kv(x.astype(jnp.bfloat16), s_wkv, s_bkv, n_heads)
    k_c, v_c = _project_kv(enc_output.astype(jnp.bfloat16), c_wkv, c_bkv, n_heads)
    tmask_i8 = _as_int8_mask(tgt_mask, (B, S, S))
    smask_i8 = _as_int8_mask(src_mask, (B, S, Se))
    recip = lambda t: 1.0 / t                 # exact division in the reference
    outs = []
    for b in range(B):
        load_ks = lambda h, c0, C, _b=b: k_s[_b, h, :, c0:c0 + C]
        load_vs = lambda h, c0, C, _b=b: v_s[_b, h, c0:c0 + C, :]
        load_kc = lambda h, c0, C, _b=b: k_c[_b, h, :, c0:c0 + C]
        load_vc = lambda h, c0, C, _b=b: v_c[_b, h, c0:c0 + C, :]
        outs.append(_decoder_tile(
            x[b], _mask_bias(tmask_i8[b]), _mask_bias(smask_i8[b]),
            load_ks, load_vs, load_kc, load_vc, kernel_params,
            n_heads=n_heads, d_k=d_k, s_k=S, se_k=Se,
            kv_chunk_self=S, kv_chunk_cross=Se, recip=recip))
    return jnp.stack(outs)


# ----------------------------- main ------------------------------------------

if __name__ == "__main__":
    B, S, Se = 2, 8, 8
    d_model, n_heads, d_ff = 32, 4, 64

    key = jax.random.PRNGKey(0)
    keys = iter(jax.random.split(key, 40))

    def mk(shape, scale=0.1):
        return jax.random.normal(next(keys), shape, dtype=jnp.float32) * scale

    def attn_params():
        ps = []
        for _ in range(4):                      # q, k, v, o projections
            ps.append(mk((d_model, d_model)))   # W stored (in, out): x @ W + b
            ps.append(mk((d_model,)))
        return ps

    raw = []
    raw += attn_params()                        # self-attention
    raw += attn_params()                        # cross-attention
    raw += [mk((d_model, d_ff)), mk((d_ff,)),
            mk((d_ff, d_model)), mk((d_model,))]          # feed-forward
    for _ in range(3):                          # norm1/2/3: gamma, beta
        raw += [jnp.ones((d_model,), jnp.float32) + mk((d_model,), 0.05),
                mk((d_model,), 0.05)]
    raw = tuple(raw)

    x = jax.random.normal(next(keys), (B, S, d_model), dtype=jnp.float32)
    enc_output = jax.random.normal(next(keys), (B, Se, d_model), dtype=jnp.float32)

    # causal target mask; full source mask (src_mask=None -> all ones)
    tgt_mask = jnp.broadcast_to(jnp.tril(jnp.ones((S, S), jnp.float32)), (B, S, S))
    src_mask = jnp.ones((B, S, Se), jnp.float32)

    out = decoder_layer(x, enc_output, tgt_mask, src_mask, raw, n_heads=n_heads)
    out = jax.block_until_ready(out)

    ref = decoder_layer_ref(x, enc_output, tgt_mask, src_mask, raw, n_heads=n_heads)
    # tolerance covers approx-reciprocal (EUP) and MXU accumulation-order deltas
    np.testing.assert_allclose(np.asarray(out), np.asarray(ref), rtol=5e-2, atol=5e-2)

    print("KERNEL_OK")
</pallas_src>

<mosaic_0001>
module attributes {stable_mosaic.version = 11 : i64} {
  func.func @decoder_layer_kernel(%arg0: i32, %arg1: i32, %arg2: memref<1x8x32xf32, #tpu.memory_space<vmem>>, %arg3: memref<1x4x8x8xbf16, #tpu.memory_space<vmem>>, %arg4: memref<1x4x8x8xbf16, #tpu.memory_space<vmem>>, %arg5: memref<1x4x8x8xbf16, #tpu.memory_space<vmem>>, %arg6: memref<1x4x8x8xbf16, #tpu.memory_space<vmem>>, %arg7: memref<1x8x8xi8, #tpu.memory_space<vmem>>, %arg8: memref<1x8x8xi8, #tpu.memory_space<vmem>>, %arg9: memref<32x32xbf16, #tpu.memory_space<vmem>>, %arg10: memref<32x32xbf16, #tpu.memory_space<vmem>>, %arg11: memref<32x32xbf16, #tpu.memory_space<vmem>>, %arg12: memref<32x32xbf16, #tpu.memory_space<vmem>>, %arg13: memref<32x64xbf16, #tpu.memory_space<vmem>>, %arg14: memref<1x64xf32, #tpu.memory_space<vmem>>, %arg15: memref<64x32xbf16, #tpu.memory_space<vmem>>, %arg16: memref<11x32xf32, #tpu.memory_space<vmem>>, %arg17: memref<1x8x32xf32, #tpu.memory_space<vmem>>) attributes {dimension_semantics = [#tpu.dimension_semantics<parallel>, #tpu.dimension_semantics<parallel>], iteration_bounds = array<i64: 2, 1>, scalar_prefetch = 0 : i64, scratch_operands = 0 : i64, tpu.core_type = #tpu.core_type<tc>, window_params = [{transform_indices = @transform_0, window_bounds = array<i64: 1, 8, 32>}, {transform_indices = @transform_1, window_bounds = array<i64: 1, 4, 8, 8>}, {transform_indices = @transform_2, window_bounds = array<i64: 1, 4, 8, 8>}, {transform_indices = @transform_3, window_bounds = array<i64: 1, 4, 8, 8>}, {transform_indices = @transform_4, window_bounds = array<i64: 1, 4, 8, 8>}, {transform_indices = @transform_5, window_bounds = array<i64: 1, 8, 8>}, {transform_indices = @transform_6, window_bounds = array<i64: 1, 8, 8>}, {pipeline_mode = #tpu.pipeline_mode<synchronous>, transform_indices = @transform_7, window_bounds = array<i64: 32, 32>}, {pipeline_mode = #tpu.pipeline_mode<synchronous>, transform_indices = @transform_8, window_bounds = array<i64: 32, 32>}, {pipeline_mode = #tpu.pipeline_mode<synchronous>, transform_indices = @transform_9, window_bounds = array<i64: 32, 32>}, {pipeline_mode = #tpu.pipeline_mode<synchronous>, transform_indices = @transform_10, window_bounds = array<i64: 32, 32>}, {pipeline_mode = #tpu.pipeline_mode<synchronous>, transform_indices = @transform_11, window_bounds = array<i64: 32, 64>}, {pipeline_mode = #tpu.pipeline_mode<synchronous>, transform_indices = @transform_12, window_bounds = array<i64: 1, 64>}, {pipeline_mode = #tpu.pipeline_mode<synchronous>, transform_indices = @transform_13, window_bounds = array<i64: 64, 32>}, {pipeline_mode = #tpu.pipeline_mode<synchronous>, transform_indices = @transform_14, window_bounds = array<i64: 11, 32>}, {transform_indices = @transform_15, window_bounds = array<i64: 1, 8, 32>}]} {
    %c0 = arith.constant 0 : index
    %c0_0 = arith.constant 0 : index
    %0 = vector.load %arg9[%c0, %c0_0] : memref<32x32xbf16, #tpu.memory_space<vmem>>, vector<32x32xbf16>
    %c0_1 = arith.constant 0 : index
    %c0_2 = arith.constant 0 : index
    %1 = vector.load %arg10[%c0_1, %c0_2] : memref<32x32xbf16, #tpu.memory_space<vmem>>, vector<32x32xbf16>
    %c0_3 = arith.constant 0 : index
    %c0_4 = arith.constant 0 : index
    %2 = vector.load %arg11[%c0_3, %c0_4] : memref<32x32xbf16, #tpu.memory_space<vmem>>, vector<32x32xbf16>
    %c0_5 = arith.constant 0 : index
    %c0_6 = arith.constant 0 : index
    %3 = vector.load %arg12[%c0_5, %c0_6] : memref<32x32xbf16, #tpu.memory_space<vmem>>, vector<32x32xbf16>
    %c0_7 = arith.constant 0 : index
    %c0_8 = arith.constant 0 : index
    %4 = vector.load %arg13[%c0_7, %c0_8] : memref<32x64xbf16, #tpu.memory_space<vmem>>, vector<32x64xbf16>
    %c0_9 = arith.constant 0 : index
    %c0_10 = arith.constant 0 : index
    %5 = vector.load %arg14[%c0_9, %c0_10] : memref<1x64xf32, #tpu.memory_space<vmem>>, vector<1x64xf32>
    %c0_11 = arith.constant 0 : index
    %c0_12 = arith.constant 0 : index
    %6 = vector.load %arg15[%c0_11, %c0_12] : memref<64x32xbf16, #tpu.memory_space<vmem>>, vector<64x32xbf16>
    %c0_13 = arith.constant 0 : index
    %c0_14 = arith.constant 0 : index
    %7 = vector.load %arg16[%c0_13, %c0_14] : memref<11x32xf32, #tpu.memory_space<vmem>>, vector<11x32xf32>
    %c0_15 = arith.constant 0 : index
    %c0_16 = arith.constant 0 : index
    %c0_17 = arith.constant 0 : index
    %8 = vector.load %arg7[%c0_15, %c0_16, %c0_17] : memref<1x8x8xi8, #tpu.memory_space<vmem>>, vector<1x8x8xi8>
    %9 = vector.shape_cast %8 : vector<1x8x8xi8> to vector<8x8xi8>
    %10 = arith.sitofp %9 : vector<8x8xi8> to vector<8x8xf32>
    %cst = arith.constant 1.000000e+00 : f32
    %11 = vector.broadcast %cst : f32 to vector<8x8xf32>
    %12 = arith.subf %10, %11 : vector<8x8xf32>
    %cst_18 = arith.constant 1.000000e+09 : f32
    %13 = vector.broadcast %cst_18 : f32 to vector<8x8xf32>
    %14 = arith.mulf %12, %13 : vector<8x8xf32>
    %c0_19 = arith.constant 0 : index
    %c0_20 = arith.constant 0 : index
    %c0_21 = arith.constant 0 : index
    %15 = vector.load %arg8[%c0_19, %c0_20, %c0_21] : memref<1x8x8xi8, #tpu.memory_space<vmem>>, vector<1x8x8xi8>
    %16 = vector.shape_cast %15 : vector<1x8x8xi8> to vector<8x8xi8>
    %17 = arith.sitofp %16 : vector<8x8xi8> to vector<8x8xf32>
    %cst_22 = arith.constant 1.000000e+00 : f32
    %18 = vector.broadcast %cst_22 : f32 to vector<8x8xf32>
    %19 = arith.subf %17, %18 : vector<8x8xf32>
    %cst_23 = arith.constant 1.000000e+09 : f32
    %20 = vector.broadcast %cst_23 : f32 to vector<8x8xf32>
    %21 = arith.mulf %19, %20 : vector<8x8xf32>
    %c0_24 = arith.constant 0 : index
    %c0_25 = arith.constant 0 : index
    %c0_26 = arith.constant 0 : index
    %22 = vector.load %arg2[%c0_24, %c0_25, %c0_26] : memref<1x8x32xf32, #tpu.memory_space<vmem>>, vector<1x8x32xf32>
    %23 = vector.shape_cast %22 : vector<1x8x32xf32> to vector<8x32xf32>
    %24 = vector.extract_strided_slice %7 {offsets = [0, 0], sizes = [1, 32], strides = [1, 1]} : vector<11x32xf32> to vector<1x32xf32>
    %25 = vector.shape_cast %24 : vector<1x32xf32> to vector<32xf32>
    %26 = vector.extract_strided_slice %7 {offsets = [1, 0], sizes = [1, 32], strides = [1, 1]} : vector<11x32xf32> to vector<1x32xf32>
    %27 = vector.shape_cast %26 : vector<1x32xf32> to vector<32xf32>
    %28 = vector.extract_strided_slice %7 {offsets = [2, 0], sizes = [1, 32], strides = [1, 1]} : vector<11x32xf32> to vector<1x32xf32>
    %29 = vector.shape_cast %28 : vector<1x32xf32> to vector<32xf32>
    %30 = vector.extract_strided_slice %7 {offsets = [3, 0], sizes = [1, 32], strides = [1, 1]} : vector<11x32xf32> to vector<1x32xf32>
    %31 = vector.shape_cast %30 : vector<1x32xf32> to vector<32xf32>
    %32 = vector.extract_strided_slice %7 {offsets = [4, 0], sizes = [1, 32], strides = [1, 1]} : vector<11x32xf32> to vector<1x32xf32>
    %33 = vector.shape_cast %32 : vector<1x32xf32> to vector<32xf32>
    %34 = vector.extract_strided_slice %7 {offsets = [5, 0], sizes = [1, 32], strides = [1, 1]} : vector<11x32xf32> to vector<1x32xf32>
    %35 = vector.shape_cast %34 : vector<1x32xf32> to vector<32xf32>
    %36 = vector.extract_strided_slice %7 {offsets = [6, 0], sizes = [1, 32], strides = [1, 1]} : vector<11x32xf32> to vector<1x32xf32>
    %37 = vector.shape_cast %36 : vector<1x32xf32> to vector<32xf32>
    %38 = vector.extract_strided_slice %7 {offsets = [7, 0], sizes = [1, 32], strides = [1, 1]} : vector<11x32xf32> to vector<1x32xf32>
    %39 = vector.shape_cast %38 : vector<1x32xf32> to vector<32xf32>
    %40 = vector.extract_strided_slice %7 {offsets = [8, 0], sizes = [1, 32], strides = [1, 1]} : vector<11x32xf32> to vector<1x32xf32>
    %41 = vector.shape_cast %40 : vector<1x32xf32> to vector<32xf32>
    %42 = vector.extract_strided_slice %7 {offsets = [9, 0], sizes = [1, 32], strides = [1, 1]} : vector<11x32xf32> to vector<1x32xf32>
    %43 = vector.shape_cast %42 : vector<1x32xf32> to vector<32xf32>
    %44 = vector.extract_strided_slice %7 {offsets = [10, 0], sizes = [1, 32], strides = [1, 1]} : vector<11x32xf32> to vector<1x32xf32>
    %45 = vector.shape_cast %44 : vector<1x32xf32> to vector<32xf32>
    %46 = arith.truncf %23 : vector<8x32xf32> to vector<8x32xbf16>
    %cst_27 = arith.constant dense<0.000000e+00> : vector<8x32xf32>
    %47 = tpu.matmul %46, %0, %cst_27 {dimension_numbers = #tpu.dot_dimension_numbers<[1], [0], [0], [1], [0, 0, 1, 1], [], []>} : vector<8x32xbf16>, vector<32x32xbf16>, vector<8x32xf32> -> vector<8x32xf32>
    %48 = vector.shape_cast %25 : vector<32xf32> to vector<1x32xf32>
    %49 = vector.broadcast %48 : vector<1x32xf32> to vector<8x32xf32>
    %50 = arith.addf %47, %49 : vector<8x32xf32>
    %cst_28 = arith.constant 0.000000e+00 : f32
    %51 = vector.broadcast %cst_28 : f32 to vector<8x32xf32>
    %52 = vector.extract_strided_slice %50 {offsets = [0, 0], sizes = [8, 8], strides = [1, 1]} : vector<8x32xf32> to vector<8x8xf32>
    %53 = arith.truncf %52 : vector<8x8xf32> to vector<8x8xbf16>
    %cst_29 = arith.constant -1.000000e+30 : f32
    %54 = vector.broadcast %cst_29 : f32 to vector<8x1xf32>
    %cst_30 = arith.constant 0.000000e+00 : f32
    %55 = vector.broadcast %cst_30 : f32 to vector<8x1xf32>
    %cst_31 = arith.constant 0.000000e+00 : f32
    %56 = vector.broadcast %cst_31 : f32 to vector<8x8xf32>
    %c0_32 = arith.constant 0 : index
    %c0_33 = arith.constant 0 : index
    %c0_34 = arith.constant 0 : index
    %c0_35 = arith.constant 0 : index
    %57 = vector.load %arg3[%c0_32, %c0_33, %c0_34, %c0_35] : memref<1x4x8x8xbf16, #tpu.memory_space<vmem>>, vector<1x1x8x8xbf16>
    %58 = vector.shape_cast %57 : vector<1x1x8x8xbf16> to vector<8x8xbf16>
    %c0_36 = arith.constant 0 : index
    %c0_37 = arith.constant 0 : index
    %c0_38 = arith.constant 0 : index
    %c0_39 = arith.constant 0 : index
    %59 = vector.load %arg4[%c0_36, %c0_37, %c0_38, %c0_39] : memref<1x4x8x8xbf16, #tpu.memory_space<vmem>>, vector<1x1x8x8xbf16>
    %60 = vector.shape_cast %59 : vector<1x1x8x8xbf16> to vector<8x8xbf16>
    %cst_40 = arith.constant dense<0.000000e+00> : vector<8x8xf32>
    %61 = tpu.matmul %53, %58, %cst_40 {dimension_numbers = #tpu.dot_dimension_numbers<[1], [0], [0], [1], [0, 0, 1, 1], [], []>} : vector<8x8xbf16>, vector<8x8xbf16>, vector<8x8xf32> -> vector<8x8xf32>
    %62 = arith.addf %61, %14 : vector<8x8xf32>
    %cst_41 = arith.constant dense<0xFF800000> : vector<8xf32>
    %63 = vector.multi_reduction <maximumf>, %62, %cst_41 [1] : vector<8x8xf32> to vector<8xf32>
    %64 = vector.shape_cast %63 : vector<8xf32> to vector<8x1xf32>
    %65 = arith.maximumf %54, %64 : vector<8x1xf32>
    %66 = arith.subf %54, %65 : vector<8x1xf32>
    %67 = math.exp %66 : vector<8x1xf32>
    %68 = vector.broadcast %65 : vector<8x1xf32> to vector<8x8xf32>
    %69 = arith.subf %62, %68 : vector<8x8xf32>
    %70 = math.exp %69 : vector<8x8xf32>
    %71 = arith.mulf %67, %55 : vector<8x1xf32>
    %cst_42 = arith.constant dense<0.000000e+00> : vector<8xf32>
    %72 = vector.multi_reduction <add>, %70, %cst_42 [1] : vector<8x8xf32> to vector<8xf32>
    %73 = vector.shape_cast %72 : vector<8xf32> to vector<8x1xf32>
    %74 = arith.addf %71, %73 : vector<8x1xf32>
    %75 = vector.broadcast %67 : vector<8x1xf32> to vector<8x8xf32>
    %76 = arith.mulf %75, %56 : vector<8x8xf32>
    %77 = arith.truncf %70 : vector<8x8xf32> to vector<8x8xbf16>
    %cst_43 = arith.constant dense<0.000000e+00> : vector<8x8xf32>
    %78 = tpu.matmul %77, %60, %cst_43 {dimension_numbers = #tpu.dot_dimension_numbers<[1], [0], [0], [1], [0, 0, 1, 1], [], []>} : vector<8x8xbf16>, vector<8x8xbf16>, vector<8x8xf32> -> vector<8x8xf32>
    %79 = arith.addf %76, %78 : vector<8x8xf32>
    %80 = tpu.reciprocal %74 {approx = true} : vector<8x1xf32> -> vector<8x1xf32>
    %81 = vector.broadcast %80 : vector<8x1xf32> to vector<8x8xf32>
    %82 = arith.mulf %79, %81 : vector<8x8xf32>
    %83 = arith.truncf %82 : vector<8x8xf32> to vector<8x8xbf16>
    %84 = vector.extract_strided_slice %1 {offsets = [0, 0], sizes = [8, 32], strides = [1, 1]} : vector<32x32xbf16> to vector<8x32xbf16>
    %cst_44 = arith.constant dense<0.000000e+00> : vector<8x32xf32>
    %85 = tpu.matmul %83, %84, %cst_44 {dimension_numbers = #tpu.dot_dimension_numbers<[1], [0], [0], [1], [0, 0, 1, 1], [], []>} : vector<8x8xbf16>, vector<8x32xbf16>, vector<8x32xf32> -> vector<8x32xf32>
    %86 = arith.addf %51, %85 : vector<8x32xf32>
    %87 = vector.extract_strided_slice %50 {offsets = [0, 8], sizes = [8, 8], strides = [1, 1]} : vector<8x32xf32> to vector<8x8xf32>
    %88 = arith.truncf %87 : vector<8x8xf32> to vector<8x8xbf16>
    %cst_45 = arith.constant -1.000000e+30 : f32
    %89 = vector.broadcast %cst_45 : f32 to vector<8x1xf32>
    %cst_46 = arith.constant 0.000000e+00 : f32
    %90 = vector.broadcast %cst_46 : f32 to vector<8x1xf32>
    %cst_47 = arith.constant 0.000000e+00 : f32
    %91 = vector.broadcast %cst_47 : f32 to vector<8x8xf32>
    %c0_48 = arith.constant 0 : index
    %c1 = arith.constant 1 : index
    %c0_49 = arith.constant 0 : index
    %c0_50 = arith.constant 0 : index
    %92 = vector.load %arg3[%c0_48, %c1, %c0_49, %c0_50] : memref<1x4x8x8xbf16, #tpu.memory_space<vmem>>, vector<1x1x8x8xbf16>
    %93 = vector.shape_cast %92 : vector<1x1x8x8xbf16> to vector<8x8xbf16>
    %c0_51 = arith.constant 0 : index
    %c1_52 = arith.constant 1 : index
    %c0_53 = arith.constant 0 : index
    %c0_54 = arith.constant 0 : index
    %94 = vector.load %arg4[%c0_51, %c1_52, %c0_53, %c0_54] : memref<1x4x8x8xbf16, #tpu.memory_space<vmem>>, vector<1x1x8x8xbf16>
    %95 = vector.shape_cast %94 : vector<1x1x8x8xbf16> to vector<8x8xbf16>
    %cst_55 = arith.constant dense<0.000000e+00> : vector<8x8xf32>
    %96 = tpu.matmul %88, %93, %cst_55 {dimension_numbers = #tpu.dot_dimension_numbers<[1], [0], [0], [1], [0, 0, 1, 1], [], []>} : vector<8x8xbf16>, vector<8x8xbf16>, vector<8x8xf32> -> vector<8x8xf32>
    %97 = arith.addf %96, %14 : vector<8x8xf32>
    %cst_56 = arith.constant dense<0xFF800000> : vector<8xf32>
    %98 = vector.multi_reduction <maximumf>, %97, %cst_56 [1] : vector<8x8xf32> to vector<8xf32>
    %99 = vector.shape_cast %98 : vector<8xf32> to vector<8x1xf32>
    %100 = arith.maximumf %89, %99 : vector<8x1xf32>
    %101 = arith.subf %89, %100 : vector<8x1xf32>
    %102 = math.exp %101 : vector<8x1xf32>
    %103 = vector.broadcast %100 : vector<8x1xf32> to vector<8x8xf32>
    %104 = arith.subf %97, %103 : vector<8x8xf32>
    %105 = math.exp %104 : vector<8x8xf32>
    %106 = arith.mulf %102, %90 : vector<8x1xf32>
    %cst_57 = arith.constant dense<0.000000e+00> : vector<8xf32>
    %107 = vector.multi_reduction <add>, %105, %cst_57 [1] : vector<8x8xf32> to vector<8xf32>
    %108 = vector.shape_cast %107 : vector<8xf32> to vector<8x1xf32>
    %109 = arith.addf %106, %108 : vector<8x1xf32>
    %110 = vector.broadcast %102 : vector<8x1xf32> to vector<8x8xf32>
    %111 = arith.mulf %110, %91 : vector<8x8xf32>
    %112 = arith.truncf %105 : vector<8x8xf32> to vector<8x8xbf16>
    %cst_58 = arith.constant dense<0.000000e+00> : vector<8x8xf32>
    %113 = tpu.matmul %112, %95, %cst_58 {dimension_numbers = #tpu.dot_dimension_numbers<[1], [0], [0], [1], [0, 0, 1, 1], [], []>} : vector<8x8xbf16>, vector<8x8xbf16>, vector<8x8xf32> -> vector<8x8xf32>
    %114 = arith.addf %111, %113 : vector<8x8xf32>
    %115 = tpu.reciprocal %109 {approx = true} : vector<8x1xf32> -> vector<8x1xf32>
    %116 = vector.broadcast %115 : vector<8x1xf32> to vector<8x8xf32>
    %117 = arith.mulf %114, %116 : vector<8x8xf32>
    %118 = arith.truncf %117 : vector<8x8xf32> to vector<8x8xbf16>
    %119 = vector.extract_strided_slice %1 {offsets = [8, 0], sizes = [8, 32], strides = [1, 1]} : vector<32x32xbf16> to vector<8x32xbf16>
    %cst_59 = arith.constant dense<0.000000e+00> : vector<8x32xf32>
    %120 = tpu.matmul %118, %119, %cst_59 {dimension_numbers = #tpu.dot_dimension_numbers<[1], [0], [0], [1], [0, 0, 1, 1], [], []>} : vector<8x8xbf16>, vector<8x32xbf16>, vector<8x32xf32> -> vector<8x32xf32>
    %121 = arith.addf %86, %120 : vector<8x32xf32>
    %122 = vector.extract_strided_slice %50 {offsets = [0, 16], sizes = [8, 8], strides = [1, 1]} : vector<8x32xf32> to vector<8x8xf32>
    %123 = arith.truncf %122 : vector<8x8xf32> to vector<8x8xbf16>
    %cst_60 = arith.constant -1.000000e+30 : f32
    %124 = vector.broadcast %cst_60 : f32 to vector<8x1xf32>
    %cst_61 = arith.constant 0.000000e+00 : f32
    %125 = vector.broadcast %cst_61 : f32 to vector<8x1xf32>
    %cst_62 = arith.constant 0.000000e+00 : f32
    %126 = vector.broadcast %cst_62 : f32 to vector<8x8xf32>
    %c0_63 = arith.constant 0 : index
    %c2 = arith.constant 2 : index
    %c0_64 = arith.constant 0 : index
    %c0_65 = arith.constant 0 : index
    %127 = vector.load %arg3[%c0_63, %c2, %c0_64, %c0_65] : memref<1x4x8x8xbf16, #tpu.memory_space<vmem>>, vector<1x1x8x8xbf16>
    %128 = vector.shape_cast %127 : vector<1x1x8x8xbf16> to vector<8x8xbf16>
    %c0_66 = arith.constant 0 : index
    %c2_67 = arith.constant 2 : index
    %c0_68 = arith.constant 0 : index
    %c0_69 = arith.constant 0 : index
    %129 = vector.load %arg4[%c0_66, %c2_67, %c0_68, %c0_69] : memref<1x4x8x8xbf16, #tpu.memory_space<vmem>>, vector<1x1x8x8xbf16>
    %130 = vector.shape_cast %129 : vector<1x1x8x8xbf16> to vector<8x8xbf16>
    %cst_70 = arith.constant dense<0.000000e+00> : vector<8x8xf32>
    %131 = tpu.matmul %123, %128, %cst_70 {dimension_numbers = #tpu.dot_dimension_numbers<[1], [0], [0], [1], [0, 0, 1, 1], [], []>} : vector<8x8xbf16>, vector<8x8xbf16>, vector<8x8xf32> -> vector<8x8xf32>
    %132 = arith.addf %131, %14 : vector<8x8xf32>
    %cst_71 = arith.constant dense<0xFF800000> : vector<8xf32>
    %133 = vector.multi_reduction <maximumf>, %132, %cst_71 [1] : vector<8x8xf32> to vector<8xf32>
    %134 = vector.shape_cast %133 : vector<8xf32> to vector<8x1xf32>
    %135 = arith.maximumf %124, %134 : vector<8x1xf32>
    %136 = arith.subf %124, %135 : vector<8x1xf32>
    %137 = math.exp %136 : vector<8x1xf32>
    %138 = vector.broadcast %135 : vector<8x1xf32> to vector<8x8xf32>
    %139 = arith.subf %132, %138 : vector<8x8xf32>
    %140 = math.exp %139 : vector<8x8xf32>
    %141 = arith.mulf %137, %125 : vector<8x1xf32>
    %cst_72 = arith.constant dense<0.000000e+00> : vector<8xf32>
    %142 = vector.multi_reduction <add>, %140, %cst_72 [1] : vector<8x8xf32> to vector<8xf32>
    %143 = vector.shape_cast %142 : vector<8xf32> to vector<8x1xf32>
    %144 = arith.addf %141, %143 : vector<8x1xf32>
    %145 = vector.broadcast %137 : vector<8x1xf32> to vector<8x8xf32>
    %146 = arith.mulf %145, %126 : vector<8x8xf32>
    %147 = arith.truncf %140 : vector<8x8xf32> to vector<8x8xbf16>
    %cst_73 = arith.constant dense<0.000000e+00> : vector<8x8xf32>
    %148 = tpu.matmul %147, %130, %cst_73 {dimension_numbers = #tpu.dot_dimension_numbers<[1], [0], [0], [1], [0, 0, 1, 1], [], []>} : vector<8x8xbf16>, vector<8x8xbf16>, vector<8x8xf32> -> vector<8x8xf32>
    %149 = arith.addf %146, %148 : vector<8x8xf32>
    %150 = tpu.reciprocal %144 {approx = true} : vector<8x1xf32> -> vector<8x1xf32>
    %151 = vector.broadcast %150 : vector<8x1xf32> to vector<8x8xf32>
    %152 = arith.mulf %149, %151 : vector<8x8xf32>
    %153 = arith.truncf %152 : vector<8x8xf32> to vector<8x8xbf16>
    %154 = vector.extract_strided_slice %1 {offsets = [16, 0], sizes = [8, 32], strides = [1, 1]} : vector<32x32xbf16> to vector<8x32xbf16>
    %cst_74 = arith.constant dense<0.000000e+00> : vector<8x32xf32>
    %155 = tpu.matmul %153, %154, %cst_74 {dimension_numbers = #tpu.dot_dimension_numbers<[1], [0], [0], [1], [0, 0, 1, 1], [], []>} : vector<8x8xbf16>, vector<8x32xbf16>, vector<8x32xf32> -> vector<8x32xf32>
    %156 = arith.addf %121, %155 : vector<8x32xf32>
    %157 = vector.extract_strided_slice %50 {offsets = [0, 24], sizes = [8, 8], strides = [1, 1]} : vector<8x32xf32> to vector<8x8xf32>
    %158 = arith.truncf %157 : vector<8x8xf32> to vector<8x8xbf16>
    %cst_75 = arith.constant -1.000000e+30 : f32
    %159 = vector.broadcast %cst_75 : f32 to vector<8x1xf32>
    %cst_76 = arith.constant 0.000000e+00 : f32
    %160 = vector.broadcast %cst_76 : f32 to vector<8x1xf32>
    %cst_77 = arith.constant 0.000000e+00 : f32
    %161 = vector.broadcast %cst_77 : f32 to vector<8x8xf32>
    %c0_78 = arith.constant 0 : index
    %c3 = arith.constant 3 : index
    %c0_79 = arith.constant 0 : index
    %c0_80 = arith.constant 0 : index
    %162 = vector.load %arg3[%c0_78, %c3, %c0_79, %c0_80] : memref<1x4x8x8xbf16, #tpu.memory_space<vmem>>, vector<1x1x8x8xbf16>
    %163 = vector.shape_cast %162 : vector<1x1x8x8xbf16> to vector<8x8xbf16>
    %c0_81 = arith.constant 0 : index
    %c3_82 = arith.constant 3 : index
    %c0_83 = arith.constant 0 : index
    %c0_84 = arith.constant 0 : index
    %164 = vector.load %arg4[%c0_81, %c3_82, %c0_83, %c0_84] : memref<1x4x8x8xbf16, #tpu.memory_space<vmem>>, vector<1x1x8x8xbf16>
    %165 = vector.shape_cast %164 : vector<1x1x8x8xbf16> to vector<8x8xbf16>
    %cst_85 = arith.constant dense<0.000000e+00> : vector<8x8xf32>
    %166 = tpu.matmul %158, %163, %cst_85 {dimension_numbers = #tpu.dot_dimension_numbers<[1], [0], [0], [1], [0, 0, 1, 1], [], []>} : vector<8x8xbf16>, vector<8x8xbf16>, vector<8x8xf32> -> vector<8x8xf32>
    %167 = arith.addf %166, %14 : vector<8x8xf32>
    %cst_86 = arith.constant dense<0xFF800000> : vector<8xf32>
    %168 = vector.multi_reduction <maximumf>, %167, %cst_86 [1] : vector<8x8xf32> to vector<8xf32>
    %169 = vector.shape_cast %168 : vector<8xf32> to vector<8x1xf32>
    %170 = arith.maximumf %159, %169 : vector<8x1xf32>
    %171 = arith.subf %159, %170 : vector<8x1xf32>
    %172 = math.exp %171 : vector<8x1xf32>
    %173 = vector.broadcast %170 : vector<8x1xf32> to vector<8x8xf32>
    %174 = arith.subf %167, %173 : vector<8x8xf32>
    %175 = math.exp %174 : vector<8x8xf32>
    %176 = arith.mulf %172, %160 : vector<8x1xf32>
    %cst_87 = arith.constant dense<0.000000e+00> : vector<8xf32>
    %177 = vector.multi_reduction <add>, %175, %cst_87 [1] : vector<8x8xf32> to vector<8xf32>
    %178 = vector.shape_cast %177 : vector<8xf32> to vector<8x1xf32>
    %179 = arith.addf %176, %178 : vector<8x1xf32>
    %180 = vector.broadcast %172 : vector<8x1xf32> to vector<8x8xf32>
    %181 = arith.mulf %180, %161 : vector<8x8xf32>
    %182 = arith.truncf %175 : vector<8x8xf32> to vector<8x8xbf16>
    %cst_88 = arith.constant dense<0.000000e+00> : vector<8x8xf32>
    %183 = tpu.matmul %182, %165, %cst_88 {dimension_numbers = #tpu.dot_dimension_numbers<[1], [0], [0], [1], [0, 0, 1, 1], [], []>} : vector<8x8xbf16>, vector<8x8xbf16>, vector<8x8xf32> -> vector<8x8xf32>
    %184 = arith.addf %181, %183 : vector<8x8xf32>
    %185 = tpu.reciprocal %179 {approx = true} : vector<8x1xf32> -> vector<8x1xf32>
    %186 = vector.broadcast %185 : vector<8x1xf32> to vector<8x8xf32>
    %187 = arith.mulf %184, %186 : vector<8x8xf32>
    %188 = arith.truncf %187 : vector<8x8xf32> to vector<8x8xbf16>
    %189 = vector.extract_strided_slice %1 {offsets = [24, 0], sizes = [8, 32], strides = [1, 1]} : vector<32x32xbf16> to vector<8x32xbf16>
    %cst_89 = arith.constant dense<0.000000e+00> : vector<8x32xf32>
    %190 = tpu.matmul %188, %189, %cst_89 {dimension_numbers = #tpu.dot_dimension_numbers<[1], [0], [0], [1], [0, 0, 1, 1], [], []>} : vector<8x8xbf16>, vector<8x32xbf16>, vector<8x32xf32> -> vector<8x32xf32>
    %191 = arith.addf %156, %190 : vector<8x32xf32>
    %192 = vector.shape_cast %27 : vector<32xf32> to vector<1x32xf32>
    %193 = vector.broadcast %192 : vector<1x32xf32> to vector<8x32xf32>
    %194 = arith.addf %191, %193 : vector<8x32xf32>
    %195 = arith.addf %23, %194 : vector<8x32xf32>
    %cst_90 = arith.constant dense<0.000000e+00> : vector<8xf32>
    %196 = vector.multi_reduction <add>, %195, %cst_90 [1] : vector<8x32xf32> to vector<8xf32>
    %197 = vector.shape_cast %196 : vector<8xf32> to vector<8x1xf32>
    %cst_91 = arith.constant 3.200000e+01 : f32
    %198 = vector.broadcast %cst_91 : f32 to vector<8x1xf32>
    %199 = arith.divf %197, %198 : vector<8x1xf32>
    %200 = vector.broadcast %199 : vector<8x1xf32> to vector<8x32xf32>
    %201 = arith.subf %195, %200 : vector<8x32xf32>
    %202 = arith.mulf %201, %201 : vector<8x32xf32>
    %cst_92 = arith.constant dense<0.000000e+00> : vector<8xf32>
    %203 = vector.multi_reduction <add>, %202, %cst_92 [1] : vector<8x32xf32> to vector<8xf32>
    %204 = vector.shape_cast %203 : vector<8xf32> to vector<8x1xf32>
    %cst_93 = arith.constant 3.100000e+01 : f32
    %205 = vector.broadcast %cst_93 : f32 to vector<8x1xf32>
    %206 = arith.divf %204, %205 : vector<8x1xf32>
    %207 = math.sqrt %206 : vector<8x1xf32>
    %208 = vector.broadcast %199 : vector<8x1xf32> to vector<8x32xf32>
    %209 = arith.subf %195, %208 : vector<8x32xf32>
    %210 = vector.shape_cast %35 : vector<32xf32> to vector<1x32xf32>
    %211 = vector.broadcast %210 : vector<1x32xf32> to vector<8x32xf32>
    %212 = arith.mulf %211, %209 : vector<8x32xf32>
    %cst_94 = arith.constant 9.99999997E-7 : f32
    %213 = vector.broadcast %cst_94 : f32 to vector<8x1xf32>
    %214 = arith.addf %207, %213 : vector<8x1xf32>
    %215 = vector.broadcast %214 : vector<8x1xf32> to vector<8x32xf32>
    %216 = arith.divf %212, %215 : vector<8x32xf32>
    %217 = vector.shape_cast %37 : vector<32xf32> to vector<1x32xf32>
    %218 = vector.broadcast %217 : vector<1x32xf32> to vector<8x32xf32>
    %219 = arith.addf %216, %218 : vector<8x32xf32>
    %220 = arith.truncf %219 : vector<8x32xf32> to vector<8x32xbf16>
    %cst_95 = arith.constant dense<0.000000e+00> : vector<8x32xf32>
    %221 = tpu.matmul %220, %2, %cst_95 {dimension_numbers = #tpu.dot_dimension_numbers<[1], [0], [0], [1], [0, 0, 1, 1], [], []>} : vector<8x32xbf16>, vector<32x32xbf16>, vector<8x32xf32> -> vector<8x32xf32>
    %222 = vector.shape_cast %29 : vector<32xf32> to vector<1x32xf32>
    %223 = vector.broadcast %222 : vector<1x32xf32> to vector<8x32xf32>
    %224 = arith.addf %221, %223 : vector<8x32xf32>
    %cst_96 = arith.constant 0.000000e+00 : f32
    %225 = vector.broadcast %cst_96 : f32 to vector<8x32xf32>
    %226 = vector.extract_strided_slice %224 {offsets = [0, 0], sizes = [8, 8], strides = [1, 1]} : vector<8x32xf32> to vector<8x8xf32>
    %227 = arith.truncf %226 : vector<8x8xf32> to vector<8x8xbf16>
    %cst_97 = arith.constant -1.000000e+30 : f32
    %228 = vector.broadcast %cst_97 : f32 to vector<8x1xf32>
    %cst_98 = arith.constant 0.000000e+00 : f32
    %229 = vector.broadcast %cst_98 : f32 to vector<8x1xf32>
    %cst_99 = arith.constant 0.000000e+00 : f32
    %230 = vector.broadcast %cst_99 : f32 to vector<8x8xf32>
    %c0_100 = arith.constant 0 : index
    %c0_101 = arith.constant 0 : index
    %c0_102 = arith.constant 0 : index
    %c0_103 = arith.constant 0 : index
    %231 = vector.load %arg5[%c0_100, %c0_101, %c0_102, %c0_103] : memref<1x4x8x8xbf16, #tpu.memory_space<vmem>>, vector<1x1x8x8xbf16>
    %232 = vector.shape_cast %231 : vector<1x1x8x8xbf16> to vector<8x8xbf16>
    %c0_104 = arith.constant 0 : index
    %c0_105 = arith.constant 0 : index
    %c0_106 = arith.constant 0 : index
    %c0_107 = arith.constant 0 : index
    %233 = vector.load %arg6[%c0_104, %c0_105, %c0_106, %c0_107] : memref<1x4x8x8xbf16, #tpu.memory_space<vmem>>, vector<1x1x8x8xbf16>
    %234 = vector.shape_cast %233 : vector<1x1x8x8xbf16> to vector<8x8xbf16>
    %cst_108 = arith.constant dense<0.000000e+00> : vector<8x8xf32>
    %235 = tpu.matmul %227, %232, %cst_108 {dimension_numbers = #tpu.dot_dimension_numbers<[1], [0], [0], [1], [0, 0, 1, 1], [], []>} : vector<8x8xbf16>, vector<8x8xbf16>, vector<8x8xf32> -> vector<8x8xf32>
    %236 = arith.addf %235, %21 : vector<8x8xf32>
    %cst_109 = arith.constant dense<0xFF800000> : vector<8xf32>
    %237 = vector.multi_reduction <maximumf>, %236, %cst_109 [1] : vector<8x8xf32> to vector<8xf32>
    %238 = vector.shape_cast %237 : vector<8xf32> to vector<8x1xf32>
    %239 = arith.maximumf %228, %238 : vector<8x1xf32>
    %240 = arith.subf %228, %239 : vector<8x1xf32>
    %241 = math.exp %240 : vector<8x1xf32>
    %242 = vector.broadcast %239 : vector<8x1xf32> to vector<8x8xf32>
    %243 = arith.subf %236, %242 : vector<8x8xf32>
    %244 = math.exp %243 : vector<8x8xf32>
    %245 = arith.mulf %241, %229 : vector<8x1xf32>
    %cst_110 = arith.constant dense<0.000000e+00> : vector<8xf32>
    %246 = vector.multi_reduction <add>, %244, %cst_110 [1] : vector<8x8xf32> to vector<8xf32>
    %247 = vector.shape_cast %246 : vector<8xf32> to vector<8x1xf32>
    %248 = arith.addf %245, %247 : vector<8x1xf32>
    %249 = vector.broadcast %241 : vector<8x1xf32> to vector<8x8xf32>
    %250 = arith.mulf %249, %230 : vector<8x8xf32>
    %251 = arith.truncf %244 : vector<8x8xf32> to vector<8x8xbf16>
    %cst_111 = arith.constant dense<0.000000e+00> : vector<8x8xf32>
    %252 = tpu.matmul %251, %234, %cst_111 {dimension_numbers = #tpu.dot_dimension_numbers<[1], [0], [0], [1], [0, 0, 1, 1], [], []>} : vector<8x8xbf16>, vector<8x8xbf16>, vector<8x8xf32> -> vector<8x8xf32>
    %253 = arith.addf %250, %252 : vector<8x8xf32>
    %254 = tpu.reciprocal %248 {approx = true} : vector<8x1xf32> -> vector<8x1xf32>
    %255 = vector.broadcast %254 : vector<8x1xf32> to vector<8x8xf32>
    %256 = arith.mulf %253, %255 : vector<8x8xf32>
    %257 = arith.truncf %256 : vector<8x8xf32> to vector<8x8xbf16>
    %258 = vector.extract_strided_slice %3 {offsets = [0, 0], sizes = [8, 32], strides = [1, 1]} : vector<32x32xbf16> to vector<8x32xbf16>
    %cst_112 = arith.constant dense<0.000000e+00> : vector<8x32xf32>
    %259 = tpu.matmul %257, %258, %cst_112 {dimension_numbers = #tpu.dot_dimension_numbers<[1], [0], [0], [1], [0, 0, 1, 1], [], []>} : vector<8x8xbf16>, vector<8x32xbf16>, vector<8x32xf32> -> vector<8x32xf32>
    %260 = arith.addf %225, %259 : vector<8x32xf32>
    %261 = vector.extract_strided_slice %224 {offsets = [0, 8], sizes = [8, 8], strides = [1, 1]} : vector<8x32xf32> to vector<8x8xf32>
    %262 = arith.truncf %261 : vector<8x8xf32> to vector<8x8xbf16>
    %cst_113 = arith.constant -1.000000e+30 : f32
    %263 = vector.broadcast %cst_113 : f32 to vector<8x1xf32>
    %cst_114 = arith.constant 0.000000e+00 : f32
    %264 = vector.broadcast %cst_114 : f32 to vector<8x1xf32>
    %cst_115 = arith.constant 0.000000e+00 : f32
    %265 = vector.broadcast %cst_115 : f32 to vector<8x8xf32>
    %c0_116 = arith.constant 0 : index
    %c1_117 = arith.constant 1 : index
    %c0_118 = arith.constant 0 : index
    %c0_119 = arith.constant 0 : index
    %266 = vector.load %arg5[%c0_116, %c1_117, %c0_118, %c0_119] : memref<1x4x8x8xbf16, #tpu.memory_space<vmem>>, vector<1x1x8x8xbf16>
    %267 = vector.shape_cast %266 : vector<1x1x8x8xbf16> to vector<8x8xbf16>
    %c0_120 = arith.constant 0 : index
    %c1_121 = arith.constant 1 : index
    %c0_122 = arith.constant 0 : index
    %c0_123 = arith.constant 0 : index
    %268 = vector.load %arg6[%c0_120, %c1_121, %c0_122, %c0_123] : memref<1x4x8x8xbf16, #tpu.memory_space<vmem>>, vector<1x1x8x8xbf16>
    %269 = vector.shape_cast %268 : vector<1x1x8x8xbf16> to vector<8x8xbf16>
    %cst_124 = arith.constant dense<0.000000e+00> : vector<8x8xf32>
    %270 = tpu.matmul %262, %267, %cst_124 {dimension_numbers = #tpu.dot_dimension_numbers<[1], [0], [0], [1], [0, 0, 1, 1], [], []>} : vector<8x8xbf16>, vector<8x8xbf16>, vector<8x8xf32> -> vector<8x8xf32>
    %271 = arith.addf %270, %21 : vector<8x8xf32>
    %cst_125 = arith.constant dense<0xFF800000> : vector<8xf32>
    %272 = vector.multi_reduction <maximumf>, %271, %cst_125 [1] : vector<8x8xf32> to vector<8xf32>
    %273 = vector.shape_cast %272 : vector<8xf32> to vector<8x1xf32>
    %274 = arith.maximumf %263, %273 : vector<8x1xf32>
    %275 = arith.subf %263, %274 : vector<8x1xf32>
    %276 = math.exp %275 : vector<8x1xf32>
    %277 = vector.broadcast %274 : vector<8x1xf32> to vector<8x8xf32>
    %278 = arith.subf %271, %277 : vector<8x8xf32>
    %279 = math.exp %278 : vector<8x8xf32>
    %280 = arith.mulf %276, %264 : vector<8x1xf32>
    %cst_126 = arith.constant dense<0.000000e+00> : vector<8xf32>
    %281 = vector.multi_reduction <add>, %279, %cst_126 [1] : vector<8x8xf32> to vector<8xf32>
    %282 = vector.shape_cast %281 : vector<8xf32> to vector<8x1xf32>
    %283 = arith.addf %280, %282 : vector<8x1xf32>
    %284 = vector.broadcast %276 : vector<8x1xf32> to vector<8x8xf32>
    %285 = arith.mulf %284, %265 : vector<8x8xf32>
    %286 = arith.truncf %279 : vector<8x8xf32> to vector<8x8xbf16>
    %cst_127 = arith.constant dense<0.000000e+00> : vector<8x8xf32>
    %287 = tpu.matmul %286, %269, %cst_127 {dimension_numbers = #tpu.dot_dimension_numbers<[1], [0], [0], [1], [0, 0, 1, 1], [], []>} : vector<8x8xbf16>, vector<8x8xbf16>, vector<8x8xf32> -> vector<8x8xf32>
    %288 = arith.addf %285, %287 : vector<8x8xf32>
    %289 = tpu.reciprocal %283 {approx = true} : vector<8x1xf32> -> vector<8x1xf32>
    %290 = vector.broadcast %289 : vector<8x1xf32> to vector<8x8xf32>
    %291 = arith.mulf %288, %290 : vector<8x8xf32>
    %292 = arith.truncf %291 : vector<8x8xf32> to vector<8x8xbf16>
    %293 = vector.extract_strided_slice %3 {offsets = [8, 0], sizes = [8, 32], strides = [1, 1]} : vector<32x32xbf16> to vector<8x32xbf16>
    %cst_128 = arith.constant dense<0.000000e+00> : vector<8x32xf32>
    %294 = tpu.matmul %292, %293, %cst_128 {dimension_numbers = #tpu.dot_dimension_numbers<[1], [0], [0], [1], [0, 0, 1, 1], [], []>} : vector<8x8xbf16>, vector<8x32xbf16>, vector<8x32xf32> -> vector<8x32xf32>
    %295 = arith.addf %260, %294 : vector<8x32xf32>
    %296 = vector.extract_strided_slice %224 {offsets = [0, 16], sizes = [8, 8], strides = [1, 1]} : vector<8x32xf32> to vector<8x8xf32>
    %297 = arith.truncf %296 : vector<8x8xf32> to vector<8x8xbf16>
    %cst_129 = arith.constant -1.000000e+30 : f32
    %298 = vector.broadcast %cst_129 : f32 to vector<8x1xf32>
    %cst_130 = arith.constant 0.000000e+00 : f32
    %299 = vector.broadcast %cst_130 : f32 to vector<8x1xf32>
    %cst_131 = arith.constant 0.000000e+00 : f32
    %300 = vector.broadcast %cst_131 : f32 to vector<8x8xf32>
    %c0_132 = arith.constant 0 : index
    %c2_133 = arith.constant 2 : index
    %c0_134 = arith.constant 0 : index
    %c0_135 = arith.constant 0 : index
    %301 = vector.load %arg5[%c0_132, %c2_133, %c0_134, %c0_135] : memref<1x4x8x8xbf16, #tpu.memory_space<vmem>>, vector<1x1x8x8xbf16>
    %302 = vector.shape_cast %301 : vector<1x1x8x8xbf16> to vector<8x8xbf16>
    %c0_136 = arith.constant 0 : index
    %c2_137 = arith.constant 2 : index
    %c0_138 = arith.constant 0 : index
    %c0_139 = arith.constant 0 : index
    %303 = vector.load %arg6[%c0_136, %c2_137, %c0_138, %c0_139] : memref<1x4x8x8xbf16, #tpu.memory_space<vmem>>, vector<1x1x8x8xbf16>
    %304 = vector.shape_cast %303 : vector<1x1x8x8xbf16> to vector<8x8xbf16>
    %cst_140 = arith.constant dense<0.000000e+00> : vector<8x8xf32>
    %305 = tpu.matmul %297, %302, %cst_140 {dimension_numbers = #tpu.dot_dimension_numbers<[1], [0], [0], [1], [0, 0, 1, 1], [], []>} : vector<8x8xbf16>, vector<8x8xbf16>, vector<8x8xf32> -> vector<8x8xf32>
    %306 = arith.addf %305, %21 : vector<8x8xf32>
    %cst_141 = arith.constant dense<0xFF800000> : vector<8xf32>
    %307 = vector.multi_reduction <maximumf>, %306, %cst_141 [1] : vector<8x8xf32> to vector<8xf32>
    %308 = vector.shape_cast %307 : vector<8xf32> to vector<8x1xf32>
    %309 = arith.maximumf %298, %308 : vector<8x1xf32>
    %310 = arith.subf %298, %309 : vector<8x1xf32>
    %311 = math.exp %310 : vector<8x1xf32>
    %312 = vector.broadcast %309 : vector<8x1xf32> to vector<8x8xf32>
    %313 = arith.subf %306, %312 : vector<8x8xf32>
    %314 = math.exp %313 : vector<8x8xf32>
    %315 = arith.mulf %311, %299 : vector<8x1xf32>
    %cst_142 = arith.constant dense<0.000000e+00> : vector<8xf32>
    %316 = vector.multi_reduction <add>, %314, %cst_142 [1] : vector<8x8xf32> to vector<8xf32>
    %317 = vector.shape_cast %316 : vector<8xf32> to vector<8x1xf32>
    %318 = arith.addf %315, %317 : vector<8x1xf32>
    %319 = vector.broadcast %311 : vector<8x1xf32> to vector<8x8xf32>
    %320 = arith.mulf %319, %300 : vector<8x8xf32>
    %321 = arith.truncf %314 : vector<8x8xf32> to vector<8x8xbf16>
    %cst_143 = arith.constant dense<0.000000e+00> : vector<8x8xf32>
    %322 = tpu.matmul %321, %304, %cst_143 {dimension_numbers = #tpu.dot_dimension_numbers<[1], [0], [0], [1], [0, 0, 1, 1], [], []>} : vector<8x8xbf16>, vector<8x8xbf16>, vector<8x8xf32> -> vector<8x8xf32>
    %323 = arith.addf %320, %322 : vector<8x8xf32>
    %324 = tpu.reciprocal %318 {approx = true} : vector<8x1xf32> -> vector<8x1xf32>
    %325 = vector.broadcast %324 : vector<8x1xf32> to vector<8x8xf32>
    %326 = arith.mulf %323, %325 : vector<8x8xf32>
    %327 = arith.truncf %326 : vector<8x8xf32> to vector<8x8xbf16>
    %328 = vector.extract_strided_slice %3 {offsets = [16, 0], sizes = [8, 32], strides = [1, 1]} : vector<32x32xbf16> to vector<8x32xbf16>
    %cst_144 = arith.constant dense<0.000000e+00> : vector<8x32xf32>
    %329 = tpu.matmul %327, %328, %cst_144 {dimension_numbers = #tpu.dot_dimension_numbers<[1], [0], [0], [1], [0, 0, 1, 1], [], []>} : vector<8x8xbf16>, vector<8x32xbf16>, vector<8x32xf32> -> vector<8x32xf32>
    %330 = arith.addf %295, %329 : vector<8x32xf32>
    %331 = vector.extract_strided_slice %224 {offsets = [0, 24], sizes = [8, 8], strides = [1, 1]} : vector<8x32xf32> to vector<8x8xf32>
    %332 = arith.truncf %331 : vector<8x8xf32> to vector<8x8xbf16>
    %cst_145 = arith.constant -1.000000e+30 : f32
    %333 = vector.broadcast %cst_145 : f32 to vector<8x1xf32>
    %cst_146 = arith.constant 0.000000e+00 : f32
    %334 = vector.broadcast %cst_146 : f32 to vector<8x1xf32>
    %cst_147 = arith.constant 0.000000e+00 : f32
    %335 = vector.broadcast %cst_147 : f32 to vector<8x8xf32>
    %c0_148 = arith.constant 0 : index
    %c3_149 = arith.constant 3 : index
    %c0_150 = arith.constant 0 : index
    %c0_151 = arith.constant 0 : index
    %336 = vector.load %arg5[%c0_148, %c3_149, %c0_150, %c0_151] : memref<1x4x8x8xbf16, #tpu.memory_space<vmem>>, vector<1x1x8x8xbf16>
    %337 = vector.shape_cast %336 : vector<1x1x8x8xbf16> to vector<8x8xbf16>
    %c0_152 = arith.constant 0 : index
    %c3_153 = arith.constant 3 : index
    %c0_154 = arith.constant 0 : index
    %c0_155 = arith.constant 0 : index
    %338 = vector.load %arg6[%c0_152, %c3_153, %c0_154, %c0_155] : memref<1x4x8x8xbf16, #tpu.memory_space<vmem>>, vector<1x1x8x8xbf16>
    %339 = vector.shape_cast %338 : vector<1x1x8x8xbf16> to vector<8x8xbf16>
    %cst_156 = arith.constant dense<0.000000e+00> : vector<8x8xf32>
    %340 = tpu.matmul %332, %337, %cst_156 {dimension_numbers = #tpu.dot_dimension_numbers<[1], [0], [0], [1], [0, 0, 1, 1], [], []>} : vector<8x8xbf16>, vector<8x8xbf16>, vector<8x8xf32> -> vector<8x8xf32>
    %341 = arith.addf %340, %21 : vector<8x8xf32>
    %cst_157 = arith.constant dense<0xFF800000> : vector<8xf32>
    %342 = vector.multi_reduction <maximumf>, %341, %cst_157 [1] : vector<8x8xf32> to vector<8xf32>
    %343 = vector.shape_cast %342 : vector<8xf32> to vector<8x1xf32>
    %344 = arith.maximumf %333, %343 : vector<8x1xf32>
    %345 = arith.subf %333, %344 : vector<8x1xf32>
    %346 = math.exp %345 : vector<8x1xf32>
    %347 = vector.broadcast %344 : vector<8x1xf32> to vector<8x8xf32>
    %348 = arith.subf %341, %347 : vector<8x8xf32>
    %349 = math.exp %348 : vector<8x8xf32>
    %350 = arith.mulf %346, %334 : vector<8x1xf32>
    %cst_158 = arith.constant dense<0.000000e+00> : vector<8xf32>
    %351 = vector.multi_reduction <add>, %349, %cst_158 [1] : vector<8x8xf32> to vector<8xf32>
    %352 = vector.shape_cast %351 : vector<8xf32> to vector<8x1xf32>
    %353 = arith.addf %350, %352 : vector<8x1xf32>
    %354 = vector.broadcast %346 : vector<8x1xf32> to vector<8x8xf32>
    %355 = arith.mulf %354, %335 : vector<8x8xf32>
    %356 = arith.truncf %349 : vector<8x8xf32> to vector<8x8xbf16>
    %cst_159 = arith.constant dense<0.000000e+00> : vector<8x8xf32>
    %357 = tpu.matmul %356, %339, %cst_159 {dimension_numbers = #tpu.dot_dimension_numbers<[1], [0], [0], [1], [0, 0, 1, 1], [], []>} : vector<8x8xbf16>, vector<8x8xbf16>, vector<8x8xf32> -> vector<8x8xf32>
    %358 = arith.addf %355, %357 : vector<8x8xf32>
    %359 = tpu.reciprocal %353 {approx = true} : vector<8x1xf32> -> vector<8x1xf32>
    %360 = vector.broadcast %359 : vector<8x1xf32> to vector<8x8xf32>
    %361 = arith.mulf %358, %360 : vector<8x8xf32>
    %362 = arith.truncf %361 : vector<8x8xf32> to vector<8x8xbf16>
    %363 = vector.extract_strided_slice %3 {offsets = [24, 0], sizes = [8, 32], strides = [1, 1]} : vector<32x32xbf16> to vector<8x32xbf16>
    %cst_160 = arith.constant dense<0.000000e+00> : vector<8x32xf32>
    %364 = tpu.matmul %362, %363, %cst_160 {dimension_numbers = #tpu.dot_dimension_numbers<[1], [0], [0], [1], [0, 0, 1, 1], [], []>} : vector<8x8xbf16>, vector<8x32xbf16>, vector<8x32xf32> -> vector<8x32xf32>
    %365 = arith.addf %330, %364 : vector<8x32xf32>
    %366 = vector.shape_cast %31 : vector<32xf32> to vector<1x32xf32>
    %367 = vector.broadcast %366 : vector<1x32xf32> to vector<8x32xf32>
    %368 = arith.addf %365, %367 : vector<8x32xf32>
    %369 = arith.addf %219, %368 : vector<8x32xf32>
    %cst_161 = arith.constant dense<0.000000e+00> : vector<8xf32>
    %370 = vector.multi_reduction <add>, %369, %cst_161 [1] : vector<8x32xf32> to vector<8xf32>
    %371 = vector.shape_cast %370 : vector<8xf32> to vector<8x1xf32>
    %cst_162 = arith.constant 3.200000e+01 : f32
    %372 = vector.broadcast %cst_162 : f32 to vector<8x1xf32>
    %373 = arith.divf %371, %372 : vector<8x1xf32>
    %374 = vector.broadcast %373 : vector<8x1xf32> to vector<8x32xf32>
    %375 = arith.subf %369, %374 : vector<8x32xf32>
    %376 = arith.mulf %375, %375 : vector<8x32xf32>
    %cst_163 = arith.constant dense<0.000000e+00> : vector<8xf32>
    %377 = vector.multi_reduction <add>, %376, %cst_163 [1] : vector<8x32xf32> to vector<8xf32>
    %378 = vector.shape_cast %377 : vector<8xf32> to vector<8x1xf32>
    %cst_164 = arith.constant 3.100000e+01 : f32
    %379 = vector.broadcast %cst_164 : f32 to vector<8x1xf32>
    %380 = arith.divf %378, %379 : vector<8x1xf32>
    %381 = math.sqrt %380 : vector<8x1xf32>
    %382 = vector.broadcast %373 : vector<8x1xf32> to vector<8x32xf32>
    %383 = arith.subf %369, %382 : vector<8x32xf32>
    %384 = vector.shape_cast %39 : vector<32xf32> to vector<1x32xf32>
    %385 = vector.broadcast %384 : vector<1x32xf32> to vector<8x32xf32>
    %386 = arith.mulf %385, %383 : vector<8x32xf32>
    %cst_165 = arith.constant 9.99999997E-7 : f32
    %387 = vector.broadcast %cst_165 : f32 to vector<8x1xf32>
    %388 = arith.addf %381, %387 : vector<8x1xf32>
    %389 = vector.broadcast %388 : vector<8x1xf32> to vector<8x32xf32>
    %390 = arith.divf %386, %389 : vector<8x32xf32>
    %391 = vector.shape_cast %41 : vector<32xf32> to vector<1x32xf32>
    %392 = vector.broadcast %391 : vector<1x32xf32> to vector<8x32xf32>
    %393 = arith.addf %390, %392 : vector<8x32xf32>
    %394 = arith.truncf %393 : vector<8x32xf32> to vector<8x32xbf16>
    %cst_166 = arith.constant dense<0.000000e+00> : vector<8x64xf32>
    %395 = tpu.matmul %394, %4, %cst_166 {dimension_numbers = #tpu.dot_dimension_numbers<[1], [0], [0], [1], [0, 0, 1, 1], [], []>} : vector<8x32xbf16>, vector<32x64xbf16>, vector<8x64xf32> -> vector<8x64xf32>
    %396 = vector.broadcast %5 : vector<1x64xf32> to vector<8x64xf32>
    %397 = arith.addf %395, %396 : vector<8x64xf32>
    %cst_167 = arith.constant 0.000000e+00 : f32
    %398 = vector.broadcast %cst_167 : f32 to vector<8x64xf32>
    %399 = arith.maximumf %397, %398 : vector<8x64xf32>
    %400 = arith.truncf %399 : vector<8x64xf32> to vector<8x64xbf16>
    %cst_168 = arith.constant dense<0.000000e+00> : vector<8x32xf32>
    %401 = tpu.matmul %400, %6, %cst_168 {dimension_numbers = #tpu.dot_dimension_numbers<[1], [0], [0], [1], [0, 0, 1, 1], [], []>} : vector<8x64xbf16>, vector<64x32xbf16>, vector<8x32xf32> -> vector<8x32xf32>
    %402 = vector.shape_cast %33 : vector<32xf32> to vector<1x32xf32>
    %403 = vector.broadcast %402 : vector<1x32xf32> to vector<8x32xf32>
    %404 = arith.addf %401, %403 : vector<8x32xf32>
    %405 = arith.addf %393, %404 : vector<8x32xf32>
    %cst_169 = arith.constant dense<0.000000e+00> : vector<8xf32>
    %406 = vector.multi_reduction <add>, %405, %cst_169 [1] : vector<8x32xf32> to vector<8xf32>
    %407 = vector.shape_cast %406 : vector<8xf32> to vector<8x1xf32>
    %cst_170 = arith.constant 3.200000e+01 : f32
    %408 = vector.broadcast %cst_170 : f32 to vector<8x1xf32>
    %409 = arith.divf %407, %408 : vector<8x1xf32>
    %410 = vector.broadcast %409 : vector<8x1xf32> to vector<8x32xf32>
    %411 = arith.subf %405, %410 : vector<8x32xf32>
    %412 = arith.mulf %411, %411 : vector<8x32xf32>
    %cst_171 = arith.constant dense<0.000000e+00> : vector<8xf32>
    %413 = vector.multi_reduction <add>, %412, %cst_171 [1] : vector<8x32xf32> to vector<8xf32>
    %414 = vector.shape_cast %413 : vector<8xf32> to vector<8x1xf32>
    %cst_172 = arith.constant 3.100000e+01 : f32
    %415 = vector.broadcast %cst_172 : f32 to vector<8x1xf32>
    %416 = arith.divf %414, %415 : vector<8x1xf32>
    %417 = math.sqrt %416 : vector<8x1xf32>
    %418 = vector.broadcast %409 : vector<8x1xf32> to vector<8x32xf32>
    %419 = arith.subf %405, %418 : vector<8x32xf32>
    %420 = vector.shape_cast %43 : vector<32xf32> to vector<1x32xf32>
    %421 = vector.broadcast %420 : vector<1x32xf32> to vector<8x32xf32>
    %422 = arith.mulf %421, %419 : vector<8x32xf32>
    %cst_173 = arith.constant 9.99999997E-7 : f32
    %423 = vector.broadcast %cst_173 : f32 to vector<8x1xf32>
    %424 = arith.addf %417, %423 : vector<8x1xf32>
    %425 = vector.broadcast %424 : vector<8x1xf32> to vector<8x32xf32>
    %426 = arith.divf %422, %425 : vector<8x32xf32>
    %427 = vector.shape_cast %45 : vector<32xf32> to vector<1x32xf32>
    %428 = vector.broadcast %427 : vector<1x32xf32> to vector<8x32xf32>
    %429 = arith.addf %426, %428 : vector<8x32xf32>
    %c0_174 = arith.constant 0 : index
    %c0_175 = arith.constant 0 : index
    %c0_176 = arith.constant 0 : index
    %430 = vector.load %arg17[%c0_174, %c0_175, %c0_176] : memref<1x8x32xf32, #tpu.memory_space<vmem>>, vector<1x8x32xf32>
    %431 = vector.shape_cast %430 : vector<1x8x32xf32> to vector<8x32xf32>
    %432 = vector.shape_cast %429 : vector<8x32xf32> to vector<1x8x32xf32>
    tpu.vector_store %arg17[%c0_174, %c0_175, %c0_176], %432 {strides = array<i32>} : memref<1x8x32xf32, #tpu.memory_space<vmem>>, vector<1x8x32xf32>,
    return
  }
  func.func @transform_0(%arg0: i32, %arg1: i32) -> (i32, i32, i32) {
    %c0_i32 = arith.constant 0 : i32
    %c0_i32_0 = arith.constant 0 : i32
    return %arg0, %arg1, %c0_i32 : i32, i32, i32
  }
  func.func @transform_1(%arg0: i32, %arg1: i32) -> (i32, i32, i32, i32) {
    %c0_i32 = arith.constant 0 : i32
    %c0_i32_0 = arith.constant 0 : i32
    %c0_i32_1 = arith.constant 0 : i32
    %c0_i32_2 = arith.constant 0 : i32
    return %arg0, %c0_i32, %c0_i32_0, %c0_i32_1 : i32, i32, i32, i32
  }
  func.func @transform_2(%arg0: i32, %arg1: i32) -> (i32, i32, i32, i32) {
    %c0_i32 = arith.constant 0 : i32
    %c0_i32_0 = arith.constant 0 : i32
    %c0_i32_1 = arith.constant 0 : i32
    %c0_i32_2 = arith.constant 0 : i32
    return %arg0, %c0_i32, %c0_i32_0, %c0_i32_1 : i32, i32, i32, i32
  }
  func.func @transform_3(%arg0: i32, %arg1: i32) -> (i32, i32, i32, i32) {
    %c0_i32 = arith.constant 0 : i32
    %c0_i32_0 = arith.constant 0 : i32
    %c0_i32_1 = arith.constant 0 : i32
    %c0_i32_2 = arith.constant 0 : i32
    return %arg0, %c0_i32, %c0_i32_0, %c0_i32_1 : i32, i32, i32, i32
  }
  func.func @transform_4(%arg0: i32, %arg1: i32) -> (i32, i32, i32, i32) {
    %c0_i32 = arith.constant 0 : i32
    %c0_i32_0 = arith.constant 0 : i32
    %c0_i32_1 = arith.constant 0 : i32
    %c0_i32_2 = arith.constant 0 : i32
    return %arg0, %c0_i32, %c0_i32_0, %c0_i32_1 : i32, i32, i32, i32
  }
  func.func @transform_5(%arg0: i32, %arg1: i32) -> (i32, i32, i32) {
    %c0_i32 = arith.constant 0 : i32
    %c0_i32_0 = arith.constant 0 : i32
    return %arg0, %arg1, %c0_i32 : i32, i32, i32
  }
  func.func @transform_6(%arg0: i32, %arg1: i32) -> (i32, i32, i32) {
    %c0_i32 = arith.constant 0 : i32
    %c0_i32_0 = arith.constant 0 : i32
    return %arg0, %arg1, %c0_i32 : i32, i32, i32
  }
  func.func @transform_7(%arg0: i32, %arg1: i32) -> (i32, i32) {
    %c0_i32 = arith.constant 0 : i32
    %c0_i32_0 = arith.constant 0 : i32
    %c0_i32_1 = arith.constant 0 : i32
    return %c0_i32, %c0_i32_0 : i32, i32
  }
  func.func @transform_8(%arg0: i32, %arg1: i32) -> (i32, i32) {
    %c0_i32 = arith.constant 0 : i32
    %c0_i32_0 = arith.constant 0 : i32
    %c0_i32_1 = arith.constant 0 : i32
    return %c0_i32, %c0_i32_0 : i32, i32
  }
  func.func @transform_9(%arg0: i32, %arg1: i32) -> (i32, i32) {
    %c0_i32 = arith.constant 0 : i32
    %c0_i32_0 = arith.constant 0 : i32
    %c0_i32_1 = arith.constant 0 : i32
    return %c0_i32, %c0_i32_0 : i32, i32
  }
  func.func @transform_10(%arg0: i32, %arg1: i32) -> (i32, i32) {
    %c0_i32 = arith.constant 0 : i32
    %c0_i32_0 = arith.constant 0 : i32
    %c0_i32_1 = arith.constant 0 : i32
    return %c0_i32, %c0_i32_0 : i32, i32
  }
  func.func @transform_11(%arg0: i32, %arg1: i32) -> (i32, i32) {
    %c0_i32 = arith.constant 0 : i32
    %c0_i32_0 = arith.constant 0 : i32
    %c0_i32_1 = arith.constant 0 : i32
    return %c0_i32, %c0_i32_0 : i32, i32
  }
  func.func @transform_12(%arg0: i32, %arg1: i32) -> (i32, i32) {
    %c0_i32 = arith.constant 0 : i32
    %c0_i32_0 = arith.constant 0 : i32
    %c0_i32_1 = arith.constant 0 : i32
    return %c0_i32, %c0_i32_0 : i32, i32
  }
  func.func @transform_13(%arg0: i32, %arg1: i32) -> (i32, i32) {
    %c0_i32 = arith.constant 0 : i32
    %c0_i32_0 = arith.constant 0 : i32
    %c0_i32_1 = arith.constant 0 : i32
    return %c0_i32, %c0_i32_0 : i32, i32
  }
  func.func @transform_14(%arg0: i32, %arg1: i32) -> (i32, i32) {
    %c0_i32 = arith.constant 0 : i32
    %c0_i32_0 = arith.constant 0 : i32
    %c0_i32_1 = arith.constant 0 : i32
    return %c0_i32, %c0_i32_0 : i32, i32
  }
  func.func @transform_15(%arg0: i32, %arg1: i32) -> (i32, i32, i32) {
    %c0_i32 = arith.constant 0 : i32
    %c0_i32_0 = arith.constant 0 : i32
    return %arg0, %arg1, %c0_i32 : i32, i32, i32
  }
}

module attributes {stable_mosaic.version = 11 : i64} {
  func.func @decoder_layer_kernel(%arg0: i32, %arg1: i32, %arg2: memref<1x8x32xf32, #tpu.memory_space<vmem>>, %arg3: memref<1x4x8x8xbf16, #tpu.memory_space<vmem>>, %arg4: memref<1x4x8x8xbf16, #tpu.memory_space<vmem>>, %arg5: memref<1x4x8x8xbf16, #tpu.memory_space<vmem>>, %arg6: memref<1x4x8x8xbf16, #tpu.memory_space<vmem>>, %arg7: memref<1x8x8xi8, #tpu.memory_space<vmem>>, %arg8: memref<1x8x8xi8, #tpu.memory_space<vmem>>, %arg9: memref<32x32xbf16, #tpu.memory_space<vmem>>, %arg10: memref<32x32xbf16, #tpu.memory_space<vmem>>, %arg11: memref<32x32xbf16, #tpu.memory_space<vmem>>, %arg12: memref<32x32xbf16, #tpu.memory_space<vmem>>, %arg13: memref<32x64xbf16, #tpu.memory_space<vmem>>, %arg14: memref<1x64xf32, #tpu.memory_space<vmem>>, %arg15: memref<64x32xbf16, #tpu.memory_space<vmem>>, %arg16: memref<11x32xf32, #tpu.memory_space<vmem>>, %arg17: memref<1x8x32xf32, #tpu.memory_space<vmem>>) attributes {dimension_semantics = [#tpu.dimension_semantics<parallel>, #tpu.dimension_semantics<parallel>], iteration_bounds = array<i64: 2, 1>, scalar_prefetch = 0 : i64, scratch_operands = 0 : i64, tpu.core_type = #tpu.core_type<tc>, window_params = [{transform_indices = @transform_0, window_bounds = array<i64: 1, 8, 32>}, {transform_indices = @transform_1, window_bounds = array<i64: 1, 4, 8, 8>}, {transform_indices = @transform_2, window_bounds = array<i64: 1, 4, 8, 8>}, {transform_indices = @transform_3, window_bounds = array<i64: 1, 4, 8, 8>}, {transform_indices = @transform_4, window_bounds = array<i64: 1, 4, 8, 8>}, {transform_indices = @transform_5, window_bounds = array<i64: 1, 8, 8>}, {transform_indices = @transform_6, window_bounds = array<i64: 1, 8, 8>}, {pipeline_mode = #tpu.pipeline_mode<synchronous>, transform_indices = @transform_7, window_bounds = array<i64: 32, 32>}, {pipeline_mode = #tpu.pipeline_mode<synchronous>, transform_indices = @transform_8, window_bounds = array<i64: 32, 32>}, {pipeline_mode = #tpu.pipeline_mode<synchronous>, transform_indices = @transform_9, window_bounds = array<i64: 32, 32>}, {pipeline_mode = #tpu.pipeline_mode<synchronous>, transform_indices = @transform_10, window_bounds = array<i64: 32, 32>}, {pipeline_mode = #tpu.pipeline_mode<synchronous>, transform_indices = @transform_11, window_bounds = array<i64: 32, 64>}, {pipeline_mode = #tpu.pipeline_mode<synchronous>, transform_indices = @transform_12, window_bounds = array<i64: 1, 64>}, {pipeline_mode = #tpu.pipeline_mode<synchronous>, transform_indices = @transform_13, window_bounds = array<i64: 64, 32>}, {pipeline_mode = #tpu.pipeline_mode<synchronous>, transform_indices = @transform_14, window_bounds = array<i64: 11, 32>}, {transform_indices = @transform_15, window_bounds = array<i64: 1, 8, 32>}]} {
    %c0 = arith.constant 0 : index
    %c0_0 = arith.constant 0 : index
    %0 = vector.load %arg9[%c0, %c0_0] : memref<32x32xbf16, #tpu.memory_space<vmem>>, vector<32x32xbf16>
    %c0_1 = arith.constant 0 : index
    %c0_2 = arith.constant 0 : index
    %1 = vector.load %arg10[%c0_1, %c0_2] : memref<32x32xbf16, #tpu.memory_space<vmem>>, vector<32x32xbf16>
    %c0_3 = arith.constant 0 : index
    %c0_4 = arith.constant 0 : index
    %2 = vector.load %arg11[%c0_3, %c0_4] : memref<32x32xbf16, #tpu.memory_space<vmem>>, vector<32x32xbf16>
    %c0_5 = arith.constant 0 : index
    %c0_6 = arith.constant 0 : index
    %3 = vector.load %arg12[%c0_5, %c0_6] : memref<32x32xbf16, #tpu.memory_space<vmem>>, vector<32x32xbf16>
    %c0_7 = arith.constant 0 : index
    %c0_8 = arith.constant 0 : index
    %4 = vector.load %arg13[%c0_7, %c0_8] : memref<32x64xbf16, #tpu.memory_space<vmem>>, vector<32x64xbf16>
    %c0_9 = arith.constant 0 : index
    %c0_10 = arith.constant 0 : index
    %5 = vector.load %arg14[%c0_9, %c0_10] : memref<1x64xf32, #tpu.memory_space<vmem>>, vector<1x64xf32>
    %c0_11 = arith.constant 0 : index
    %c0_12 = arith.constant 0 : index
    %6 = vector.load %arg15[%c0_11, %c0_12] : memref<64x32xbf16, #tpu.memory_space<vmem>>, vector<64x32xbf16>
    %c0_13 = arith.constant 0 : index
    %c0_14 = arith.constant 0 : index
    %7 = vector.load %arg16[%c0_13, %c0_14] : memref<11x32xf32, #tpu.memory_space<vmem>>, vector<11x32xf32>
    %c0_15 = arith.constant 0 : index
    %c0_16 = arith.constant 0 : index
    %c0_17 = arith.constant 0 : index
    %8 = vector.load %arg7[%c0_15, %c0_16, %c0_17] : memref<1x8x8xi8, #tpu.memory_space<vmem>>, vector<1x8x8xi8>
    %9 = vector.shape_cast %8 : vector<1x8x8xi8> to vector<8x8xi8>
    %10 = arith.sitofp %9 : vector<8x8xi8> to vector<8x8xf32>
    %cst = arith.constant 1.000000e+00 : f32
    %11 = vector.broadcast %cst : f32 to vector<8x8xf32>
    %12 = arith.subf %10, %11 : vector<8x8xf32>
    %cst_18 = arith.constant 1.000000e+09 : f32
    %13 = vector.broadcast %cst_18 : f32 to vector<8x8xf32>
    %14 = arith.mulf %12, %13 : vector<8x8xf32>
    %c0_19 = arith.constant 0 : index
    %c0_20 = arith.constant 0 : index
    %c0_21 = arith.constant 0 : index
    %15 = vector.load %arg8[%c0_19, %c0_20, %c0_21] : memref<1x8x8xi8, #tpu.memory_space<vmem>>, vector<1x8x8xi8>
    %16 = vector.shape_cast %15 : vector<1x8x8xi8> to vector<8x8xi8>
    %17 = arith.sitofp %16 : vector<8x8xi8> to vector<8x8xf32>
    %cst_22 = arith.constant 1.000000e+00 : f32
    %18 = vector.broadcast %cst_22 : f32 to vector<8x8xf32>
    %19 = arith.subf %17, %18 : vector<8x8xf32>
    %cst_23 = arith.constant 1.000000e+09 : f32
    %20 = vector.broadcast %cst_23 : f32 to vector<8x8xf32>
    %21 = arith.mulf %19, %20 : vector<8x8xf32>
    %c0_24 = arith.constant 0 : index
    %c0_25 = arith.constant 0 : index
    %c0_26 = arith.constant 0 : index
    %22 = vector.load %arg2[%c0_24, %c0_25, %c0_26] : memref<1x8x32xf32, #tpu.memory_space<vmem>>, vector<1x8x32xf32>
    %23 = vector.shape_cast %22 : vector<1x8x32xf32> to vector<8x32xf32>
    %24 = vector.extract_strided_slice %7 {offsets = [0, 0], sizes = [1, 32], strides = [1, 1]} : vector<11x32xf32> to vector<1x32xf32>
    %25 = vector.shape_cast %24 : vector<1x32xf32> to vector<32xf32>
    %26 = vector.extract_strided_slice %7 {offsets = [1, 0], sizes = [1, 32], strides = [1, 1]} : vector<11x32xf32> to vector<1x32xf32>
    %27 = vector.shape_cast %26 : vector<1x32xf32> to vector<32xf32>
    %28 = vector.extract_strided_slice %7 {offsets = [2, 0], sizes = [1, 32], strides = [1, 1]} : vector<11x32xf32> to vector<1x32xf32>
    %29 = vector.shape_cast %28 : vector<1x32xf32> to vector<32xf32>
    %30 = vector.extract_strided_slice %7 {offsets = [3, 0], sizes = [1, 32], strides = [1, 1]} : vector<11x32xf32> to vector<1x32xf32>
    %31 = vector.shape_cast %30 : vector<1x32xf32> to vector<32xf32>
    %32 = vector.extract_strided_slice %7 {offsets = [4, 0], sizes = [1, 32], strides = [1, 1]} : vector<11x32xf32> to vector<1x32xf32>
    %33 = vector.shape_cast %32 : vector<1x32xf32> to vector<32xf32>
    %34 = vector.extract_strided_slice %7 {offsets = [5, 0], sizes = [1, 32], strides = [1, 1]} : vector<11x32xf32> to vector<1x32xf32>
    %35 = vector.shape_cast %34 : vector<1x32xf32> to vector<32xf32>
    %36 = vector.extract_strided_slice %7 {offsets = [6, 0], sizes = [1, 32], strides = [1, 1]} : vector<11x32xf32> to vector<1x32xf32>
    %37 = vector.shape_cast %36 : vector<1x32xf32> to vector<32xf32>
    %38 = vector.extract_strided_slice %7 {offsets = [7, 0], sizes = [1, 32], strides = [1, 1]} : vector<11x32xf32> to vector<1x32xf32>
    %39 = vector.shape_cast %38 : vector<1x32xf32> to vector<32xf32>
    %40 = vector.extract_strided_slice %7 {offsets = [8, 0], sizes = [1, 32], strides = [1, 1]} : vector<11x32xf32> to vector<1x32xf32>
    %41 = vector.shape_cast %40 : vector<1x32xf32> to vector<32xf32>
    %42 = vector.extract_strided_slice %7 {offsets = [9, 0], sizes = [1, 32], strides = [1, 1]} : vector<11x32xf32> to vector<1x32xf32>
    %43 = vector.shape_cast %42 : vector<1x32xf32> to vector<32xf32>
    %44 = vector.extract_strided_slice %7 {offsets = [10, 0], sizes = [1, 32], strides = [1, 1]} : vector<11x32xf32> to vector<1x32xf32>
    %45 = vector.shape_cast %44 : vector<1x32xf32> to vector<32xf32>
    %46 = arith.truncf %23 : vector<8x32xf32> to vector<8x32xbf16>
    %cst_27 = arith.constant dense<0.000000e+00> : vector<8x32xf32>
    %47 = tpu.matmul %46, %0, %cst_27 {dimension_numbers = #tpu.dot_dimension_numbers<[1], [0], [0], [1], [0, 0, 1, 1], [], []>} : vector<8x32xbf16>, vector<32x32xbf16>, vector<8x32xf32> -> vector<8x32xf32>
    %48 = vector.shape_cast %25 : vector<32xf32> to vector<1x32xf32>
    %49 = vector.broadcast %48 : vector<1x32xf32> to vector<8x32xf32>
    %50 = arith.addf %47, %49 : vector<8x32xf32>
    %cst_28 = arith.constant 0.000000e+00 : f32
    %51 = vector.broadcast %cst_28 : f32 to vector<8x32xf32>
    %52 = vector.extract_strided_slice %50 {offsets = [0, 0], sizes = [8, 8], strides = [1, 1]} : vector<8x32xf32> to vector<8x8xf32>
    %53 = arith.truncf %52 : vector<8x8xf32> to vector<8x8xbf16>
    %cst_29 = arith.constant -1.000000e+30 : f32
    %54 = vector.broadcast %cst_29 : f32 to vector<8x1xf32>
    %cst_30 = arith.constant 0.000000e+00 : f32
    %55 = vector.broadcast %cst_30 : f32 to vector<8x1xf32>
    %cst_31 = arith.constant 0.000000e+00 : f32
    %56 = vector.broadcast %cst_31 : f32 to vector<8x8xf32>
    %c0_32 = arith.constant 0 : index
    %c0_33 = arith.constant 0 : index
    %c0_34 = arith.constant 0 : index
    %c0_35 = arith.constant 0 : index
    %57 = vector.load %arg3[%c0_32, %c0_33, %c0_34, %c0_35] : memref<1x4x8x8xbf16, #tpu.memory_space<vmem>>, vector<1x1x8x8xbf16>
    %58 = vector.shape_cast %57 : vector<1x1x8x8xbf16> to vector<8x8xbf16>
    %c0_36 = arith.constant 0 : index
    %c0_37 = arith.constant 0 : index
    %c0_38 = arith.constant 0 : index
    %c0_39 = arith.constant 0 : index
    %59 = vector.load %arg4[%c0_36, %c0_37, %c0_38, %c0_39] : memref<1x4x8x8xbf16, #tpu.memory_space<vmem>>, vector<1x1x8x8xbf16>
    %60 = vector.shape_cast %59 : vector<1x1x8x8xbf16> to vector<8x8xbf16>
    %cst_40 = arith.constant dense<0.000000e+00> : vector<8x8xf32>
    %61 = tpu.matmul %53, %58, %cst_40 {dimension_numbers = #tpu.dot_dimension_numbers<[1], [0], [0], [1], [0, 0, 1, 1], [], []>} : vector<8x8xbf16>, vector<8x8xbf16>, vector<8x8xf32> -> vector<8x8xf32>
    %62 = arith.addf %61, %14 : vector<8x8xf32>
    %cst_41 = arith.constant dense<0xFF800000> : vector<8xf32>
    %63 = vector.multi_reduction <maximumf>, %62, %cst_41 [1] : vector<8x8xf32> to vector<8xf32>
    %64 = vector.shape_cast %63 : vector<8xf32> to vector<8x1xf32>
    %65 = arith.maximumf %54, %64 : vector<8x1xf32>
    %66 = arith.subf %54, %65 : vector<8x1xf32>
    %67 = math.exp %66 : vector<8x1xf32>
    %68 = vector.broadcast %65 : vector<8x1xf32> to vector<8x8xf32>
    %69 = arith.subf %62, %68 : vector<8x8xf32>
    %70 = math.exp %69 : vector<8x8xf32>
    %71 = arith.mulf %67, %55 : vector<8x1xf32>
    %cst_42 = arith.constant dense<0.000000e+00> : vector<8xf32>
    %72 = vector.multi_reduction <add>, %70, %cst_42 [1] : vector<8x8xf32> to vector<8xf32>
    %73 = vector.shape_cast %72 : vector<8xf32> to vector<8x1xf32>
    %74 = arith.addf %71, %73 : vector<8x1xf32>
    %75 = vector.broadcast %67 : vector<8x1xf32> to vector<8x8xf32>
    %76 = arith.mulf %75, %56 : vector<8x8xf32>
    %77 = arith.truncf %70 : vector<8x8xf32> to vector<8x8xbf16>
    %cst_43 = arith.constant dense<0.000000e+00> : vector<8x8xf32>
    %78 = tpu.matmul %77, %60, %cst_43 {dimension_numbers = #tpu.dot_dimension_numbers<[1], [0], [0], [1], [0, 0, 1, 1], [], []>} : vector<8x8xbf16>, vector<8x8xbf16>, vector<8x8xf32> -> vector<8x8xf32>
    %79 = arith.addf %76, %78 : vector<8x8xf32>
    %80 = tpu.reciprocal %74 {approx = true} : vector<8x1xf32> -> vector<8x1xf32>
    %81 = vector.broadcast %80 : vector<8x1xf32> to vector<8x8xf32>
    %82 = arith.mulf %79, %81 : vector<8x8xf32>
    %83 = arith.truncf %82 : vector<8x8xf32> to vector<8x8xbf16>
    %84 = vector.extract_strided_slice %1 {offsets = [0, 0], sizes = [8, 32], strides = [1, 1]} : vector<32x32xbf16> to vector<8x32xbf16>
    %cst_44 = arith.constant dense<0.000000e+00> : vector<8x32xf32>
    %85 = tpu.matmul %83, %84, %cst_44 {dimension_numbers = #tpu.dot_dimension_numbers<[1], [0], [0], [1], [0, 0, 1, 1], [], []>} : vector<8x8xbf16>, vector<8x32xbf16>, vector<8x32xf32> -> vector<8x32xf32>
    %86 = arith.addf %51, %85 : vector<8x32xf32>
    %87 = vector.extract_strided_slice %50 {offsets = [0, 8], sizes = [8, 8], strides = [1, 1]} : vector<8x32xf32> to vector<8x8xf32>
    %88 = arith.truncf %87 : vector<8x8xf32> to vector<8x8xbf16>
    %cst_45 = arith.constant -1.000000e+30 : f32
    %89 = vector.broadcast %cst_45 : f32 to vector<8x1xf32>
    %cst_46 = arith.constant 0.000000e+00 : f32
    %90 = vector.broadcast %cst_46 : f32 to vector<8x1xf32>
    %cst_47 = arith.constant 0.000000e+00 : f32
    %91 = vector.broadcast %cst_47 : f32 to vector<8x8xf32>
    %c0_48 = arith.constant 0 : index
    %c1 = arith.constant 1 : index
    %c0_49 = arith.constant 0 : index
    %c0_50 = arith.constant 0 : index
    %92 = vector.load %arg3[%c0_48, %c1, %c0_49, %c0_50] : memref<1x4x8x8xbf16, #tpu.memory_space<vmem>>, vector<1x1x8x8xbf16>
    %93 = vector.shape_cast %92 : vector<1x1x8x8xbf16> to vector<8x8xbf16>
    %c0_51 = arith.constant 0 : index
    %c1_52 = arith.constant 1 : index
    %c0_53 = arith.constant 0 : index
    %c0_54 = arith.constant 0 : index
    %94 = vector.load %arg4[%c0_51, %c1_52, %c0_53, %c0_54] : memref<1x4x8x8xbf16, #tpu.memory_space<vmem>>, vector<1x1x8x8xbf16>
    %95 = vector.shape_cast %94 : vector<1x1x8x8xbf16> to vector<8x8xbf16>
    %cst_55 = arith.constant dense<0.000000e+00> : vector<8x8xf32>
    %96 = tpu.matmul %88, %93, %cst_55 {dimension_numbers = #tpu.dot_dimension_numbers<[1], [0], [0], [1], [0, 0, 1, 1], [], []>} : vector<8x8xbf16>, vector<8x8xbf16>, vector<8x8xf32> -> vector<8x8xf32>
    %97 = arith.addf %96, %14 : vector<8x8xf32>
    %cst_56 = arith.constant dense<0xFF800000> : vector<8xf32>
    %98 = vector.multi_reduction <maximumf>, %97, %cst_56 [1] : vector<8x8xf32> to vector<8xf32>
    %99 = vector.shape_cast %98 : vector<8xf32> to vector<8x1xf32>
    %100 = arith.maximumf %89, %99 : vector<8x1xf32>
    %101 = arith.subf %89, %100 : vector<8x1xf32>
    %102 = math.exp %101 : vector<8x1xf32>
    %103 = vector.broadcast %100 : vector<8x1xf32> to vector<8x8xf32>
    %104 = arith.subf %97, %103 : vector<8x8xf32>
    %105 = math.exp %104 : vector<8x8xf32>
    %106 = arith.mulf %102, %90 : vector<8x1xf32>
    %cst_57 = arith.constant dense<0.000000e+00> : vector<8xf32>
    %107 = vector.multi_reduction <add>, %105, %cst_57 [1] : vector<8x8xf32> to vector<8xf32>
    %108 = vector.shape_cast %107 : vector<8xf32> to vector<8x1xf32>
    %109 = arith.addf %106, %108 : vector<8x1xf32>
    %110 = vector.broadcast %102 : vector<8x1xf32> to vector<8x8xf32>
    %111 = arith.mulf %110, %91 : vector<8x8xf32>
    %112 = arith.truncf %105 : vector<8x8xf32> to vector<8x8xbf16>
    %cst_58 = arith.constant dense<0.000000e+00> : vector<8x8xf32>
    %113 = tpu.matmul %112, %95, %cst_58 {dimension_numbers = #tpu.dot_dimension_numbers<[1], [0], [0], [1], [0, 0, 1, 1], [], []>} : vector<8x8xbf16>, vector<8x8xbf16>, vector<8x8xf32> -> vector<8x8xf32>
    %114 = arith.addf %111, %113 : vector<8x8xf32>
    %115 = tpu.reciprocal %109 {approx = true} : vector<8x1xf32> -> vector<8x1xf32>
    %116 = vector.broadcast %115 : vector<8x1xf32> to vector<8x8xf32>
    %117 = arith.mulf %114, %116 : vector<8x8xf32>
    %118 = arith.truncf %117 : vector<8x8xf32> to vector<8x8xbf16>
    %119 = vector.extract_strided_slice %1 {offsets = [8, 0], sizes = [8, 32], strides = [1, 1]} : vector<32x32xbf16> to vector<8x32xbf16>
    %cst_59 = arith.constant dense<0.000000e+00> : vector<8x32xf32>
    %120 = tpu.matmul %118, %119, %cst_59 {dimension_numbers = #tpu.dot_dimension_numbers<[1], [0], [0], [1], [0, 0, 1, 1], [], []>} : vector<8x8xbf16>, vector<8x32xbf16>, vector<8x32xf32> -> vector<8x32xf32>
    %121 = arith.addf %86, %120 : vector<8x32xf32>
    %122 = vector.extract_strided_slice %50 {offsets = [0, 16], sizes = [8, 8], strides = [1, 1]} : vector<8x32xf32> to vector<8x8xf32>
    %123 = arith.truncf %122 : vector<8x8xf32> to vector<8x8xbf16>
    %cst_60 = arith.constant -1.000000e+30 : f32
    %124 = vector.broadcast %cst_60 : f32 to vector<8x1xf32>
    %cst_61 = arith.constant 0.000000e+00 : f32
    %125 = vector.broadcast %cst_61 : f32 to vector<8x1xf32>
    %cst_62 = arith.constant 0.000000e+00 : f32
    %126 = vector.broadcast %cst_62 : f32 to vector<8x8xf32>
    %c0_63 = arith.constant 0 : index
    %c2 = arith.constant 2 : index
    %c0_64 = arith.constant 0 : index
    %c0_65 = arith.constant 0 : index
    %127 = vector.load %arg3[%c0_63, %c2, %c0_64, %c0_65] : memref<1x4x8x8xbf16, #tpu.memory_space<vmem>>, vector<1x1x8x8xbf16>
    %128 = vector.shape_cast %127 : vector<1x1x8x8xbf16> to vector<8x8xbf16>
    %c0_66 = arith.constant 0 : index
    %c2_67 = arith.constant 2 : index
    %c0_68 = arith.constant 0 : index
    %c0_69 = arith.constant 0 : index
    %129 = vector.load %arg4[%c0_66, %c2_67, %c0_68, %c0_69] : memref<1x4x8x8xbf16, #tpu.memory_space<vmem>>, vector<1x1x8x8xbf16>
    %130 = vector.shape_cast %129 : vector<1x1x8x8xbf16> to vector<8x8xbf16>
    %cst_70 = arith.constant dense<0.000000e+00> : vector<8x8xf32>
    %131 = tpu.matmul %123, %128, %cst_70 {dimension_numbers = #tpu.dot_dimension_numbers<[1], [0], [0], [1], [0, 0, 1, 1], [], []>} : vector<8x8xbf16>, vector<8x8xbf16>, vector<8x8xf32> -> vector<8x8xf32>
    %132 = arith.addf %131, %14 : vector<8x8xf32>
    %cst_71 = arith.constant dense<0xFF800000> : vector<8xf32>
    %133 = vector.multi_reduction <maximumf>, %132, %cst_71 [1] : vector<8x8xf32> to vector<8xf32>
    %134 = vector.shape_cast %133 : vector<8xf32> to vector<8x1xf32>
    %135 = arith.maximumf %124, %134 : vector<8x1xf32>
    %136 = arith.subf %124, %135 : vector<8x1xf32>
    %137 = math.exp %136 : vector<8x1xf32>
    %138 = vector.broadcast %135 : vector<8x1xf32> to vector<8x8xf32>
    %139 = arith.subf %132, %138 : vector<8x8xf32>
    %140 = math.exp %139 : vector<8x8xf32>
    %141 = arith.mulf %137, %125 : vector<8x1xf32>
    %cst_72 = arith.constant dense<0.000000e+00> : vector<8xf32>
    %142 = vector.multi_reduction <add>, %140, %cst_72 [1] : vector<8x8xf32> to vector<8xf32>
    %143 = vector.shape_cast %142 : vector<8xf32> to vector<8x1xf32>
    %144 = arith.addf %141, %143 : vector<8x1xf32>
    %145 = vector.broadcast %137 : vector<8x1xf32> to vector<8x8xf32>
    %146 = arith.mulf %145, %126 : vector<8x8xf32>
    %147 = arith.truncf %140 : vector<8x8xf32> to vector<8x8xbf16>
    %cst_73 = arith.constant dense<0.000000e+00> : vector<8x8xf32>
    %148 = tpu.matmul %147, %130, %cst_73 {dimension_numbers = #tpu.dot_dimension_numbers<[1], [0], [0], [1], [0, 0, 1, 1], [], []>} : vector<8x8xbf16>, vector<8x8xbf16>, vector<8x8xf32> -> vector<8x8xf32>
    %149 = arith.addf %146, %148 : vector<8x8xf32>
    %150 = tpu.reciprocal %144 {approx = true} : vector<8x1xf32> -> vector<8x1xf32>
    %151 = vector.broadcast %150 : vector<8x1xf32> to vector<8x8xf32>
    %152 = arith.mulf %149, %151 : vector<8x8xf32>
    %153 = arith.truncf %152 : vector<8x8xf32> to vector<8x8xbf16>
    %154 = vector.extract_strided_slice %1 {offsets = [16, 0], sizes = [8, 32], strides = [1, 1]} : vector<32x32xbf16> to vector<8x32xbf16>
    %cst_74 = arith.constant dense<0.000000e+00> : vector<8x32xf32>
    %155 = tpu.matmul %153, %154, %cst_74 {dimension_numbers = #tpu.dot_dimension_numbers<[1], [0], [0], [1], [0, 0, 1, 1], [], []>} : vector<8x8xbf16>, vector<8x32xbf16>, vector<8x32xf32> -> vector<8x32xf32>
    %156 = arith.addf %121, %155 : vector<8x32xf32>
    %157 = vector.extract_strided_slice %50 {offsets = [0, 24], sizes = [8, 8], strides = [1, 1]} : vector<8x32xf32> to vector<8x8xf32>
    %158 = arith.truncf %157 : vector<8x8xf32> to vector<8x8xbf16>
    %cst_75 = arith.constant -1.000000e+30 : f32
    %159 = vector.broadcast %cst_75 : f32 to vector<8x1xf32>
    %cst_76 = arith.constant 0.000000e+00 : f32
    %160 = vector.broadcast %cst_76 : f32 to vector<8x1xf32>
    %cst_77 = arith.constant 0.000000e+00 : f32
    %161 = vector.broadcast %cst_77 : f32 to vector<8x8xf32>
    %c0_78 = arith.constant 0 : index
    %c3 = arith.constant 3 : index
    %c0_79 = arith.constant 0 : index
    %c0_80 = arith.constant 0 : index
    %162 = vector.load %arg3[%c0_78, %c3, %c0_79, %c0_80] : memref<1x4x8x8xbf16, #tpu.memory_space<vmem>>, vector<1x1x8x8xbf16>
    %163 = vector.shape_cast %162 : vector<1x1x8x8xbf16> to vector<8x8xbf16>
    %c0_81 = arith.constant 0 : index
    %c3_82 = arith.constant 3 : index
    %c0_83 = arith.constant 0 : index
    %c0_84 = arith.constant 0 : index
    %164 = vector.load %arg4[%c0_81, %c3_82, %c0_83, %c0_84] : memref<1x4x8x8xbf16, #tpu.memory_space<vmem>>, vector<1x1x8x8xbf16>
    %165 = vector.shape_cast %164 : vector<1x1x8x8xbf16> to vector<8x8xbf16>
    %cst_85 = arith.constant dense<0.000000e+00> : vector<8x8xf32>
    %166 = tpu.matmul %158, %163, %cst_85 {dimension_numbers = #tpu.dot_dimension_numbers<[1], [0], [0], [1], [0, 0, 1, 1], [], []>} : vector<8x8xbf16>, vector<8x8xbf16>, vector<8x8xf32> -> vector<8x8xf32>
    %167 = arith.addf %166, %14 : vector<8x8xf32>
    %cst_86 = arith.constant dense<0xFF800000> : vector<8xf32>
    %168 = vector.multi_reduction <maximumf>, %167, %cst_86 [1] : vector<8x8xf32> to vector<8xf32>
    %169 = vector.shape_cast %168 : vector<8xf32> to vector<8x1xf32>
    %170 = arith.maximumf %159, %169 : vector<8x1xf32>
    %171 = arith.subf %159, %170 : vector<8x1xf32>
    %172 = math.exp %171 : vector<8x1xf32>
    %173 = vector.broadcast %170 : vector<8x1xf32> to vector<8x8xf32>
    %174 = arith.subf %167, %173 : vector<8x8xf32>
    %175 = math.exp %174 : vector<8x8xf32>
    %176 = arith.mulf %172, %160 : vector<8x1xf32>
    %cst_87 = arith.constant dense<0.000000e+00> : vector<8xf32>
    %177 = vector.multi_reduction <add>, %175, %cst_87 [1] : vector<8x8xf32> to vector<8xf32>
    %178 = vector.shape_cast %177 : vector<8xf32> to vector<8x1xf32>
    %179 = arith.addf %176, %178 : vector<8x1xf32>
    %180 = vector.broadcast %172 : vector<8x1xf32> to vector<8x8xf32>
    %181 = arith.mulf %180, %161 : vector<8x8xf32>
    %182 = arith.truncf %175 : vector<8x8xf32> to vector<8x8xbf16>
    %cst_88 = arith.constant dense<0.000000e+00> : vector<8x8xf32>
    %183 = tpu.matmul %182, %165, %cst_88 {dimension_numbers = #tpu.dot_dimension_numbers<[1], [0], [0], [1], [0, 0, 1, 1], [], []>} : vector<8x8xbf16>, vector<8x8xbf16>, vector<8x8xf32> -> vector<8x8xf32>
    %184 = arith.addf %181, %183 : vector<8x8xf32>
    %185 = tpu.reciprocal %179 {approx = true} : vector<8x1xf32> -> vector<8x1xf32>
    %186 = vector.broadcast %185 : vector<8x1xf32> to vector<8x8xf32>
    %187 = arith.mulf %184, %186 : vector<8x8xf32>
    %188 = arith.truncf %187 : vector<8x8xf32> to vector<8x8xbf16>
    %189 = vector.extract_strided_slice %1 {offsets = [24, 0], sizes = [8, 32], strides = [1, 1]} : vector<32x32xbf16> to vector<8x32xbf16>
    %cst_89 = arith.constant dense<0.000000e+00> : vector<8x32xf32>
    %190 = tpu.matmul %188, %189, %cst_89 {dimension_numbers = #tpu.dot_dimension_numbers<[1], [0], [0], [1], [0, 0, 1, 1], [], []>} : vector<8x8xbf16>, vector<8x32xbf16>, vector<8x32xf32> -> vector<8x32xf32>
    %191 = arith.addf %156, %190 : vector<8x32xf32>
    %192 = vector.shape_cast %27 : vector<32xf32> to vector<1x32xf32>
    %193 = vector.broadcast %192 : vector<1x32xf32> to vector<8x32xf32>
    %194 = arith.addf %191, %193 : vector<8x32xf32>
    %195 = arith.addf %23, %194 : vector<8x32xf32>
    %cst_90 = arith.constant dense<0.000000e+00> : vector<8xf32>
    %196 = vector.multi_reduction <add>, %195, %cst_90 [1] : vector<8x32xf32> to vector<8xf32>
    %197 = vector.shape_cast %196 : vector<8xf32> to vector<8x1xf32>
    %cst_91 = arith.constant 3.200000e+01 : f32
    %198 = vector.broadcast %cst_91 : f32 to vector<8x1xf32>
    %199 = arith.divf %197, %198 : vector<8x1xf32>
    %200 = vector.broadcast %199 : vector<8x1xf32> to vector<8x32xf32>
    %201 = arith.subf %195, %200 : vector<8x32xf32>
    %202 = arith.mulf %201, %201 : vector<8x32xf32>
    %cst_92 = arith.constant dense<0.000000e+00> : vector<8xf32>
    %203 = vector.multi_reduction <add>, %202, %cst_92 [1] : vector<8x32xf32> to vector<8xf32>
    %204 = vector.shape_cast %203 : vector<8xf32> to vector<8x1xf32>
    %cst_93 = arith.constant 3.100000e+01 : f32
    %205 = vector.broadcast %cst_93 : f32 to vector<8x1xf32>
    %206 = arith.divf %204, %205 : vector<8x1xf32>
    %207 = math.sqrt %206 : vector<8x1xf32>
    %208 = vector.broadcast %199 : vector<8x1xf32> to vector<8x32xf32>
    %209 = arith.subf %195, %208 : vector<8x32xf32>
    %210 = vector.shape_cast %35 : vector<32xf32> to vector<1x32xf32>
    %211 = vector.broadcast %210 : vector<1x32xf32> to vector<8x32xf32>
    %212 = arith.mulf %211, %209 : vector<8x32xf32>
    %cst_94 = arith.constant 9.99999997E-7 : f32
    %213 = vector.broadcast %cst_94 : f32 to vector<8x1xf32>
    %214 = arith.addf %207, %213 : vector<8x1xf32>
    %215 = vector.broadcast %214 : vector<8x1xf32> to vector<8x32xf32>
    %216 = arith.divf %212, %215 : vector<8x32xf32>
    %217 = vector.shape_cast %37 : vector<32xf32> to vector<1x32xf32>
    %218 = vector.broadcast %217 : vector<1x32xf32> to vector<8x32xf32>
    %219 = arith.addf %216, %218 : vector<8x32xf32>
    %220 = arith.truncf %219 : vector<8x32xf32> to vector<8x32xbf16>
    %cst_95 = arith.constant dense<0.000000e+00> : vector<8x32xf32>
    %221 = tpu.matmul %220, %2, %cst_95 {dimension_numbers = #tpu.dot_dimension_numbers<[1], [0], [0], [1], [0, 0, 1, 1], [], []>} : vector<8x32xbf16>, vector<32x32xbf16>, vector<8x32xf32> -> vector<8x32xf32>
    %222 = vector.shape_cast %29 : vector<32xf32> to vector<1x32xf32>
    %223 = vector.broadcast %222 : vector<1x32xf32> to vector<8x32xf32>
    %224 = arith.addf %221, %223 : vector<8x32xf32>
    %cst_96 = arith.constant 0.000000e+00 : f32
    %225 = vector.broadcast %cst_96 : f32 to vector<8x32xf32>
    %226 = vector.extract_strided_slice %224 {offsets = [0, 0], sizes = [8, 8], strides = [1, 1]} : vector<8x32xf32> to vector<8x8xf32>
    %227 = arith.truncf %226 : vector<8x8xf32> to vector<8x8xbf16>
    %cst_97 = arith.constant -1.000000e+30 : f32
    %228 = vector.broadcast %cst_97 : f32 to vector<8x1xf32>
    %cst_98 = arith.constant 0.000000e+00 : f32
    %229 = vector.broadcast %cst_98 : f32 to vector<8x1xf32>
    %cst_99 = arith.constant 0.000000e+00 : f32
    %230 = vector.broadcast %cst_99 : f32 to vector<8x8xf32>
    %c0_100 = arith.constant 0 : index
    %c0_101 = arith.constant 0 : index
    %c0_102 = arith.constant 0 : index
    %c0_103 = arith.constant 0 : index
    %231 = vector.load %arg5[%c0_100, %c0_101, %c0_102, %c0_103] : memref<1x4x8x8xbf16, #tpu.memory_space<vmem>>, vector<1x1x8x8xbf16>
    %232 = vector.shape_cast %231 : vector<1x1x8x8xbf16> to vector<8x8xbf16>
    %c0_104 = arith.constant 0 : index
    %c0_105 = arith.constant 0 : index
    %c0_106 = arith.constant 0 : index
    %c0_107 = arith.constant 0 : index
    %233 = vector.load %arg6[%c0_104, %c0_105, %c0_106, %c0_107] : memref<1x4x8x8xbf16, #tpu.memory_space<vmem>>, vector<1x1x8x8xbf16>
    %234 = vector.shape_cast %233 : vector<1x1x8x8xbf16> to vector<8x8xbf16>
    %cst_108 = arith.constant dense<0.000000e+00> : vector<8x8xf32>
    %235 = tpu.matmul %227, %232, %cst_108 {dimension_numbers = #tpu.dot_dimension_numbers<[1], [0], [0], [1], [0, 0, 1, 1], [], []>} : vector<8x8xbf16>, vector<8x8xbf16>, vector<8x8xf32> -> vector<8x8xf32>
    %236 = arith.addf %235, %21 : vector<8x8xf32>
    %cst_109 = arith.constant dense<0xFF800000> : vector<8xf32>
    %237 = vector.multi_reduction <maximumf>, %236, %cst_109 [1] : vector<8x8xf32> to vector<8xf32>
    %238 = vector.shape_cast %237 : vector<8xf32> to vector<8x1xf32>
    %239 = arith.maximumf %228, %238 : vector<8x1xf32>
    %240 = arith.subf %228, %239 : vector<8x1xf32>
    %241 = math.exp %240 : vector<8x1xf32>
    %242 = vector.broadcast %239 : vector<8x1xf32> to vector<8x8xf32>
    %243 = arith.subf %236, %242 : vector<8x8xf32>
    %244 = math.exp %243 : vector<8x8xf32>
    %245 = arith.mulf %241, %229 : vector<8x1xf32>
    %cst_110 = arith.constant dense<0.000000e+00> : vector<8xf32>
    %246 = vector.multi_reduction <add>, %244, %cst_110 [1] : vector<8x8xf32> to vector<8xf32>
    %247 = vector.shape_cast %246 : vector<8xf32> to vector<8x1xf32>
    %248 = arith.addf %245, %247 : vector<8x1xf32>
    %249 = vector.broadcast %241 : vector<8x1xf32> to vector<8x8xf32>
    %250 = arith.mulf %249, %230 : vector<8x8xf32>
    %251 = arith.truncf %244 : vector<8x8xf32> to vector<8x8xbf16>
    %cst_111 = arith.constant dense<0.000000e+00> : vector<8x8xf32>
    %252 = tpu.matmul %251, %234, %cst_111 {dimension_numbers = #tpu.dot_dimension_numbers<[1], [0], [0], [1], [0, 0, 1, 1], [], []>} : vector<8x8xbf16>, vector<8x8xbf16>, vector<8x8xf32> -> vector<8x8xf32>
    %253 = arith.addf %250, %252 : vector<8x8xf32>
    %254 = tpu.reciprocal %248 {approx = true} : vector<8x1xf32> -> vector<8x1xf32>
    %255 = vector.broadcast %254 : vector<8x1xf32> to vector<8x8xf32>
    %256 = arith.mulf %253, %255 : vector<8x8xf32>
    %257 = arith.truncf %256 : vector<8x8xf32> to vector<8x8xbf16>
    %258 = vector.extract_strided_slice %3 {offsets = [0, 0], sizes = [8, 32], strides = [1, 1]} : vector<32x32xbf16> to vector<8x32xbf16>
    %cst_112 = arith.constant dense<0.000000e+00> : vector<8x32xf32>
    %259 = tpu.matmul %257, %258, %cst_112 {dimension_numbers = #tpu.dot_dimension_numbers<[1], [0], [0], [1], [0, 0, 1, 1], [], []>} : vector<8x8xbf16>, vector<8x32xbf16>, vector<8x32xf32> -> vector<8x32xf32>
    %260 = arith.addf %225, %259 : vector<8x32xf32>
    %261 = vector.extract_strided_slice %224 {offsets = [0, 8], sizes = [8, 8], strides = [1, 1]} : vector<8x32xf32> to vector<8x8xf32>
    %262 = arith.truncf %261 : vector<8x8xf32> to vector<8x8xbf16>
    %cst_113 = arith.constant -1.000000e+30 : f32
    %263 = vector.broadcast %cst_113 : f32 to vector<8x1xf32>
    %cst_114 = arith.constant 0.000000e+00 : f32
    %264 = vector.broadcast %cst_114 : f32 to vector<8x1xf32>
    %cst_115 = arith.constant 0.000000e+00 : f32
    %265 = vector.broadcast %cst_115 : f32 to vector<8x8xf32>
    %c0_116 = arith.constant 0 : index
    %c1_117 = arith.constant 1 : index
    %c0_118 = arith.constant 0 : index
    %c0_119 = arith.constant 0 : index
    %266 = vector.load %arg5[%c0_116, %c1_117, %c0_118, %c0_119] : memref<1x4x8x8xbf16, #tpu.memory_space<vmem>>, vector<1x1x8x8xbf16>
    %267 = vector.shape_cast %266 : vector<1x1x8x8xbf16> to vector<8x8xbf16>
    %c0_120 = arith.constant 0 : index
    %c1_121 = arith.constant 1 : index
    %c0_122 = arith.constant 0 : index
    %c0_123 = arith.constant 0 : index
    %268 = vector.load %arg6[%c0_120, %c1_121, %c0_122, %c0_123] : memref<1x4x8x8xbf16, #tpu.memory_space<vmem>>, vector<1x1x8x8xbf16>
    %269 = vector.shape_cast %268 : vector<1x1x8x8xbf16> to vector<8x8xbf16>
    %cst_124 = arith.constant dense<0.000000e+00> : vector<8x8xf32>
    %270 = tpu.matmul %262, %267, %cst_124 {dimension_numbers = #tpu.dot_dimension_numbers<[1], [0], [0], [1], [0, 0, 1, 1], [], []>} : vector<8x8xbf16>, vector<8x8xbf16>, vector<8x8xf32> -> vector<8x8xf32>
    %271 = arith.addf %270, %21 : vector<8x8xf32>
    %cst_125 = arith.constant dense<0xFF800000> : vector<8xf32>
    %272 = vector.multi_reduction <maximumf>, %271, %cst_125 [1] : vector<8x8xf32> to vector<8xf32>
    %273 = vector.shape_cast %272 : vector<8xf32> to vector<8x1xf32>
    %274 = arith.maximumf %263, %273 : vector<8x1xf32>
    %275 = arith.subf %263, %274 : vector<8x1xf32>
    %276 = math.exp %275 : vector<8x1xf32>
    %277 = vector.broadcast %274 : vector<8x1xf32> to vector<8x8xf32>
    %278 = arith.subf %271, %277 : vector<8x8xf32>
    %279 = math.exp %278 : vector<8x8xf32>
    %280 = arith.mulf %276, %264 : vector<8x1xf32>
    %cst_126 = arith.constant dense<0.000000e+00> : vector<8xf32>
    %281 = vector.multi_reduction <add>, %279, %cst_126 [1] : vector<8x8xf32> to vector<8xf32>
    %282 = vector.shape_cast %281 : vector<8xf32> to vector<8x1xf32>
    %283 = arith.addf %280, %282 : vector<8x1xf32>
    %284 = vector.broadcast %276 : vector<8x1xf32> to vector<8x8xf32>
    %285 = arith.mulf %284, %265 : vector<8x8xf32>
    %286 = arith.truncf %279 : vector<8x8xf32> to vector<8x8xbf16>
    %cst_127 = arith.constant dense<0.000000e+00> : vector<8x8xf32>
    %287 = tpu.matmul %286, %269, %cst_127 {dimension_numbers = #tpu.dot_dimension_numbers<[1], [0], [0], [1], [0, 0, 1, 1], [], []>} : vector<8x8xbf16>, vector<8x8xbf16>, vector<8x8xf32> -> vector<8x8xf32>
    %288 = arith.addf %285, %287 : vector<8x8xf32>
    %289 = tpu.reciprocal %283 {approx = true} : vector<8x1xf32> -> vector<8x1xf32>
    %290 = vector.broadcast %289 : vector<8x1xf32> to vector<8x8xf32>
    %291 = arith.mulf %288, %290 : vector<8x8xf32>
    %292 = arith.truncf %291 : vector<8x8xf32> to vector<8x8xbf16>
    %293 = vector.extract_strided_slice %3 {offsets = [8, 0], sizes = [8, 32], strides = [1, 1]} : vector<32x32xbf16> to vector<8x32xbf16>
    %cst_128 = arith.constant dense<0.000000e+00> : vector<8x32xf32>
    %294 = tpu.matmul %292, %293, %cst_128 {dimension_numbers = #tpu.dot_dimension_numbers<[1], [0], [0], [1], [0, 0, 1, 1], [], []>} : vector<8x8xbf16>, vector<8x32xbf16>, vector<8x32xf32> -> vector<8x32xf32>
    %295 = arith.addf %260, %294 : vector<8x32xf32>
    %296 = vector.extract_strided_slice %224 {offsets = [0, 16], sizes = [8, 8], strides = [1, 1]} : vector<8x32xf32> to vector<8x8xf32>
    %297 = arith.truncf %296 : vector<8x8xf32> to vector<8x8xbf16>
    %cst_129 = arith.constant -1.000000e+30 : f32
    %298 = vector.broadcast %cst_129 : f32 to vector<8x1xf32>
    %cst_130 = arith.constant 0.000000e+00 : f32
    %299 = vector.broadcast %cst_130 : f32 to vector<8x1xf32>
    %cst_131 = arith.constant 0.000000e+00 : f32
    %300 = vector.broadcast %cst_131 : f32 to vector<8x8xf32>
    %c0_132 = arith.constant 0 : index
    %c2_133 = arith.constant 2 : index
    %c0_134 = arith.constant 0 : index
    %c0_135 = arith.constant 0 : index
    %301 = vector.load %arg5[%c0_132, %c2_133, %c0_134, %c0_135] : memref<1x4x8x8xbf16, #tpu.memory_space<vmem>>, vector<1x1x8x8xbf16>
    %302 = vector.shape_cast %301 : vector<1x1x8x8xbf16> to vector<8x8xbf16>
    %c0_136 = arith.constant 0 : index
    %c2_137 = arith.constant 2 : index
    %c0_138 = arith.constant 0 : index
    %c0_139 = arith.constant 0 : index
    %303 = vector.load %arg6[%c0_136, %c2_137, %c0_138, %c0_139] : memref<1x4x8x8xbf16, #tpu.memory_space<vmem>>, vector<1x1x8x8xbf16>
    %304 = vector.shape_cast %303 : vector<1x1x8x8xbf16> to vector<8x8xbf16>
    %cst_140 = arith.constant dense<0.000000e+00> : vector<8x8xf32>
    %305 = tpu.matmul %297, %302, %cst_140 {dimension_numbers = #tpu.dot_dimension_numbers<[1], [0], [0], [1], [0, 0, 1, 1], [], []>} : vector<8x8xbf16>, vector<8x8xbf16>, vector<8x8xf32> -> vector<8x8xf32>
    %306 = arith.addf %305, %21 : vector<8x8xf32>
    %cst_141 = arith.constant dense<0xFF800000> : vector<8xf32>
    %307 = vector.multi_reduction <maximumf>, %306, %cst_141 [1] : vector<8x8xf32> to vector<8xf32>
    %308 = vector.shape_cast %307 : vector<8xf32> to vector<8x1xf32>
    %309 = arith.maximumf %298, %308 : vector<8x1xf32>
    %310 = arith.subf %298, %309 : vector<8x1xf32>
    %311 = math.exp %310 : vector<8x1xf32>
    %312 = vector.broadcast %309 : vector<8x1xf32> to vector<8x8xf32>
    %313 = arith.subf %306, %312 : vector<8x8xf32>
    %314 = math.exp %313 : vector<8x8xf32>
    %315 = arith.mulf %311, %299 : vector<8x1xf32>
    %cst_142 = arith.constant dense<0.000000e+00> : vector<8xf32>
    %316 = vector.multi_reduction <add>, %314, %cst_142 [1] : vector<8x8xf32> to vector<8xf32>
    %317 = vector.shape_cast %316 : vector<8xf32> to vector<8x1xf32>
    %318 = arith.addf %315, %317 : vector<8x1xf32>
    %319 = vector.broadcast %311 : vector<8x1xf32> to vector<8x8xf32>
    %320 = arith.mulf %319, %300 : vector<8x8xf32>
    %321 = arith.truncf %314 : vector<8x8xf32> to vector<8x8xbf16>
    %cst_143 = arith.constant dense<0.000000e+00> : vector<8x8xf32>
    %322 = tpu.matmul %321, %304, %cst_143 {dimension_numbers = #tpu.dot_dimension_numbers<[1], [0], [0], [1], [0, 0, 1, 1], [], []>} : vector<8x8xbf16>, vector<8x8xbf16>, vector<8x8xf32> -> vector<8x8xf32>
    %323 = arith.addf %320, %322 : vector<8x8xf32>
    %324 = tpu.reciprocal %318 {approx = true} : vector<8x1xf32> -> vector<8x1xf32>
    %325 = vector.broadcast %324 : vector<8x1xf32> to vector<8x8xf32>
    %326 = arith.mulf %323, %325 : vector<8x8xf32>
    %327 = arith.truncf %326 : vector<8x8xf32> to vector<8x8xbf16>
    %328 = vector.extract_strided_slice %3 {offsets = [16, 0], sizes = [8, 32], strides = [1, 1]} : vector<32x32xbf16> to vector<8x32xbf16>
    %cst_144 = arith.constant dense<0.000000e+00> : vector<8x32xf32>
    %329 = tpu.matmul %327, %328, %cst_144 {dimension_numbers = #tpu.dot_dimension_numbers<[1], [0], [0], [1], [0, 0, 1, 1], [], []>} : vector<8x8xbf16>, vector<8x32xbf16>, vector<8x32xf32> -> vector<8x32xf32>
    %330 = arith.addf %295, %329 : vector<8x32xf32>
    %331 = vector.extract_strided_slice %224 {offsets = [0, 24], sizes = [8, 8], strides = [1, 1]} : vector<8x32xf32> to vector<8x8xf32>
    %332 = arith.truncf %331 : vector<8x8xf32> to vector<8x8xbf16>
    %cst_145 = arith.constant -1.000000e+30 : f32
    %333 = vector.broadcast %cst_145 : f32 to vector<8x1xf32>
    %cst_146 = arith.constant 0.000000e+00 : f32
    %334 = vector.broadcast %cst_146 : f32 to vector<8x1xf32>
    %cst_147 = arith.constant 0.000000e+00 : f32
    %335 = vector.broadcast %cst_147 : f32 to vector<8x8xf32>
    %c0_148 = arith.constant 0 : index
    %c3_149 = arith.constant 3 : index
    %c0_150 = arith.constant 0 : index
    %c0_151 = arith.constant 0 : index
    %336 = vector.load %arg5[%c0_148, %c3_149, %c0_150, %c0_151] : memref<1x4x8x8xbf16, #tpu.memory_space<vmem>>, vector<1x1x8x8xbf16>
    %337 = vector.shape_cast %336 : vector<1x1x8x8xbf16> to vector<8x8xbf16>
    %c0_152 = arith.constant 0 : index
    %c3_153 = arith.constant 3 : index
    %c0_154 = arith.constant 0 : index
    %c0_155 = arith.constant 0 : index
    %338 = vector.load %arg6[%c0_152, %c3_153, %c0_154, %c0_155] : memref<1x4x8x8xbf16, #tpu.memory_space<vmem>>, vector<1x1x8x8xbf16>
    %339 = vector.shape_cast %338 : vector<1x1x8x8xbf16> to vector<8x8xbf16>
    %cst_156 = arith.constant dense<0.000000e+00> : vector<8x8xf32>
    %340 = tpu.matmul %332, %337, %cst_156 {dimension_numbers = #tpu.dot_dimension_numbers<[1], [0], [0], [1], [0, 0, 1, 1], [], []>} : vector<8x8xbf16>, vector<8x8xbf16>, vector<8x8xf32> -> vector<8x8xf32>
    %341 = arith.addf %340, %21 : vector<8x8xf32>
    %cst_157 = arith.constant dense<0xFF800000> : vector<8xf32>
    %342 = vector.multi_reduction <maximumf>, %341, %cst_157 [1] : vector<8x8xf32> to vector<8xf32>
    %343 = vector.shape_cast %342 : vector<8xf32> to vector<8x1xf32>
    %344 = arith.maximumf %333, %343 : vector<8x1xf32>
    %345 = arith.subf %333, %344 : vector<8x1xf32>
    %346 = math.exp %345 : vector<8x1xf32>
    %347 = vector.broadcast %344 : vector<8x1xf32> to vector<8x8xf32>
    %348 = arith.subf %341, %347 : vector<8x8xf32>
    %349 = math.exp %348 : vector<8x8xf32>
    %350 = arith.mulf %346, %334 : vector<8x1xf32>
    %cst_158 = arith.constant dense<0.000000e+00> : vector<8xf32>
    %351 = vector.multi_reduction <add>, %349, %cst_158 [1] : vector<8x8xf32> to vector<8xf32>
    %352 = vector.shape_cast %351 : vector<8xf32> to vector<8x1xf32>
    %353 = arith.addf %350, %352 : vector<8x1xf32>
    %354 = vector.broadcast %346 : vector<8x1xf32> to vector<8x8xf32>
    %355 = arith.mulf %354, %335 : vector<8x8xf32>
    %356 = arith.truncf %349 : vector<8x8xf32> to vector<8x8xbf16>
    %cst_159 = arith.constant dense<0.000000e+00> : vector<8x8xf32>
    %357 = tpu.matmul %356, %339, %cst_159 {dimension_numbers = #tpu.dot_dimension_numbers<[1], [0], [0], [1], [0, 0, 1, 1], [], []>} : vector<8x8xbf16>, vector<8x8xbf16>, vector<8x8xf32> -> vector<8x8xf32>
    %358 = arith.addf %355, %357 : vector<8x8xf32>
    %359 = tpu.reciprocal %353 {approx = true} : vector<8x1xf32> -> vector<8x1xf32>
    %360 = vector.broadcast %359 : vector<8x1xf32> to vector<8x8xf32>
    %361 = arith.mulf %358, %360 : vector<8x8xf32>
    %362 = arith.truncf %361 : vector<8x8xf32> to vector<8x8xbf16>
    %363 = vector.extract_strided_slice %3 {offsets = [24, 0], sizes = [8, 32], strides = [1, 1]} : vector<32x32xbf16> to vector<8x32xbf16>
    %cst_160 = arith.constant dense<0.000000e+00> : vector<8x32xf32>
    %364 = tpu.matmul %362, %363, %cst_160 {dimension_numbers = #tpu.dot_dimension_numbers<[1], [0], [0], [1], [0, 0, 1, 1], [], []>} : vector<8x8xbf16>, vector<8x32xbf16>, vector<8x32xf32> -> vector<8x32xf32>
    %365 = arith.addf %330, %364 : vector<8x32xf32>
    %366 = vector.shape_cast %31 : vector<32xf32> to vector<1x32xf32>
    %367 = vector.broadcast %366 : vector<1x32xf32> to vector<8x32xf32>
    %368 = arith.addf %365, %367 : vector<8x32xf32>
    %369 = arith.addf %219, %368 : vector<8x32xf32>
    %cst_161 = arith.constant dense<0.000000e+00> : vector<8xf32>
    %370 = vector.multi_reduction <add>, %369, %cst_161 [1] : vector<8x32xf32> to vector<8xf32>
    %371 = vector.shape_cast %370 : vector<8xf32> to vector<8x1xf32>
    %cst_162 = arith.constant 3.200000e+01 : f32
    %372 = vector.broadcast %cst_162 : f32 to vector<8x1xf32>
    %373 = arith.divf %371, %372 : vector<8x1xf32>
    %374 = vector.broadcast %373 : vector<8x1xf32> to vector<8x32xf32>
    %375 = arith.subf %369, %374 : vector<8x32xf32>
    %376 = arith.mulf %375, %375 : vector<8x32xf32>
    %cst_163 = arith.constant dense<0.000000e+00> : vector<8xf32>
    %377 = vector.multi_reduction <add>, %376, %cst_163 [1] : vector<8x32xf32> to vector<8xf32>
    %378 = vector.shape_cast %377 : vector<8xf32> to vector<8x1xf32>
    %cst_164 = arith.constant 3.100000e+01 : f32
    %379 = vector.broadcast %cst_164 : f32 to vector<8x1xf32>
    %380 = arith.divf %378, %379 : vector<8x1xf32>
    %381 = math.sqrt %380 : vector<8x1xf32>
    %382 = vector.broadcast %373 : vector<8x1xf32> to vector<8x32xf32>
    %383 = arith.subf %369, %382 : vector<8x32xf32>
    %384 = vector.shape_cast %39 : vector<32xf32> to vector<1x32xf32>
    %385 = vector.broadcast %384 : vector<1x32xf32> to vector<8x32xf32>
    %386 = arith.mulf %385, %383 : vector<8x32xf32>
    %cst_165 = arith.constant 9.99999997E-7 : f32
    %387 = vector.broadcast %cst_165 : f32 to vector<8x1xf32>
    %388 = arith.addf %381, %387 : vector<8x1xf32>
    %389 = vector.broadcast %388 : vector<8x1xf32> to vector<8x32xf32>
    %390 = arith.divf %386, %389 : vector<8x32xf32>
    %391 = vector.shape_cast %41 : vector<32xf32> to vector<1x32xf32>
    %392 = vector.broadcast %391 : vector<1x32xf32> to vector<8x32xf32>
    %393 = arith.addf %390, %392 : vector<8x32xf32>
    %394 = arith.truncf %393 : vector<8x32xf32> to vector<8x32xbf16>
    %cst_166 = arith.constant dense<0.000000e+00> : vector<8x64xf32>
    %395 = tpu.matmul %394, %4, %cst_166 {dimension_numbers = #tpu.dot_dimension_numbers<[1], [0], [0], [1], [0, 0, 1, 1], [], []>} : vector<8x32xbf16>, vector<32x64xbf16>, vector<8x64xf32> -> vector<8x64xf32>
    %396 = vector.broadcast %5 : vector<1x64xf32> to vector<8x64xf32>
    %397 = arith.addf %395, %396 : vector<8x64xf32>
    %cst_167 = arith.constant 0.000000e+00 : f32
    %398 = vector.broadcast %cst_167 : f32 to vector<8x64xf32>
    %399 = arith.maximumf %397, %398 : vector<8x64xf32>
    %400 = arith.truncf %399 : vector<8x64xf32> to vector<8x64xbf16>
    %cst_168 = arith.constant dense<0.000000e+00> : vector<8x32xf32>
    %401 = tpu.matmul %400, %6, %cst_168 {dimension_numbers = #tpu.dot_dimension_numbers<[1], [0], [0], [1], [0, 0, 1, 1], [], []>} : vector<8x64xbf16>, vector<64x32xbf16>, vector<8x32xf32> -> vector<8x32xf32>
    %402 = vector.shape_cast %33 : vector<32xf32> to vector<1x32xf32>
    %403 = vector.broadcast %402 : vector<1x32xf32> to vector<8x32xf32>
    %404 = arith.addf %401, %403 : vector<8x32xf32>
    %405 = arith.addf %393, %404 : vector<8x32xf32>
    %cst_169 = arith.constant dense<0.000000e+00> : vector<8xf32>
    %406 = vector.multi_reduction <add>, %405, %cst_169 [1] : vector<8x32xf32> to vector<8xf32>
    %407 = vector.shape_cast %406 : vector<8xf32> to vector<8x1xf32>
    %cst_170 = arith.constant 3.200000e+01 : f32
    %408 = vector.broadcast %cst_170 : f32 to vector<8x1xf32>
    %409 = arith.divf %407, %408 : vector<8x1xf32>
    %410 = vector.broadcast %409 : vector<8x1xf32> to vector<8x32xf32>
    %411 = arith.subf %405, %410 : vector<8x32xf32>
    %412 = arith.mulf %411, %411 : vector<8x32xf32>
    %cst_171 = arith.constant dense<0.000000e+00> : vector<8xf32>
    %413 = vector.multi_reduction <add>, %412, %cst_171 [1] : vector<8x32xf32> to vector<8xf32>
    %414 = vector.shape_cast %413 : vector<8xf32> to vector<8x1xf32>
    %cst_172 = arith.constant 3.100000e+01 : f32
    %415 = vector.broadcast %cst_172 : f32 to vector<8x1xf32>
    %416 = arith.divf %414, %415 : vector<8x1xf32>
    %417 = math.sqrt %416 : vector<8x1xf32>
    %418 = vector.broadcast %409 : vector<8x1xf32> to vector<8x32xf32>
    %419 = arith.subf %405, %418 : vector<8x32xf32>
    %420 = vector.shape_cast %43 : vector<32xf32> to vector<1x32xf32>
    %421 = vector.broadcast %420 : vector<1x32xf32> to vector<8x32xf32>
    %422 = arith.mulf %421, %419 : vector<8x32xf32>
    %cst_173 = arith.constant 9.99999997E-7 : f32
    %423 = vector.broadcast %cst_173 : f32 to vector<8x1xf32>
    %424 = arith.addf %417, %423 : vector<8x1xf32>
    %425 = vector.broadcast %424 : vector<8x1xf32> to vector<8x32xf32>
    %426 = arith.divf %422, %425 : vector<8x32xf32>
    %427 = vector.shape_cast %45 : vector<32xf32> to vector<1x32xf32>
    %428 = vector.broadcast %427 : vector<1x32xf32> to vector<8x32xf32>
    %429 = arith.addf %426, %428 : vector<8x32xf32>
    %c0_174 = arith.constant 0 : index
    %c0_175 = arith.constant 0 : index
    %c0_176 = arith.constant 0 : index
    %430 = vector.load %arg17[%c0_174, %c0_175, %c0_176] : memref<1x8x32xf32, #tpu.memory_space<vmem>>, vector<1x8x32xf32>
    %431 = vector.shape_cast %430 : vector<1x8x32xf32> to vector<8x32xf32>
    %432 = vector.shape_cast %429 : vector<8x32xf32> to vector<1x8x32xf32>
    tpu.vector_store %arg17[%c0_174, %c0_175, %c0_176], %432 {strides = array<i32>} : memref<1x8x32xf32, #tpu.memory_space<vmem>>, vector<1x8x32xf32>,
    return
  }
  func.func @transform_0(%arg0: i32, %arg1: i32) -> (i32, i32, i32) {
    %c0_i32 = arith.constant 0 : i32
    %c0_i32_0 = arith.constant 0 : i32
    return %arg0, %arg1, %c0_i32 : i32, i32, i32
  }
  func.func @transform_1(%arg0: i32, %arg1: i32) -> (i32, i32, i32, i32) {
    %c0_i32 = arith.constant 0 : i32
    %c0_i32_0 = arith.constant 0 : i32
    %c0_i32_1 = arith.constant 0 : i32
    %c0_i32_2 = arith.constant 0 : i32
    return %arg0, %c0_i32, %c0_i32_0, %c0_i32_1 : i32, i32, i32, i32
  }
  func.func @transform_2(%arg0: i32, %arg1: i32) -> (i32, i32, i32, i32) {
    %c0_i32 = arith.constant 0 : i32
    %c0_i32_0 = arith.constant 0 : i32
    %c0_i32_1 = arith.constant 0 : i32
    %c0_i32_2 = arith.constant 0 : i32
    return %arg0, %c0_i32, %c0_i32_0, %c0_i32_1 : i32, i32, i32, i32
  }
  func.func @transform_3(%arg0: i32, %arg1: i32) -> (i32, i32, i32, i32) {
    %c0_i32 = arith.constant 0 : i32
    %c0_i32_0 = arith.constant 0 : i32
    %c0_i32_1 = arith.constant 0 : i32
    %c0_i32_2 = arith.constant 0 : i32
    return %arg0, %c0_i32, %c0_i32_0, %c0_i32_1 : i32, i32, i32, i32
  }
  func.func @transform_4(%arg0: i32, %arg1: i32) -> (i32, i32, i32, i32) {
    %c0_i32 = arith.constant 0 : i32
    %c0_i32_0 = arith.constant 0 : i32
    %c0_i32_1 = arith.constant 0 : i32
    %c0_i32_2 = arith.constant 0 : i32
    return %arg0, %c0_i32, %c0_i32_0, %c0_i32_1 : i32, i32, i32, i32
  }
  func.func @transform_5(%arg0: i32, %arg1: i32) -> (i32, i32, i32) {
    %c0_i32 = arith.constant 0 : i32
    %c0_i32_0 = arith.constant 0 : i32
    return %arg0, %arg1, %c0_i32 : i32, i32, i32
  }
  func.func @transform_6(%arg0: i32, %arg1: i32) -> (i32, i32, i32) {
    %c0_i32 = arith.constant 0 : i32
    %c0_i32_0 = arith.constant 0 : i32
    return %arg0, %arg1, %c0_i32 : i32, i32, i32
  }
  func.func @transform_7(%arg0: i32, %arg1: i32) -> (i32, i32) {
    %c0_i32 = arith.constant 0 : i32
    %c0_i32_0 = arith.constant 0 : i32
    %c0_i32_1 = arith.constant 0 : i32
    return %c0_i32, %c0_i32_0 : i32, i32
  }
  func.func @transform_8(%arg0: i32, %arg1: i32) -> (i32, i32) {
    %c0_i32 = arith.constant 0 : i32
    %c0_i32_0 = arith.constant 0 : i32
    %c0_i32_1 = arith.constant 0 : i32
    return %c0_i32, %c0_i32_0 : i32, i32
  }
  func.func @transform_9(%arg0: i32, %arg1: i32) -> (i32, i32) {
    %c0_i32 = arith.constant 0 : i32
    %c0_i32_0 = arith.constant 0 : i32
    %c0_i32_1 = arith.constant 0 : i32
    return %c0_i32, %c0_i32_0 : i32, i32
  }
  func.func @transform_10(%arg0: i32, %arg1: i32) -> (i32, i32) {
    %c0_i32 = arith.constant 0 : i32
    %c0_i32_0 = arith.constant 0 : i32
    %c0_i32_1 = arith.constant 0 : i32
    return %c0_i32, %c0_i32_0 : i32, i32
  }
  func.func @transform_11(%arg0: i32, %arg1: i32) -> (i32, i32) {
    %c0_i32 = arith.constant 0 : i32
    %c0_i32_0 = arith.constant 0 : i32
    %c0_i32_1 = arith.constant 0 : i32
    return %c0_i32, %c0_i32_0 : i32, i32
  }
  func.func @transform_12(%arg0: i32, %arg1: i32) -> (i32, i32) {
    %c0_i32 = arith.constant 0 : i32
    %c0_i32_0 = arith.constant 0 : i32
    %c0_i32_1 = arith.constant 0 : i32
    return %c0_i32, %c0_i32_0 : i32, i32
  }
  func.func @transform_13(%arg0: i32, %arg1: i32) -> (i32, i32) {
    %c0_i32 = arith.constant 0 : i32
    %c0_i32_0 = arith.constant 0 : i32
    %c0_i32_1 = arith.constant 0 : i32
    return %c0_i32, %c0_i32_0 : i32, i32
  }
  func.func @transform_14(%arg0: i32, %arg1: i32) -> (i32, i32) {
    %c0_i32 = arith.constant 0 : i32
    %c0_i32_0 = arith.constant 0 : i32
    %c0_i32_1 = arith.constant 0 : i32
    return %c0_i32, %c0_i32_0 : i32, i32
  }
  func.func @transform_15(%arg0: i32, %arg1: i32) -> (i32, i32, i32) {
    %c0_i32 = arith.constant 0 : i32
    %c0_i32_0 = arith.constant 0 : i32
    return %arg0, %arg1, %c0_i32 : i32, i32, i32
  }
}

</mosaic_0001>

<bundles_post_ra>
// kernel: tpu_custom_call.1
= control target key start
LH: loop header
LB: loop body
LE: loop exit
PB: predicated region body
PF: predicated region fallthrough
CT: control target
= control target key end

     0   :  { %s5055_s0 = inlined_call_operand.hbm [shape: f32[2,8,32], index: 0, kind: input, shape index: {}]   ;;  %s5056_s1 = inlined_call_operand.hbm [shape: bf16[2,4,8,8], index: 1, kind: input, shape index: {}]   ;;  %s5057_s2 = inlined_call_operand.hbm [shape: bf16[2,4,8,8], index: 2, kind: input, shape index: {}]   ;;  %s5058_s3 = inlined_call_operand.hbm [shape: bf16[2,4,8,8], index: 3, kind: input, shape index: {}]   ;;  %s5059_s4 = inlined_call_operand.hbm [shape: bf16[2,4,8,8], index: 4, kind: input, shape index: {}]   ;;  %s5060_s5 = inlined_call_operand.hbm [shape: s8[2,8,8], index: 5, kind: input, shape index: {}]   ;;  %s5061_s6 = inlined_call_operand.hbm [shape: s8[2,8,8], index: 6, kind: input, shape index: {}]   ;;  %s5062_s7 = inlined_call_operand.hbm [shape: bf16[32,32], index: 7, kind: input, shape index: {}]   ;;  %s5063_s8 = inlined_call_operand.hbm [shape: bf16[32,32], index: 8, kind: input, shape index: {}]   ;;  %s5064_s9 = inlined_call_operand.hbm [shape: bf16[32,32], index: 9, kind: input, shape index: {}]   ;;  %s5065_s10 = inlined_call_operand.hbm [shape: bf16[32,32], index: 10, kind: input, shape index: {}]   ;;  %s5066_s11 = inlined_call_operand.hbm [shape: bf16[32,64], index: 11, kind: input, shape index: {}]   ;;  %s5067_s12 = inlined_call_operand.hbm [shape: f32[1,64], index: 12, kind: input, shape index: {}]   ;;  %s5068_s13 = inlined_call_operand.hbm [shape: bf16[64,32], index: 13, kind: input, shape index: {}]   ;;  %s5069_s14 = inlined_call_operand.hbm [shape: f32[11,32], index: 14, kind: input, shape index: {}]   ;;  %s5070_s15 = inlined_call_operand.hbm [shape: f32[2,8,32], index: 15, kind: output, shape index: {}]  }
   0x1   :  { %5111 = sst [smem:[#allocation46_spill]] %s5055_s0 }
   0x2   :  { %5112 = sst [smem:[#allocation47_spill]] %s5056_s1 }
   0x3   :  { %5113 = sst [smem:[#allocation48_spill]] %s5057_s2 }
   0x4   :  { %5114 = sst [smem:[#allocation49_spill]] %s5058_s3 }
   0x5   :  { %5115 = sst [smem:[#allocation50_spill]] %s5059_s4 }
   0x6   :  { %5116 = sst [smem:[#allocation51_spill]] %s5060_s5 }
   0x7   :  { %5117 = sst [smem:[#allocation52_spill]] %s5062_s7 }
   0x8   :  { %5118 = sst [smem:[#allocation53_spill]] %s5063_s8 }
   0x9   :  { %5119 = sst [smem:[#allocation54_spill]] %s5064_s9 }
   0xa   :  { %5120 = sst [smem:[#allocation55_spill]] %s5065_s10 }
   0xb   :  { %5121 = sst [smem:[#allocation56_spill]] %s5066_s11 }
   0xc   :  { %5122 = sst [smem:[#allocation57_spill]] %s5067_s12 }
   0xd   :  { %5123 = sst [smem:[#allocation58_spill]] %s5068_s13 }
   0xe   :  { %5124 = sst [smem:[#allocation59_spill]] %s5069_s14 }
   0xf   :  { %5125 = sst [smem:[#allocation60_spill]] %s5070_s15 }
  0x10   :  { %20 = vsyncpa [#allocation3], 0 }
  0x11   :  { %22 = vsyncpa [#allocation3 + $0x1], 0 }
  0x12   :  { %23 = vsyncpa [#allocation6], 0 }
  0x13   :  { %25 = vsyncpa [#allocation6 + $0x1], 0 }
  0x14   :  { %26 = vsyncpa [#allocation9], 0 }
  0x15   :  { %28 = vsyncpa [#allocation9 + $0x1], 0 }
  0x16   :  { %29 = vsyncpa [#allocation12], 0 }
  0x17   :  { %31 = vsyncpa [#allocation12 + $0x1], 0 }
  0x18   :  { %32 = vsyncpa [#allocation15], 0 }
  0x19   :  { %33 = vsyncpa [#allocation18], 0 }
  0x1a   :  { %34 = vsyncpa [#allocation21], 0 }
  0x1b   :  { %35 = vsyncpa [#allocation24], 0 }
  0x1c   :  { %36 = vsyncpa [#allocation4], 0 }
  0x1d   :  { %38 = vsyncpa [#allocation4 + $0x1], 0  ;;  %s4148_s18 = smov 0   ;;  %s4150_s19 = smov 0  }
  0x1e   :  { %s4152_s20 = smov 0   ;;  %s4154_s21 = smov 0  }
  0x1f   :  { %s4156_s22 = smov 0   ;;  %s4158_s23 = smov 0  }
  0x20 LB: > { %5126 = sst [smem:[#allocation36_spill]] %s4021_s18  ;;  %s4179_s24 = sadd.s32 4294967295, %s4041_s23   ;;  %s4041_s23 = sphi %s4158_s23, %s44_s23   ;;  %s4037_s22 = sphi %s4156_s22, %s5201_s22   ;;  %s4033_s21 = sphi %s4154_s21, %s5200_s21   ;;  %s4029_s20 = sphi %s4152_s20, %s5196_s20   ;;  %s4025_s19 = sphi %s4150_s19, %s5199_s19   ;;  %s4021_s18 = sphi %s4148_s18, %s5198_s18  }
  0x21   : > { %5127 = sst [smem:[#allocation37_spill]] %s4029_s20  ;;  %p2896_p0 = scmp.ge.s32.totalorder %s4041_s23, 1 }
  0x22   : > { %5128 = sst [smem:[#allocation38_spill]] %s4033_s21  ;;  %p5079_p1 = scmp.eq.s32.totalorder %s4179_s24, 0 }
  0x23   : > { %5129 = sst [smem:[#allocation39_spill]] %s4041_s23  ;;  %p445_p2 = scmp.lt.s32.totalorder %s4041_s23, 3 }
  0x24   : > { %5130 = sst [smem:[#allocation40_spill]] %s4179_s24  ;;  %s4043_s26 = smov [#allocation14]  }
  0x25   : > { %p4184_p3 = pnand %p2896_p0, %p445_p2  ;;  %s457_s27 = sshll.u32 %s4043_s26, 4  ;;  %s4188_s27 = int_to_ptr.vmem [resolvable:$true] %s457_s27 }
  0x26   : > { %s4044_s29 = smov [#allocation17]   ;;  %s4045_s16 = smov [#allocation20]  }
  0x27   : > { %s5131_s25 = scalar_select %p4184_p3, 1, 0 }
  0x28   : > { %p3292_p4 = pneg %p4184_p3  ;;  %s483_s30 = sshll.u32 %s4044_s29, 4  ;;  %s4199_s30 = int_to_ptr.vmem [resolvable:$true] %s483_s30 }
  0x29   : > { %5132 = sst [smem:[#allocation41_spill]] %s5131_s25  ;;  %s4201_s17 = sshll.u32 %s4045_s16, 4  ;;  %s510_s17 = int_to_ptr.vmem [resolvable:$true] %s4201_s17 }
  0x2a   : > { %p4195_p6 = pnand %p3292_p4, %p5079_p1  ;;  %s5134_s7 = sld [smem:[#allocation52_spill]] }
  0x2c   : > { %s5133_s28 = scalar_select %p4195_p6, 1, 0 }
  0x2d   : > { %p4211_p8 = pneg %p4195_p6 }
  0x2f   : > { %s5135_s2 = scalar_select %p4211_p8, 1, 0 }
  0x30   : > { %s3497_s21 = scalar_lea.hbm %s5134_s7, 256 }
  0x31   : > { %p3498_p7 = scmp.ne.s32.totalorder %s5134_s7, %s3497_s21  ;;  %p3504_p11 = scmp.lt.u32.totalorder %s3497_s21, %s5134_s7 }
  0x33   : > { %p3500_p9 = pnand %p4211_p8, %p3498_p7 }
  0x35   : > { %p3501_p10 = pneg %p3500_p9 }
  0x37   : > { %p3506_p12 = pnand %p3504_p11, %p3501_p10 }
  0x39   : > { %3509 = shalt.err (!%p3506_p12)
}
  0x3a   : > { %s3510_s4 = scalar_lea.vmem %s4188_s27, 256  ;;  %p3518_p4 = scmp.lt.s32.totalorder %s4188_s27, %s4188_s27 }
  0x3b   : > { %p3511_p13 = scmp.ne.s32.totalorder %s4188_s27, %s3510_s4  ;;  %p3519_p5 = scmp.lt.s32.totalorder %s3510_s4, %s3510_s4 }
  0x3d   : > { %p3513_p0 = pnand %p3511_p13, %p4211_p8  ;;  %p3520_p7 = por %p3519_p5, %p3518_p4 }
  0x3f   : > { %p3514_p2 = pneg %p3513_p0 }
  0x41   : > { %p3521_p9 = pnand %p3520_p7, %p3514_p2 }
  0x43   : > { %3524 = shalt.err (!%p3521_p9)
}
  0x44   : > { %s5081_s15 = smov 64   ;;  %s5083_s21 = smov 4  }
  0x45   : > { %3295 = dma.hbm_to_vmem [thread:$0]  (!%p4195_p6), %s5134_s7, 256, %s4188_s27, [#allocation15], %s5081_s15, %s5081_s15, %s5083_s21  }
  0x46   : > { %s5136_s9 = sld [smem:[#allocation54_spill]] }
  0x4c   : > { %s3525_s4 = scalar_lea.hbm %s5136_s9, 256 }
  0x4d   : > { %p3526_p5 = scmp.ne.s32.totalorder %s5136_s9, %s3525_s4  ;;  %p3532_p12 = scmp.lt.u32.totalorder %s3525_s4, %s5136_s9 }
  0x4f   : > { %p3528_p10 = pnand %p3526_p5, %p4211_p8 }
  0x51   : > { %p3529_p11 = pneg %p3528_p10 }
  0x53   : > { %p3534_p13 = pnand %p3532_p12, %p3529_p11 }
  0x55   : > { %3537 = shalt.err (!%p3534_p13)
}
  0x56   : > { %s3538_s27 = scalar_lea.vmem %s4199_s30, 256  ;;  %p3546_p7 = scmp.lt.s32.totalorder %s4199_s30, %s4199_s30 }
  0x57   : > { %p3539_p0 = scmp.ne.s32.totalorder %s4199_s30, %s3538_s27  ;;  %p3547_p9 = scmp.lt.s32.totalorder %s3538_s27, %s3538_s27 }
  0x59   : > { %p3541_p2 = pnand %p3539_p0, %p4211_p8  ;;  %p3548_p5 = por %p3547_p9, %p3546_p7 }
  0x5b   : > { %p3542_p4 = pneg %p3541_p2 }
  0x5d   : > { %p3549_p10 = pnand %p3548_p5, %p3542_p4 }
  0x5f   : > { %3552 = shalt.err (!%p3549_p10)
}
  0x60   : > { %3301 = dma.hbm_to_vmem [thread:$0]  (!%p4195_p6), %s5136_s9, 256, %s4199_s30, [#allocation18], %s5081_s15, %s5081_s15, %s5083_s21  }
  0x61   : > { %s5137_s11 = sld [smem:[#allocation56_spill]] }
  0x67   : > { %s3553_s25 = scalar_lea.hbm %s5137_s11, 256 }
  0x68   : > { %p3554_p11 = scmp.ne.s32.totalorder %s5137_s11, %s3553_s25  ;;  %p3560_p0 = scmp.lt.u32.totalorder %s3553_s25, %s5137_s11 }
  0x6a   : > { %p3556_p12 = pnand %p3554_p11, %p4211_p8 }
  0x6c   : > { %p3557_p13 = pneg %p3556_p12 }
  0x6e   : > { %p3562_p2 = pnand %p3560_p0, %p3557_p13 }
  0x70   : > { %3565 = shalt.err (!%p3562_p2)
}
  0x71   : > { %s3566_s27 = scalar_lea.vmem %s510_s17, 256  ;;  %p3574_p5 = scmp.lt.s32.totalorder %s510_s17, %s510_s17 }
  0x72   : > { %p3567_p4 = scmp.ne.s32.totalorder %s510_s17, %s3566_s27  ;;  %p3575_p10 = scmp.lt.s32.totalorder %s3566_s27, %s3566_s27 }
  0x74   : > { %p3569_p7 = pnand %p3567_p4, %p4211_p8  ;;  %p3576_p1 = por %p3575_p10, %p3574_p5 }
  0x76   : > { %p3570_p9 = pneg %p3569_p7 }
  0x78   : > { %p3577_p3 = pnand %p3576_p1, %p3570_p9 }
  0x7a   : > { %3580 = shalt.err (!%p3577_p3)
}
  0x7b   : > { %3307 = dma.hbm_to_vmem [thread:$0]  (!%p4195_p6), %s5137_s11, 256, %s510_s17, [#allocation21], %s5081_s15, %s5081_s15, %s5083_s21  }
  0x7c   : > { %s4048_s10 = smov [#allocation23]   ;;  %s5138_s13 = sld [smem:[#allocation58_spill]] }
  0x7d   : > { %s533_s12 = sshll.u32 %s4048_s10, 4  ;;  %s534_s12 = int_to_ptr.vmem [resolvable:$true] %s533_s12 }
  0x82   : > { %s3581_s26 = scalar_lea.hbm %s5138_s13, 512 }
  0x83   : > { %p3582_p1 = scmp.ne.s32.totalorder %s5138_s13, %s3581_s26  ;;  %p3588_p12 = scmp.lt.u32.totalorder %s3581_s26, %s5138_s13 }
  0x85   : > { %p3584_p3 = pnand %p3582_p1, %p4211_p8 }
  0x87   : > { %p3585_p11 = pneg %p3584_p3 }
  0x89   : > { %p3590_p13 = pnand %p3588_p12, %p3585_p11 }
  0x8b   : > { %3593 = shalt.err (!%p3590_p13)
}
  0x8c   : > { %s3594_s17 = scalar_lea.vmem %s534_s12, 512  ;;  %p3602_p7 = scmp.lt.s32.totalorder %s534_s12, %s534_s12 }
  0x8d   : > { %p3595_p0 = scmp.ne.s32.totalorder %s534_s12, %s3594_s17  ;;  %p3603_p9 = scmp.lt.s32.totalorder %s3594_s17, %s3594_s17 }
  0x8f   : > { %p3597_p2 = pnand %p3595_p0, %p4211_p8  ;;  %p3604_p5 = por %p3603_p9, %p3602_p7 }
  0x91   : > { %p3598_p4 = pneg %p3597_p2 }
  0x93   : > { %p3605_p10 = pnand %p3604_p5, %p3598_p4 }
  0x95   : > { %3608 = shalt.err (!%p3605_p10)
}
  0x96   : > { %3313 = dma.hbm_to_vmem [thread:$0]  (!%p4195_p6), %s5138_s13, 512, %s534_s12, [#allocation24], %s5081_s15, %s5081_s15, %s5083_s21  }
  0x97   : > { %s2895_s10 = sadd.s32 4294967294, %s4041_s23   ;;  %s56_s14 = sadd.s32 1, %s4037_s22 }
  0x98   : > { %p58_p1 = scmp.ge.s32.totalorder %s56_s14, 2  ;;  %s65_s25 = sadd.s32 1, %s4029_s20 }
  0x99   : > { %p72_p3 = scmp.ne.s32.totalorder %s4029_s20, %s4025_s19  ;;  %p73_p11 = scmp.eq.s32.totalorder %s4041_s23, 0 }
  0x9a   : > { %s5203_s14 = smov (%p58_p1, %s56_s14), 0  ;;  %p78_p13 = scmp.ne.s32.totalorder %s4025_s19, %s4021_s18 }
  0x9b   : > { %5139 = sst [smem:[#allocation42_spill]] %s5203_s14  ;;  %p4312_p12 = por %p73_p11, %p72_p3 }
  0x9c   : > { %s60_s12 = ssub.s32 %s4037_s22, %s5203_s14  ;;  %p432_p0 = scmp.eq.s32.totalorder %s4179_s24, 1 }
  0x9d   : > { %p63_p2 = scmp.eq.s32.totalorder %s60_s12, 0  ;;  %p5141_p4 = scmp.eq.s32.totalorder %s4179_s24, 0 }
  0x9e   : > { %p4327_p9 = por %p432_p0, %p72_p3  ;;  %p438_p5 = scmp.eq.s32.totalorder %s2895_s10, 1 }
  0x9f   : > { %p4323_p7 = por %p5141_p4, %p78_p13  ;;  %p3351_p1 = scmp.lt.s32.totalorder %s4041_s23, 2 }
  0xa0   : > { %s5143_s16 = scalar_select %p4327_p9, 1, 0 }
  0xa1   : > { %s5142_s29 = scalar_select %p4323_p7, 1, 0 }
  0xa2   : > { %5144 = sst [smem:[#allocation43_spill]] %s5143_s16  ;;  %p4334_p10 = por %p438_p5, %p78_p13 }
  0xa3   : > { %s4332_s4 = scalar_select %p63_p2, %s4029_s20, %s65_s25  }
  0xa4   : > { %s5146_s27 = scalar_select %p4334_p10, 1, 0 }
  0xa5   : > { %5145 = sst [smem:[#allocation44_spill]] %s4332_s4  ;;  %s4340_s17 = sand.u32 1, %s4029_s20  }
  0xa6   : > { %5147 = sst [smem:[#allocation45_spill]] %s5146_s27  ;;  %s4343_s30 = sand.u32 1, %s4041_s23  }
  0xa7   : > { %p4347_p11 = pnand %p3351_p1, %p4312_p12  ;;  %s4352_s10 = sshll.u32 %s4340_s17, 4 }
  0xa8   : > { %s4355_s25 = sshll.u32 %s4037_s22, 8  ;;  %s5149_s1 = sld [smem:[#allocation47_spill]] }
  0xa9   : > { %s5148_s0 = scalar_select %p4347_p11, 1, 0 }
  0xaa   : > { %s583_s26 = scalar_lea.vmem [#allocation5], %s4352_s10  ;;  %p4371_p12 = pneg %p4347_p11 }
  0xab   : > { %s590_s7 = sshll.u32 %s583_s26, 4  ;;  %s4364_s7 = int_to_ptr.vmem [resolvable:$true] %s590_s7 }
  0xac   : > { %s5150_s13 = scalar_select %p4371_p12, 1, 0 }
  0xae   : > { %s4361_s21 = scalar_lea.hbm %s5149_s1, %s4355_s25  ;;  %s3614_s14 = scalar_lea.hbm %s5149_s1, 512 }
  0xaf   : > { %s3609_s11 = scalar_lea.hbm %s4361_s21, 256  ;;  %p3615_p2 = scmp.lt.u32.totalorder %s4361_s21, %s5149_s1 }
  0xb0   : > { %p3610_p3 = scmp.ne.s32.totalorder %s4361_s21, %s3609_s11  ;;  %p3616_p4 = scmp.lt.u32.totalorder %s3614_s14, %s3609_s11 }
  0xb1   : > { %p3618_p1 = scmp.lt.u32.totalorder %s3609_s11, %s4361_s21 }
  0xb2   : > { %p3612_p13 = pnand %p4371_p12, %p3610_p3  ;;  %p3617_p5 = por %p3616_p4, %p3615_p2 }
  0xb4   : > { %p3613_p0 = pneg %p3612_p13  ;;  %p3619_p10 = por %p3618_p1, %p3617_p5 }
  0xb6   : > { %p3620_p9 = pnand %p3619_p10, %p3613_p0 }
  0xb8   : > { %3623 = shalt.err (!%p3620_p9)
}
  0xb9   : > { %s3624_s9 = scalar_lea.vmem %s4364_s7, 256  ;;  %s4049_s15 = smov [#allocation5]  }
  0xba   : > { %p3625_p3 = scmp.ne.s32.totalorder %s4364_s7, %s3624_s9  ;;  %s3629_s12 = sshll.u32 %s4049_s15, 4  ;;  %s3630_s12 = int_to_ptr.vmem [resolvable:$false] %s3629_s12 }
  0xbb   : > { %s3631_s4 = scalar_lea.vmem %s3630_s12, 512  ;;  %p3632_p6 = scmp.lt.s32.totalorder %s4364_s7, %s3630_s12 }
  0xbc   : > { %p3627_p13 = pnand %p3625_p3, %p4371_p12  ;;  %p3633_p8 = scmp.lt.s32.totalorder %s3631_s4, %s3624_s9 }
  0xbe   : > { %p3628_p7 = pneg %p3627_p13  ;;  %p3634_p2 = por %p3633_p8, %p3632_p6 }
  0xc0   : > { %p3635_p4 = pnand %p3634_p2, %p3628_p7 }
  0xc2   : > { %3638 = shalt.err (!%p3635_p4)
}
  0xc3   : > { %s5151_s11 = smov 4   ;;  %s5152_s14 = smov 64  }
  0xc4   : > { %s5153_s26 = scalar_lea.sflag [#allocation6], %s4343_s30  ;;  %s5154_s3 = sld [smem:[#allocation49_spill]] }
  0xc5   : > { %3323 = dma.hbm_to_vmem [thread:$0]  (!%p4347_p11), %s4361_s21, 256, %s4364_s7, %s5153_s26, %s5152_s14, %s5152_s14, %s5151_s11  }
  0xc6   : > { %s625_s4 = scalar_lea.vmem [#allocation8], %s4352_s10  ;;  %s5097_s20 = sshll.u32 %s4340_s17, 1 }
  0xc7   : > { %s632_s1 = sshll.u32 %s625_s4, 4  ;;  %s5096_s23 = scalar_lea.sflag [#allocation9], %s4343_s30  ;;  %s4406_s1 = int_to_ptr.vmem [resolvable:$true] %s632_s1 }
  0xca   : > { %s4403_s12 = scalar_lea.hbm %s5154_s3, %s4355_s25  ;;  %s3644_s26 = scalar_lea.hbm %s5154_s3, 512 }
  0xcb   : > { %s3639_s27 = scalar_lea.hbm %s4403_s12, 256  ;;  %p3645_p9 = scmp.lt.u32.totalorder %s4403_s12, %s5154_s3 }
  0xcc   : > { %p3640_p6 = scmp.ne.s32.totalorder %s4403_s12, %s3639_s27  ;;  %p3646_p10 = scmp.lt.u32.totalorder %s3644_s26, %s3639_s27 }
  0xcd   : > { %p3648_p5 = scmp.lt.u32.totalorder %s3639_s27, %s4403_s12 }
  0xce   : > { %p3642_p8 = pnand %p3640_p6, %p4371_p12  ;;  %p3647_p0 = por %p3646_p10, %p3645_p9 }
  0xd0   : > { %p3643_p7 = pneg %p3642_p8  ;;  %p3649_p1 = por %p3648_p5, %p3647_p0 }
  0xd2   : > { %p3650_p3 = pnand %p3649_p1, %p3643_p7 }
  0xd4   : > { %3653 = shalt.err (!%p3650_p3)
}
  0xd5   : > { %s3654_s4 = scalar_lea.vmem %s4406_s1, 256  ;;  %s4050_s7 = smov [#allocation8]  }
  0xd6   : > { %p3655_p13 = scmp.ne.s32.totalorder %s4406_s1, %s3654_s4  ;;  %s3659_s21 = sshll.u32 %s4050_s7, 4  ;;  %s3660_s21 = int_to_ptr.vmem [resolvable:$false] %s3659_s21 }
  0xd7   : > { %s3661_s15 = scalar_lea.vmem %s3660_s21, 512  ;;  %p3662_p6 = scmp.lt.s32.totalorder %s4406_s1, %s3660_s21 }
  0xd8   : > { %p3657_p2 = pnand %p3655_p13, %p4371_p12  ;;  %p3663_p8 = scmp.lt.s32.totalorder %s3661_s15, %s3654_s4 }
  0xda   : > { %p3658_p4 = pneg %p3657_p2  ;;  %p3664_p9 = por %p3663_p8, %p3662_p6 }
  0xdc   : > { %p3665_p10 = pnand %p3664_p9, %p3658_p4 }
  0xde   : > { %3668 = shalt.err (!%p3665_p10)
}
  0xdf   : > { %3329 = dma.hbm_to_vmem [thread:$0]  (!%p4347_p11), %s4403_s12, 256, %s4406_s1, %s5096_s23, %s5152_s14, %s5152_s14, %s5151_s11  }
  0xe0   : > { %s5098_s27 = sshll.u32 %s4037_s22, 5  ;;  %s5155_s5 = sld [smem:[#allocation51_spill]] }
  0xe1   : > { %s667_s7 = scalar_lea.vmem [#allocation11], %s5097_s20  ;;  %s5108_s15 = scalar_lea.sflag [#allocation12], %s4343_s30 }
  0xe2   : > { %s675_s21 = sshll.u32 %s667_s7, 4  ;;  %s676_s21 = int_to_ptr.vmem [resolvable:$true] %s675_s21 }
  0xe6   : > { %s4442_s4 = scalar_lea.hbm %s5155_s5, %s5098_s27  ;;  %s3674_s26 = scalar_lea.hbm %s5155_s5, 64 }
  0xe7   : > { %s3669_s3 = scalar_lea.hbm %s4442_s4, 32  ;;  %p3675_p1 = scmp.lt.u32.totalorder %s4442_s4, %s5155_s5 }
  0xe8   : > { %p3670_p7 = scmp.ne.s32.totalorder %s4442_s4, %s3669_s3  ;;  %p3676_p3 = scmp.lt.u32.totalorder %s3674_s26, %s3669_s3 }
  0xe9   : > { %p3678_p2 = scmp.lt.u32.totalorder %s3669_s3, %s4442_s4 }
  0xea   : > { %p3672_p0 = pnand %p3670_p7, %p4371_p12  ;;  %p3677_p13 = por %p3676_p3, %p3675_p1 }
  0xec   : > { %p3673_p5 = pneg %p3672_p0  ;;  %p3679_p4 = por %p3678_p2, %p3677_p13 }
  0xee   : > { %p3680_p6 = pnand %p3679_p4, %p3673_p5 }
  0xf0   : > { %3683 = shalt.err (!%p3680_p6)
}
  0xf1   : > { %s3684_s7 = scalar_lea.vmem %s676_s21, 32  ;;  %s4051_s20 = smov [#allocation11]  }
  0xf2   : > { %p3685_p8 = scmp.ne.s32.totalorder %s676_s21, %s3684_s7  ;;  %s3689_s27 = sshll.u32 %s4051_s20, 4  ;;  %s3690_s27 = int_to_ptr.vmem [resolvable:$false] %s3689_s27 }
  0xf3   : > { %s3691_s1 = scalar_lea.vmem %s3690_s27, 64  ;;  %p3692_p7 = scmp.lt.s32.totalorder %s676_s21, %s3690_s27 }
  0xf4   : > { %p3687_p9 = pnand %p3685_p8, %p4371_p12  ;;  %p3693_p0 = scmp.lt.s32.totalorder %s3691_s1, %s3684_s7 }
  0xf6   : > { %p3688_p10 = pneg %p3687_p9  ;;  %p3694_p11 = por %p3693_p0, %p3692_p7 }
  0xf8   : > { %p3695_p1 = pnand %p3694_p11, %p3688_p10 }
  0xfa   : > { %3698 = shalt.err (!%p3695_p1)
}
  0xfb   : > { %p5156_p3 = scmp.ne.s32.totalorder %s5148_s0, 0  ;;  %s5157_s3 = sshll.u32 %s4037_s22, 5 }
  0xfc   : > { %s4471_s20 = scalar_lea.hbm %s5061_s6, %s5157_s3  ;;  %s4052_s26 = smov [#allocation16]  }
  0xfd   : > { %3335 = dma.hbm_to_vmem [thread:$0]  (!%p5156_p3), %s4442_s4, 32, %s676_s21, %s5108_s15  }
  0xfe   : > { %s470_s27 = sshll.u32 %s4052_s26, 4  ;;  %s4053_s9 = smov [#allocation19]   ;;  %s471_s27 = int_to_ptr.vmem [resolvable:$true] %s470_s27 }
  0xff   : > { %s496_s7 = sshll.u32 %s4053_s9, 4  ;;  %s5158_s8 = sld [smem:[#allocation53_spill]]  ;;  %s497_s7 = int_to_ptr.vmem [resolvable:$true] %s496_s7 }
 0x100   : > { %p5159_p5 = scmp.ne.s32.totalorder %s5135_s2, 0 }
 0x105   : > { %s3699_s18 = scalar_lea.hbm %s5158_s8, 256 }
 0x106   : > { %p3700_p11 = scmp.ne.s32.totalorder %s5158_s8, %s3699_s18  ;;  %p3706_p4 = scmp.lt.u32.totalorder %s3699_s18, %s5158_s8 }
 0x108   : > { %p3702_p13 = pnand %p3700_p11, %p5159_p5 }
 0x10a   : > { %p3703_p2 = pneg %p3702_p13 }
 0x10c   : > { %p3708_p6 = pnand %p3706_p4, %p3703_p2 }
 0x10e   : > { %3711 = shalt.err (!%p3708_p6)
}
 0x10f   : > { %s3712_s3 = scalar_lea.vmem %s471_s27, 256  ;;  %p3720_p7 = scmp.lt.s32.totalorder %s471_s27, %s471_s27 }
 0x110   : > { %p3713_p8 = scmp.ne.s32.totalorder %s471_s27, %s3712_s3  ;;  %p3721_p0 = scmp.lt.s32.totalorder %s3712_s3, %s3712_s3 }
 0x112   : > { %p3715_p9 = pnand %p3713_p8, %p5159_p5  ;;  %p3722_p1 = por %p3721_p0, %p3720_p7 }
 0x114   : > { %p3716_p10 = pneg %p3715_p9 }
 0x116   : > { %p3723_p3 = pnand %p3722_p1, %p3716_p10 }
 0x118   : > { %3726 = shalt.err (!%p3723_p3)
}
 0x119   : > { %p5160_p11 = scmp.ne.s32.totalorder %s5133_s28, 0  ;;  %s5161_s23 = sld [smem:[#allocation55_spill]] }
 0x11b   : > { %3298 = dma.hbm_to_vmem [thread:$0]  (!%p5160_p11), %s5158_s8, 256, %s471_s27, [#allocation15], %s5152_s14, %s5152_s14, %s5151_s11  }
 0x11f   : > { %s5162_s12 = smov %s5161_s23  ;;  %s3727_s26 = scalar_lea.hbm %s5161_s23, 256 }
 0x120   : > { %p3728_p13 = scmp.ne.s32.totalorder %s5162_s12, %s3727_s26  ;;  %p3734_p4 = scmp.lt.u32.totalorder %s3727_s26, %s5162_s12 }
 0x122   : > { %p3730_p3 = pnand %p3728_p13, %p5159_p5 }
 0x124   : > { %p3731_p2 = pneg %p3730_p3 }
 0x126   : > { %p3736_p6 = pnand %p3734_p4, %p3731_p2 }
 0x128   : > { %3739 = shalt.err (!%p3736_p6)
}
 0x129   : > { %s3740_s3 = scalar_lea.vmem %s497_s7, 256  ;;  %p3748_p7 = scmp.lt.s32.totalorder %s497_s7, %s497_s7 }
 0x12a   : > { %p3741_p8 = scmp.ne.s32.totalorder %s497_s7, %s3740_s3  ;;  %p3749_p0 = scmp.lt.s32.totalorder %s3740_s3, %s3740_s3 }
 0x12c   : > { %p3743_p9 = pnand %p3741_p8, %p5159_p5  ;;  %p3750_p1 = por %p3749_p0, %p3748_p7 }
 0x12e   : > { %p3744_p10 = pneg %p3743_p9 }
 0x130   : > { %p3751_p12 = pnand %p3750_p1, %p3744_p10 }
 0x132   : > { %3754 = shalt.err (!%p3751_p12)
}
 0x133   : > { %3304 = dma.hbm_to_vmem [thread:$0]  (!%p5160_p11), %s5162_s12, 256, %s497_s7, [#allocation18], %s5152_s14, %s5152_s14, %s5151_s11  }
 0x134   : > { %s4054_s18 = smov [#allocation22]   ;;  %s4055_s16 = smov [#allocation25]  }
 0x135   : > { %s523_s24 = sshll.u32 %s4054_s18, 4  ;;  %s546_s23 = sshll.u32 %s4055_s16, 4  ;;  %s524_s24 = int_to_ptr.vmem [resolvable:$true] %s523_s24  ;;  %s547_s23 = int_to_ptr.vmem [resolvable:$true] %s546_s23 }
 0x136   : > { %s5163_s1 = sld [smem:[#allocation57_spill]] }
 0x13c   : > { %s3755_s4 = scalar_lea.hbm %s5163_s1, 16 }
 0x13d   : > { %p3756_p12 = scmp.ne.s32.totalorder %s5163_s1, %s3755_s4  ;;  %p3762_p2 = scmp.lt.u32.totalorder %s3755_s4, %s5163_s1 }
 0x13f   : > { %p3758_p13 = pnand %p3756_p12, %p5159_p5 }
 0x141   : > { %p3759_p3 = pneg %p3758_p13 }
 0x143   : > { %p3764_p4 = pnand %p3762_p2, %p3759_p3 }
 0x145   : > { %3767 = shalt.err (!%p3764_p4)
}
 0x146   : > { %s3768_s7 = scalar_lea.vmem %s524_s24, 16  ;;  %s3775_s5 = scalar_lea.vmem %s524_s24, 32 }
 0x147   : > { %p3769_p6 = scmp.ne.s32.totalorder %s524_s24, %s3768_s7  ;;  %p3776_p10 = scmp.lt.s32.totalorder %s524_s24, %s524_s24 }
 0x148   : > { %p3777_p7 = scmp.lt.s32.totalorder %s3775_s5, %s3768_s7 }
 0x149   : > { %p3771_p8 = pnand %p3769_p6, %p5159_p5 }
 0x14a   : > { %p3778_p0 = por %p3777_p7, %p3776_p10 }
 0x14b   : > { %p3772_p9 = pneg %p3771_p8 }
 0x14d   : > { %p3779_p1 = pnand %p3778_p0, %p3772_p9 }
 0x14f   : > { %3782 = shalt.err (!%p3779_p1)
}
 0x150   : > { %3310 = dma.hbm_to_vmem [thread:$0]  (!%p5160_p11), %s5163_s1, 16, %s524_s24, [#allocation21]  }
 0x151   : > { %s5164_s9 = sld [smem:[#allocation59_spill]] }
 0x157   : > { %s3783_s4 = scalar_lea.hbm %s5164_s9, 256 }
 0x158   : > { %p3784_p12 = scmp.ne.s32.totalorder %s5164_s9, %s3783_s4  ;;  %p3790_p2 = scmp.lt.u32.totalorder %s3783_s4, %s5164_s9 }
 0x15a   : > { %p3786_p13 = pnand %p3784_p12, %p5159_p5 }
 0x15c   : > { %p3787_p3 = pneg %p3786_p13 }
 0x15e   : > { %p3792_p4 = pnand %p3790_p2, %p3787_p3 }
 0x160   : > { %3795 = shalt.err (!%p3792_p4)
}
 0x161   : > { %s3796_s5 = scalar_lea.vmem %s547_s23, 256  ;;  %p3804_p10 = scmp.lt.s32.totalorder %s547_s23, %s547_s23 }
 0x162   : > { %p3797_p6 = scmp.ne.s32.totalorder %s547_s23, %s3796_s5  ;;  %p3805_p7 = scmp.lt.s32.totalorder %s3796_s5, %s3796_s5 }
 0x164   : > { %p3799_p8 = pnand %p3797_p6, %p5159_p5  ;;  %p3806_p0 = por %p3805_p7, %p3804_p10 }
 0x166   : > { %p3800_p9 = pneg %p3799_p8 }
 0x168   : > { %p3807_p1 = pnand %p3806_p0, %p3800_p9 }
 0x16a   : > { %3810 = shalt.err (!%p3807_p1)
}
 0x16b   : > { %s4056_s24 = smov 128   ;;  %s4057_s18 = smov 8  }
 0x16c   : > { %3316 = dma.hbm_to_vmem [thread:$0]  (!%p5160_p11), %s5164_s9, 256, %s547_s23, [#allocation24], %s4056_s24, %s4056_s24, %s4057_s18  }
 0x16d   : > { %s2906_s2 = sshll.u32 %s4340_s17, 3  ;;  %s2907_s26 = sshll.u32 %s4037_s22, 7 }
 0x16e   : > { %s5165_s3 = sld [smem:[#allocation46_spill]]  ;;  %s564_s7 = scalar_lea.vmem [#allocation2], %s2906_s2 }
 0x16f   : > { %s572_s5 = sshll.u32 %s564_s7, 4  ;;  %s5166_s8 = sld [smem:[#allocation48_spill]]  ;;  %s4558_s5 = int_to_ptr.vmem [resolvable:$true] %s572_s5 }
 0x170   : > { %s561_s23 = scalar_lea.sflag [#allocation3], %s4340_s17  ;;  %p5167_p11 = scmp.ne.s32.totalorder %s5150_s13, 0 }
 0x174   : > { %s4556_s27 = scalar_lea.hbm %s5165_s3, %s2907_s26  ;;  %s3816_s26 = scalar_lea.hbm %s5165_s3, 256 }
 0x175   : > { %s4564_s16 = scalar_lea.hbm %s5166_s8, %s4355_s25  ;;  %s3811_s24 = scalar_lea.hbm %s4556_s27, 128 }
 0x176   : > { %p3812_p5 = scmp.ne.s32.totalorder %s4556_s27, %s3811_s24  ;;  %p3817_p3 = scmp.lt.u32.totalorder %s4556_s27, %s5165_s3 }
 0x177   : > { %p3818_p2 = scmp.lt.u32.totalorder %s3816_s26, %s3811_s24  ;;  %p3820_p6 = scmp.lt.u32.totalorder %s3811_s24, %s4556_s27 }
 0x178   : > { %p3814_p12 = pnand %p3812_p5, %p5167_p11 }
 0x179   : > { %p3819_p4 = por %p3818_p2, %p3817_p3 }
 0x17a   : > { %p3815_p13 = pneg %p3814_p12 }
 0x17b   : > { %p3821_p8 = por %p3820_p6, %p3819_p4 }
 0x17d   : > { %p3822_p9 = pnand %p3821_p8, %p3815_p13 }
 0x17f   : > { %3825 = shalt.err (!%p3822_p9)
}
 0x180   : > { %s3826_s1 = scalar_lea.vmem %s4558_s5, 128  ;;  %s4058_s21 = smov [#allocation2]  }
 0x181   : > { %p3827_p10 = scmp.ne.s32.totalorder %s4558_s5, %s3826_s1  ;;  %s3831_s7 = sshll.u32 %s4058_s21, 4  ;;  %s3832_s7 = int_to_ptr.vmem [resolvable:$false] %s3831_s7 }
 0x182   : > { %s3833_s28 = scalar_lea.vmem %s3832_s7, 256  ;;  %p3834_p1 = scmp.lt.s32.totalorder %s4558_s5, %s3832_s7 }
 0x183   : > { %p3829_p7 = pnand %p3827_p10, %p5167_p11  ;;  %p3835_p5 = scmp.lt.s32.totalorder %s3833_s28, %s3826_s1 }
 0x185   : > { %p3830_p0 = pneg %p3829_p7  ;;  %p3836_p12 = por %p3835_p5, %p3834_p1 }
 0x187   : > { %p3837_p3 = pnand %p3836_p12, %p3830_p0 }
 0x189   : > { %3840 = shalt.err (!%p3837_p3)
}
 0x18a   : > { %p5168_p13 = scmp.ne.s32.totalorder %s5148_s0, 0  ;;  %s604_s24 = scalar_lea.vmem [#allocation7], %s4352_s10 }
 0x18b   : > { %s611_s18 = sshll.u32 %s604_s24, 4  ;;  %s5169_s4 = sld [smem:[#allocation50_spill]]  ;;  %s4589_s18 = int_to_ptr.vmem [resolvable:$true] %s611_s18 }
 0x18c   : > { %3320 = dma.hbm_to_vmem [thread:$0]  (!%p5168_p13), %s4556_s27, 128, %s4558_s5, %s561_s23  }
 0x18d   : > { %s3841_s1 = scalar_lea.hbm %s4564_s16, 256  ;;  %s3846_s28 = scalar_lea.hbm %s5166_s8, 512 }
 0x18e   : > { %p3842_p2 = scmp.ne.s32.totalorder %s4564_s16, %s3841_s1  ;;  %p3847_p8 = scmp.lt.u32.totalorder %s4564_s16, %s5166_s8 }
 0x18f   : > { %p3848_p9 = scmp.lt.u32.totalorder %s3846_s28, %s3841_s1  ;;  %p3850_p7 = scmp.lt.u32.totalorder %s3841_s1, %s4564_s16 }
 0x190   : > { %p3844_p4 = pnand %p3842_p2, %p5167_p11 }
 0x191   : > { %s4595_s2 = scalar_lea.hbm %s5169_s4, %s4355_s25  ;;  %p3849_p10 = por %p3848_p9, %p3847_p8 }
 0x192   : > { %p3845_p6 = pneg %p3844_p4 }
 0x193   : > { %p3851_p0 = por %p3850_p7, %p3849_p10 }
 0x195   : > { %p3852_p1 = pnand %p3851_p0, %p3845_p6 }
 0x197   : > { %3855 = shalt.err (!%p3852_p1)
}
 0x198   : > { %s3856_s25 = scalar_lea.vmem %s4589_s18, 256  ;;  %s4059_s5 = smov [#allocation7]  }
 0x199   : > { %p3857_p5 = scmp.ne.s32.totalorder %s4589_s18, %s3856_s25  ;;  %s3861_s23 = sshll.u32 %s4059_s5, 4  ;;  %s3862_s23 = int_to_ptr.vmem [resolvable:$false] %s3861_s23 }
 0x19a   : > { %s3863_s3 = scalar_lea.vmem %s3862_s23, 512  ;;  %p3864_p2 = scmp.lt.s32.totalorder %s4589_s18, %s3862_s23 }
 0x19b   : > { %p3859_p12 = pnand %p3857_p5, %p5167_p11  ;;  %p3865_p4 = scmp.lt.s32.totalorder %s3863_s3, %s3856_s25 }
 0x19d   : > { %p3860_p3 = pneg %p3859_p12  ;;  %p3866_p8 = por %p3865_p4, %p3864_p2 }
 0x19f   : > { %p3867_p9 = pnand %p3866_p8, %p3860_p3 }
 0x1a1   : > { %3870 = shalt.err (!%p3867_p9)
}
 0x1a2   : > { %s5170_s24 = scalar_lea.sflag [#allocation6], %s4343_s30  ;;  %s646_s15 = scalar_lea.vmem [#allocation10], %s4352_s10 }
 0x1a3   : > { %3326 = dma.hbm_to_vmem [thread:$0]  (!%p5168_p13), %s4564_s16, 256, %s4589_s18, %s5170_s24, %s5152_s14, %s5152_s14, %s5151_s11  }
 0x1a4   : > { %s653_s26 = sshll.u32 %s646_s15, 4  ;;  %s5171_s1 = sshll.u32 %s4340_s17, 1  ;;  %s4626_s26 = int_to_ptr.vmem [resolvable:$true] %s653_s26 }
 0x1a5   : > { %s686_s21 = scalar_lea.vmem [#allocation13], %s5171_s1  ;;  %s3871_s28 = scalar_lea.hbm %s4595_s2, 256 }
 0x1a6   : > { %s694_s7 = sshll.u32 %s686_s21, 4  ;;  %p3872_p6 = scmp.ne.s32.totalorder %s4595_s2, %s3871_s28  ;;  %s4628_s7 = int_to_ptr.vmem [resolvable:$true] %s694_s7 }
 0x1a7   : > { %s3876_s5 = scalar_lea.hbm %s5169_s4, 512  ;;  %p3877_p0 = scmp.lt.u32.totalorder %s4595_s2, %s5169_s4 }
 0x1a8   : > { %p3874_p10 = pnand %p3872_p6, %p5167_p11  ;;  %p3878_p1 = scmp.lt.u32.totalorder %s3876_s5, %s3871_s28 }
 0x1a9   : > { %p3880_p12 = scmp.lt.u32.totalorder %s3871_s28, %s4595_s2 }
 0x1aa   : > { %p3875_p7 = pneg %p3874_p10  ;;  %p3879_p5 = por %p3878_p1, %p3877_p0 }
 0x1ac   : > { %p3881_p3 = por %p3880_p12, %p3879_p5 }
 0x1ae   : > { %p3882_p2 = pnand %p3881_p3, %p3875_p7 }
 0x1b0   : > { %3885 = shalt.err (!%p3882_p2)
}
 0x1b1   : > { %s3886_s17 = scalar_lea.vmem %s4626_s26, 256  ;;  %s4060_s10 = smov [#allocation10]  }
 0x1b2   : > { %p3887_p4 = scmp.ne.s32.totalorder %s4626_s26, %s3886_s17  ;;  %s3891_s18 = sshll.u32 %s4060_s10, 4  ;;  %s3892_s18 = int_to_ptr.vmem [resolvable:$false] %s3891_s18 }
 0x1b3   : > { %s3893_s3 = scalar_lea.vmem %s3892_s18, 512  ;;  %p3894_p6 = scmp.lt.s32.totalorder %s4626_s26, %s3892_s18 }
 0x1b4   : > { %p3889_p8 = pnand %p3887_p4, %p5167_p11  ;;  %p3895_p10 = scmp.lt.s32.totalorder %s3893_s3, %s3886_s17 }
 0x1b6   : > { %p3890_p9 = pneg %p3889_p8  ;;  %p3896_p0 = por %p3895_p10, %p3894_p6 }
 0x1b8   : > { %p3897_p1 = pnand %p3896_p0, %p3890_p9 }
 0x1ba   : > { %3900 = shalt.err (!%p3897_p1)
}
 0x1bb   : > { %s5172_s24 = scalar_lea.sflag [#allocation9], %s4343_s30  ;;  %s3901_s15 = scalar_lea.hbm %s4471_s20, 32 }
 0x1bc   : > { %3332 = dma.hbm_to_vmem [thread:$0]  (!%p5168_p13), %s4595_s2, 256, %s4626_s26, %s5172_s24, %s5152_s14, %s5152_s14, %s5151_s11  }
 0x1bd   : > { %p3902_p7 = scmp.ne.s32.totalorder %s4471_s20, %s3901_s15  ;;  %s3906_s28 = scalar_lea.hbm %s5061_s6, 64 }
 0x1be   : > { %p3907_p3 = scmp.lt.u32.totalorder %s4471_s20, %s5061_s6  ;;  %p3908_p2 = scmp.lt.u32.totalorder %s3906_s28, %s3901_s15 }
 0x1bf   : > { %p3904_p5 = pnand %p3902_p7, %p5167_p11  ;;  %p3910_p8 = scmp.lt.u32.totalorder %s3901_s15, %s4471_s20 }
 0x1c0   : > { %p3909_p4 = por %p3908_p2, %p3907_p3 }
 0x1c1   : > { %p3905_p12 = pneg %p3904_p5 }
 0x1c2   : > { %p3911_p9 = por %p3910_p8, %p3909_p4 }
 0x1c4   : > { %p3912_p6 = pnand %p3911_p9, %p3905_p12 }
 0x1c6   : > { %3915 = shalt.err (!%p3912_p6)
}
 0x1c7   : > { %s3916_s11 = scalar_lea.vmem %s4628_s7, 32  ;;  %s4061_s14 = smov [#allocation13]  }
 0x1c8   : > { %p3917_p10 = scmp.ne.s32.totalorder %s4628_s7, %s3916_s11  ;;  %s3921_s2 = sshll.u32 %s4061_s14, 4  ;;  %s3922_s2 = int_to_ptr.vmem [resolvable:$false] %s3921_s2 }
 0x1c9   : > { %s3923_s26 = scalar_lea.vmem %s3922_s2, 64  ;;  %p3924_p7 = scmp.lt.s32.totalorder %s4628_s7, %s3922_s2 }
 0x1ca   : > { %p3919_p0 = pnand %p3917_p10, %p5167_p11  ;;  %p3925_p5 = scmp.lt.s32.totalorder %s3923_s26, %s3916_s11 }
 0x1cc   : > { %p3920_p1 = pneg %p3919_p0  ;;  %p3926_p3 = por %p3925_p5, %p3924_p7 }
 0x1ce   : > { %p3927_p2 = pnand %p3926_p3, %p3920_p1 }
 0x1d0   : > { %3930 = shalt.err (!%p3927_p2)
}
 0x1d1   : > { %s5173_s5 = scalar_lea.sflag [#allocation12], %s4343_s30  ;;  %s5174_s23 = sld [smem:[#allocation41_spill]] }
 0x1d2   : > { %3338 = dma.hbm_to_vmem [thread:$0]  (!%p5168_p13), %s4471_s20, 32, %s4628_s7, %s5173_s5  }
 0x1d7   : > { %p5175_p12 = scmp.ne.s32.totalorder %s5174_s23, 0 }
 0x1d8   : > { %s4682_s13 = sand.u32 (!%p5175_p12), 1, %s4025_s19   ;;  %p5176_p11 = scmp.ne.s32.totalorder (!%p5175_p12), %s5142_s29, 0 }
 0x1d9   : > { %703 = sbr.rel (%p5175_p12) target bundleno = 6476 (0x194c), region = 80  ;;  %s2925_s16 = sshll.u32 (!%p5175_p12), %s4682_s13, 3 }
 0x1da   : > { %s706_s17 = scalar_lea.sflag (!%p5175_p12), [#allocation3], %s4682_s13  ;;  %s4688_s10 = scalar_lea.vmem (!%p5175_p12), [#allocation2], %s2925_s16 }
 0x1e0   : > { %3984 = dma.done.wait (%p5176_p11), %s706_s17, 128  }
 0x1e1   : > { %3986 = vsyncadd (%p5176_p11), %s706_s17, 4294967168  ;;  %s5177_s30 = sld [smem:[#allocation40_spill]]  ;;  %s2926_s20 = sshll.u32 %s4682_s13, 4 }
 0x1e2   : > { %s4696_s18 = scalar_lea.vmem [#allocation5], %s2926_s20 }
 0x1e7   : > { %s714_s0 = sand.u32 1, %s5177_s30  }
 0x1e8   : > { %s715_s7 = scalar_lea.sflag [#allocation6], %s714_s0 }
 0x1e9   : > { %3988 = dma.done.wait (%p5176_p11), %s715_s7, 512  }
 0x1ea   : > { %3990 = vsyncadd (%p5176_p11), %s715_s7, 4294966784  ;;  %s4702_s3 = scalar_lea.vmem [#allocation7], %s2926_s20  ;;  %s733_s24 = scalar_lea.sflag [#allocation9], %s714_s0 }
 0x1eb   : > { %s4704_s15 = scalar_lea.vmem [#allocation8], %s2926_s20 }
 0x1ec   : > { %3992 = dma.done.wait (%p5176_p11), %s733_s24, 512  }
 0x1ed   : > { %3994 = vsyncadd (%p5176_p11), %s733_s24, 4294966784  ;;  %s2930_s1 = sshll.u32 %s4682_s13, 1  ;;  %s4711_s21 = scalar_lea.vmem [#allocation10], %s2926_s20 }
 0x1ee   : > { %s751_s28 = scalar_lea.sflag [#allocation12], %s714_s0  ;;  %s4713_s27 = scalar_lea.vmem [#allocation11], %s2930_s1 }
 0x1ef   : > { %3996 = dma.done.wait (%p5176_p11), %s751_s28, 64  }
 0x1f0   : > { %3998 = vsyncadd (%p5176_p11), %s751_s28, 4294967232  ;;  %s4719_s25 = scalar_lea.vmem [#allocation13], %s2930_s1  ;;  %p5178_p13 = scmp.eq.s32.totalorder %s5177_s30, 0 }
 0x1f2   : > { %4000 = dma.done.wait (%p5178_p13), [#allocation15], 512   ;;  %p5179_p4 = pmov %p5178_p13 }
 0x1f4   : > { %4002 = vsyncadd (%p5179_p4), [#allocation15], 4294966784  ;;  %p5180_p8 = pmov %p5179_p4 }
 0x1f5   : > { %p5181_p9 = pmov %p5179_p4 }
 0x1f6   : > { %4004 = dma.done.wait (%p5180_p8), [#allocation18], 512  }
 0x1f7   : > { %4006 = vsyncadd (%p5181_p9), [#allocation18], 4294966784  ;;  %p5182_p6 = pmov %p5179_p4 }
 0x1f8   : > { %p5183_p10 = pmov %p5179_p4 }
 0x1f9   : > { %4008 = dma.done.wait (%p5182_p6), [#allocation21], 272  }
 0x1fa   : > { %4010 = vsyncadd (%p5183_p10), [#allocation21], 4294967024  ;;  %p5184_p0 = pmov %p5179_p4 }
 0x1fc   : > { %4012 = dma.done.wait (%p5184_p0), [#allocation24], 768   ;;  %p5185_p1 = pmov %p5184_p0 }
 0x1fd   : > { %v4062_v0 = vmov 0.0   ;;  %vm4063_vm0 = vmmov 0   ;;  %v3426_v1 = vld [vmem:[#allocation14] sm:$0xff]   ;;  %v3427_v2 = vld [vmem:[#allocation14 + $0x8] sm:$0xff]   ;;  %vm932_vm1 = vcmask 261120   ;;  %vm983_vm2 = vcmask 1043456  }
 0x1fe   : > { %4014 = vsyncadd (%p5185_p1), [#allocation24], 4294966528  ;;  %3064 = vmatprep.subr.bf16.mxu0 %v4062_v0  ;;  %3068 = vmatprep.mubr.msk.bf16.mxu0 %vm4063_vm0, %v4062_v0  ;;  %v4744_v3 = vld [vmem:[%s4688_s10] sm:$0xff]  ;;  %v977_v5 = vld [vmem:[%s4696_s18] sm:$0xf]  ;;  %v916_v7 = vlaneseq  ;;  %vm979_vm3 = vcmask 64512  }
 0x1ff   : > { %3072 = vmatprep.subr.bf16.mxu1 %v4062_v0  ;;  %3074 = vmatprep.mubr.msk.bf16.mxu1 %vm4063_vm0, %v4062_v0  ;;  %v915_v4 = vpack.c.bf16 %v4744_v3, %v4744_v3  ;;  %v985_v6 = vsel %vm983_vm2, %v977_v5, 0  ;;  %v4759_v10 = vld [vmem:[#allocation25] sm:$0xff]  ;;  %s4064_s29 = smov 120   ;;  %v2948_v35 = vld [vmem:[%s4696_s18 + $0x4] sm:$0xf]  ;;  %s4065_s11 = smov 112  }
 0x200   : > { %3065 = vmatpush3.bf16.msra.mxu0 %v3426_v1  ;;  %3073 = vmatpush3.bf16.msra.mxu1 %v985_v6  ;;  %v4756_v8 = vshrl.u32 %v916_v7, 7  ;;  %v904_v18 = vld [vmem:[%s4713_s27] sm:$0x3]  ;;  %v1104_v38 = vsel %vm983_vm2, %v2948_v35, 0  ;;  %v2949_v55 = vld [vmem:[%s4702_s3 + $0x4] sm:$0xf] }
 0x201   : > { %3066 = vmatprep.subr.bf16.mxu0 %v4062_v0  ;;  %3078 = vmatprep.subr.bf16.mxu1 %v4062_v0  ;;  %v905_v19 = vunpack.c.0.s8 %v904_v18  ;;  %v978_v29 = vld [vmem:[%s4702_s3] sm:$0xf]  ;;  %v1166_v56 = vsel %vm983_vm2, %v2949_v55, 0  ;;  %v878_v5 = vld [vmem:[#allocation16 + $0x4] sm:$0xf]  ;;  %s4066_s14 = smov 104  }
 0x202   : > { %v918_v9 = vsub.s32 0, %v4756_v8  ;;  %v1047_v30 = vsel %vm983_vm2, %v978_v29, 0  ;;  %v1216_v6 = vsel %vm983_vm2, %v878_v5, 0  ;;  %v2954_v29 = vld [vmem:[%s4696_s18 + $0x8] sm:$0xf]  ;;  %vm2516_vm8 = vcmask 523264  }
 0x203   : > { %v906_v20 = vcvt.s32.f32 %v905_v19  ;;  %v2959_v55 = vld [vmem:[%s4696_s18 + $0xc] sm:$0xf]  ;;  %s5186_s2 = sld [smem:[#allocation38_spill]]  ;;  %s5187_s26 = sld [smem:[#allocation43_spill]] }
 0x204   : > { %3067 = vmatpush3.bf16.msra.mxu0 %v3427_v2  ;;  %v919_v11 = vrot.slane %v4759_v10, %v918_v9  ;;  %v877_v2 = vld [vmem:[#allocation16] sm:$0xf]  ;;  %s871_s23 = scalar_lea.vmem [#allocation26], %s2925_s16  ;;  %s5188_s0 = sld [smem:[#allocation60_spill]] }
 0x205   : > { %3096 = vmatprep.subr.bf16.mxu0 %v4062_v0  ;;  %v2941_v21 = vadd.f32 -1.0, %v906_v20  ;;  %s2607_s17 = sshll.u32 %s871_s23, 4  ;;  %s2593_s7 = scalar_lea.sflag [#allocation4], %s4682_s13  ;;  %s5007_s17 = int_to_ptr.vmem [resolvable:$true] %s2607_s17 }
 0x206   : > { %s3931_s18 = scalar_lea.vmem %s5007_s17, 128  ;;  %s4067_s16 = smov [#allocation26]  }
 0x207   : > { %3069 = vmatmul.mubr.msk.bf16.vlgmr.msra.gmra.mrb[0].mxu0 %vm932_vm1, %v915_v4  ;;  %v4771_v22 = vmul.f32 1e+09, %v2941_v21  ;;  %v1262_v4 = vsel %vm983_vm2, %v877_v2, 0  ;;  %p3932_p7 = scmp.ne.s32.totalorder %s5007_s17, %s3931_s18 }
 0x208   : > { %3098 = vmatprep.mubr.msk.bf16.mxu0 %vm4063_vm0, %v4062_v0  ;;  %3097 = vmatpush3.bf16.msra.mxu0 %v1216_v6 }
 0x209   : > { %3108 = vmatprep.subr.bf16.mxu0 %v4062_v0  ;;  %s2995_s5 = sshll.u32 %s5186_s2, 7  ;;  %p5189_p5 = scmp.ne.s32.totalorder %s5187_s26, 0 }
 0x20a   : > { %s5005_s20 = scalar_lea.hbm %s5188_s0, %s2995_s5 }
 0x20b   : > { %p3933_p3 = pnand %p3932_p7, %p5189_p5 }
 0x20d   : > { %p3934_p2 = pneg %p3933_p3 }
 0x2da   : > { %v970_v12 = vpop.f32.mrb[0].mxu0 }
 0x2db   : > { %v971_v13 = vadd.f32 %v970_v12, %v919_v11  ;;  %v3070_v14 = vpop.f32.mrb[1].mxu0 }
 0x2dc   : > { %v973_v15 = vpop.f32.mrb[2].mxu0 }
 0x2dd   : > { %v4764_v16 = vpack.c.bf16 %v971_v13, %v971_v13  ;;  %v3071_v17 = vpop.f32.mrb[3].mxu0 }
 0x2df   : > { %3075 = vmatmul.mubr.msk.bf16.vlgmr.msra.gmra.mrb[0].mxu1 %vm979_vm3, %v4764_v16 }
 0x2e0   : > { %3080 = vmatprep.mubr.msk.bf16.mxu1 %vm4063_vm0, %v4062_v0  ;;  %3079 = vmatpush3.bf16.msra.mxu1 %v1047_v30 }
 0x2e1   : > { %3084 = vmatprep.subr.bf16.mxu1 %v4062_v0 }
 0x3b2   : > { %v1021_v23 = vpop.f32.mrb[0].mxu1 }
 0x3b3   : > { %v1022_v24 = vadd.f32 %v1021_v23, %v4771_v22  ;;  %v3076_v25 = vpop.f32.mrb[1].mxu1 }
 0x3b4   : > { %v1024_v26 = vpop.f32.mrb[2].mxu1 }
 0x3b5   : > { %v3077_v27 = vpop.f32.mrb[3].mxu1  ;;  %v1027_v28 = vsel %vm979_vm3, %v1022_v24, -inf }
 0x3b6   : > { %1028 = vmax.xlane.f32.xlu0 %v1027_v28 }
 0x3cc   : > { %1098 = vrot.lane.b32.xlu0 %v4764_v16, %s4064_s29 }
 0x443   : > { %v1029_v31 = vpop.xlane.xlu0 %1028 }
 0x444   : > { %v1030_v32 = vmax.f32 %v1029_v31, -1e+30 }
 0x446   : > { %v1034_v33 = vsub.f32 %v1022_v24, %v1030_v32  ;;  %v1031_v40 = vsub.f32 -1e+30, %v1030_v32 }
 0x447   : > { %v1099_v39 = vpop.permute.xlu0 %1098 }
 0x448   : > { %v1035_v34 = vmul.f32 1.442695, %v1034_v33  ;;  %v1032_v41 = vmul.f32 1.442695, %v1031_v40  ;;  %v1314_v33 = vsel %vm983_vm2, %v2954_v29, 0 }
 0x44a   : > { %3436 = vpow2.f32 %v1035_v34 }
 0x44b   : > { %3438 = vpow2.f32 %v1032_v41 }
 0x454   : > { %v3437_v36 = vpop.eup %3436 }
 0x455   : > { %v1042_v37 = vpack.c.bf16 %v3437_v36, %v3437_v36  ;;  %v3439_v42 = vpop.eup %3438  ;;  %v1038_v1 = vsel %vm979_vm3, %v3437_v36, 0.0 }
 0x456   : > { %v1037_v43 = vmul.f32 0.0, %v3439_v42 }
 0x457   : > { %3081 = vmatmul.mubr.msk.bf16.vlgmr.msra.gmra.mrb[4].mxu1 %vm979_vm3, %v1042_v37 }
 0x458   : > { %3085 = vmatpush3.bf16.msra.mxu1 %v1104_v38  ;;  %3086 = vmatprep.mubr.msk.bf16.mxu1 %vm4063_vm0, %v4062_v0 }
 0x459   : > { %3090 = vmatprep.subr.bf16.mxu1 %v4062_v0 }
 0x45f   : > { %3087 = vmatmul.mubr.msk.bf16.vlgmr.msra.gmra.mrb[8].mxu1 %vm979_vm3, %v1099_v39 }
 0x460   : > { %3092 = vmatprep.mubr.msk.bf16.mxu1 %vm4063_vm0, %v4062_v0  ;;  %3091 = vmatpush3.bf16.msra.mxu1 %v1166_v56 }
 0x461   : > { %3102 = vmatprep.subr.bf16.mxu1 %v4062_v0 }
 0x52a   : > { %v1083_v44 = vpop.f32.mrb[4].mxu1 }
 0x52b   : > { %v1089_v45 = vadd.f32 %v1083_v44, %v1037_v43  ;;  %v3082_v46 = vpop.f32.mrb[5].mxu1 }
 0x52c   : > { %v1086_v47 = vpop.f32.mrb[6].mxu1 }
 0x52d   : > { %v3083_v48 = vpop.f32.mrb[7].mxu1 }
 0x532   : > { %v1140_v49 = vpop.f32.mrb[8].mxu1 }
 0x533   : > { %v1141_v50 = vadd.f32 %v1140_v49, %v4771_v22  ;;  %v3088_v51 = vpop.f32.mrb[9].mxu1  ;;  %v2955_v49 = vld [vmem:[%s4702_s3 + $0x8] sm:$0xf] }
 0x534   : > { %v1143_v52 = vpop.f32.mrb[10].mxu1 }
 0x535   : > { %v3089_v53 = vpop.f32.mrb[11].mxu1  ;;  %v1146_v54 = vsel %vm979_vm3, %v1141_v50, -inf }
 0x536   : > { %1147 = vmax.xlane.f32.xlu1 %v1146_v54 }
 0x5c3   : > { %v1148_v57 = vpop.xlane.xlu1 %1147 }
 0x5c4   : > { %v1149_v58 = vmax.f32 %v1148_v57, -1e+30 }
 0x5c6   : > { %v1153_v59 = vsub.f32 %v1141_v50, %v1149_v58  ;;  %v1150_v7 = vsub.f32 -1e+30, %v1149_v58  ;;  %v1376_v50 = vsel %vm983_vm2, %v2955_v49, 0 }
 0x5c8   : > { %v1154_v60 = vmul.f32 1.442695, %v1153_v59  ;;  %v1151_v11 = vmul.f32 1.442695, %v1150_v7  ;;  %v1479_v59 = vsel %vm983_vm2, %v2959_v55, 0 }
 0x5ca   : > { %3440 = vpow2.f32 %v1154_v60  ;;  %v879_v60 = vld [vmem:[#allocation16 + $0x8] sm:$0xf] }
 0x5cb   : > { %3442 = vpow2.f32 %v1151_v11 }
 0x5d4   : > { %v3441_v61 = vpop.eup %3440 }
 0x5d5   : > { %v1157_v62 = vsel %vm979_vm3, %v3441_v61, 0.0  ;;  %v1161_v63 = vpack.c.bf16 %v3441_v61, %v3441_v61  ;;  %v3443_v15 = vpop.eup %3442  ;;  %v1426_v61 = vsel %vm983_vm2, %v879_v60, 0 }
 0x5d6   : > { %1158 = vadd.xlane.f32.xlu1 %v1157_v62  ;;  %v1156_v18 = vmul.f32 0.0, %v3443_v15 }
 0x5d7   : > { %3093 = vmatmul.mubr.msk.bf16.vlgmr.msra.gmra.mrb[12].mxu1 %vm979_vm3, %v1161_v63 }
 0x5d8   : > { %3104 = vmatprep.mubr.msk.bf16.mxu1 %vm4063_vm0, %v4062_v0  ;;  %3103 = vmatpush3.bf16.msra.mxu1 %v1262_v4 }
 0x5d9   : > { %3114 = vmatprep.subr.bf16.mxu1 %v4062_v0 }
 0x5e7   : > { %1308 = vrot.lane.b32.xlu1 %v4764_v16, %s4065_s11 }
 0x60b   : > { %1039 = vadd.xlane.f32.xlu1 %v1038_v1 }
 0x663   : > { %v1159_v12 = vpop.xlane.xlu1 %1158 }
 0x664   : > { %v1160_v19 = vadd.f32 %v1159_v12, %v1156_v18 }
 0x667   : > { %v1309_v13 = vpop.permute.xlu1 %1308 }
 0x698   : > { %v1040_v14 = vpop.xlane.xlu1 %1039 }
 0x699   : > { %v1041_v17 = vadd.f32 %v1040_v14, %v1037_v43 }
 0x69b   : > { %3444 = vrcp.f32 %v1041_v17 }
 0x69c   : > { %3446 = vrcp.f32 %v1160_v19 }
 0x6a5   : > { %v3445_v20 = vpop.eup %3444 }
 0x6a6   : > { %v1091_v21 = vmul.f32 %v3445_v20, %v1089_v45  ;;  %v3447_v27 = vpop.eup %3446 }
 0x6a8   : > { %v1092_v23 = vpack.c.bf16 %v1091_v21, %v1091_v21 }
 0x6aa   : > { %v1202_v24 = vpop.f32.mrb[12].mxu1  ;;  %3105 = vmatmul.mubr.msk.bf16.vlgmr.msra.gmra.mrb[16].mxu1 %vm979_vm3, %v1092_v23 }
 0x6ab   : > { %v1208_v25 = vadd.f32 %v1202_v24, %v1156_v18  ;;  %v3094_v26 = vpop.f32.mrb[13].mxu1  ;;  %3116 = vmatprep.mubr.msk.bf16.mxu1 %vm4063_vm0, %v4062_v0  ;;  %3115 = vmatpush3.bf16.msra.mxu1 %v1376_v50 }
 0x6ac   : > { %v1205_v28 = vpop.f32.mrb[14].mxu1  ;;  %3126 = vmatprep.subr.bf16.mxu1 %v4062_v0 }
 0x6ad   : > { %v1210_v30 = vmul.f32 %v3447_v27, %v1208_v25  ;;  %v3095_v31 = vpop.f32.mrb[15].mxu1  ;;  %v2960_v25 = vld [vmem:[%s4702_s3 + $0xc] sm:$0xf]  ;;  %s3935_s3 = sshll.u32 %s4067_s16, 4  ;;  %s3936_s3 = int_to_ptr.vmem [resolvable:$false] %s3935_s3 }
 0x6ae   : > { %v1541_v26 = vsel %vm983_vm2, %v2960_v25, 0  ;;  %s3937_s24 = scalar_lea.vmem %s3936_s3, 256  ;;  %p3938_p12 = scmp.lt.s32.totalorder %s5007_s17, %s3936_s3 }
 0x6af   : > { %v1211_v32 = vpack.c.bf16 %v1210_v30, %v1210_v30  ;;  %p3939_p11 = scmp.lt.s32.totalorder %s3937_s24, %s3931_s18 }
 0x6b1   : > { %3099 = vmatmul.mubr.msk.bf16.vlgmr.msra.gmra.mrb[4].mxu0 %vm979_vm3, %v1211_v32  ;;  %p3940_p13 = por %p3939_p11, %p3938_p12 }
 0x6b2   : > { %3109 = vmatpush3.bf16.msra.mxu0 %v1314_v33  ;;  %3110 = vmatprep.mubr.msk.bf16.mxu0 %vm4063_vm0, %v4062_v0  ;;  %v880_v33 = vld [vmem:[#allocation16 + $0xc] sm:$0xf] }
 0x6b3   : > { %3120 = vmatprep.subr.bf16.mxu0 %v4062_v0  ;;  %p3941_p4 = pnand %p3940_p13, %p3934_p2 }
 0x6b9   : > { %3111 = vmatmul.mubr.msk.bf16.vlgmr.msra.gmra.mrb[8].mxu0 %vm979_vm3, %v1309_v13 }
 0x6ba   : > { %3122 = vmatprep.mubr.msk.bf16.mxu0 %vm4063_vm0, %v4062_v0  ;;  %3121 = vmatpush3.bf16.msra.mxu0 %v1426_v61 }
 0x6bb   : > { %3132 = vmatprep.subr.bf16.mxu0 %v4062_v0 }
 0x77d   : > { %v1298_v34 = vpop.f32.mrb[16].mxu1 }
 0x77e   : > { %v3106_v35 = vpop.f32.mrb[17].mxu1 }
 0x77f   : > { %v1301_v36 = vpop.f32.mrb[18].mxu1 }
 0x780   : > { %v3107_v37 = vpop.f32.mrb[19].mxu1 }
 0x784   : > { %v1252_v38 = vpop.f32.mrb[4].mxu0 }
 0x785   : > { %v4817_v39 = vadd.f32 %v1298_v34, %v1252_v38  ;;  %v3100_v40 = vpop.f32.mrb[5].mxu0  ;;  %v1591_v34 = vsel %vm983_vm2, %v880_v33, 0  ;;  %v2969_v33 = vld [vmem:[%s4704_s15 + $0x4] sm:$0xf] }
 0x786   : > { %v1255_v41 = vpop.f32.mrb[6].mxu0 }
 0x787   : > { %v3101_v42 = vpop.f32.mrb[7].mxu0 }
 0x78c   : > { %v1350_v43 = vpop.f32.mrb[8].mxu0 }
 0x78d   : > { %v1351_v44 = vadd.f32 %v1350_v43, %v4771_v22  ;;  %v3112_v45 = vpop.f32.mrb[9].mxu0 }
 0x78e   : > { %v1353_v46 = vpop.f32.mrb[10].mxu0 }
 0x78f   : > { %v3113_v47 = vpop.f32.mrb[11].mxu0  ;;  %v1356_v48 = vsel %vm979_vm3, %v1351_v44, -inf }
 0x790   : > { %1357 = vmax.xlane.f32.xlu0 %v1356_v48 }
 0x7a6   : > { %1473 = vrot.lane.b32.xlu0 %v4764_v16, %s4066_s14 }
 0x81d   : > { %v1358_v51 = vpop.xlane.xlu0 %1357 }
 0x81e   : > { %v1359_v52 = vmax.f32 %v1358_v51, -1e+30 }
 0x820   : > { %v1363_v53 = vsub.f32 %v1351_v44, %v1359_v52  ;;  %v1360_v62 = vsub.f32 -1e+30, %v1359_v52 }
 0x821   : > { %v1474_v16 = vpop.permute.xlu0 %1473 }
 0x822   : > { %v1364_v54 = vmul.f32 1.442695, %v1363_v53  ;;  %v1361_v63 = vmul.f32 1.442695, %v1360_v62 }
 0x824   : > { %3448 = vpow2.f32 %v1364_v54 }
 0x825   : > { %3450 = vpow2.f32 %v1361_v63 }
 0x82e   : > { %v3449_v56 = vpop.eup %3448 }
 0x82f   : > { %v1367_v57 = vsel %vm979_vm3, %v3449_v56, 0.0  ;;  %v1371_v58 = vpack.c.bf16 %v3449_v56, %v3449_v56  ;;  %v3451_v1 = vpop.eup %3450 }
 0x830   : > { %1368 = vadd.xlane.f32.xlu1 %v1367_v57  ;;  %v1366_v4 = vmul.f32 0.0, %v3451_v1 }
 0x831   : > { %3117 = vmatmul.mubr.msk.bf16.vlgmr.msra.gmra.mrb[20].mxu1 %vm979_vm3, %v1371_v58 }
 0x832   : > { %3127 = vmatpush3.bf16.msra.mxu1 %v1479_v59  ;;  %3128 = vmatprep.mubr.msk.bf16.mxu1 %vm4063_vm0, %v4062_v0 }
 0x833   : > { %3138 = vmatprep.subr.bf16.mxu1 %v4062_v0 }
 0x839   : > { %3129 = vmatmul.mubr.msk.bf16.vlgmr.msra.gmra.mrb[24].mxu1 %vm979_vm3, %v1474_v16 }
 0x83a   : > { %3140 = vmatprep.mubr.msk.bf16.mxu1 %vm4063_vm0, %v4062_v0  ;;  %3139 = vmatpush3.bf16.msra.mxu1 %v1591_v34 }
 0x83b   : > { %3152 = vmatprep.subr.bf16.mxu1 %v4062_v0 }
 0x8bd   : > { %v1369_v2 = vpop.xlane.xlu1 %1368 }
 0x8be   : > { %v1370_v5 = vadd.f32 %v1369_v2, %v1366_v4 }
 0x8c0   : > { %3452 = vrcp.f32 %v1370_v5 }
 0x8ca   : > { %v3453_v12 = vpop.eup %3452 }
 0x904   : > { %v1412_v6 = vpop.f32.mrb[20].mxu1 }
 0x905   : > { %v1418_v7 = vadd.f32 %v1412_v6, %v1366_v4  ;;  %v3118_v11 = vpop.f32.mrb[21].mxu1  ;;  %v3428_v6 = vld [vmem:[#allocation17] sm:$0xff]  }
 0x906   : > { %v1415_v13 = vpop.f32.mrb[22].mxu1 }
 0x907   : > { %v1420_v14 = vmul.f32 %v3453_v12, %v1418_v7  ;;  %v3119_v15 = vpop.f32.mrb[23].mxu1  ;;  %v3429_v7 = vld [vmem:[#allocation17 + $0x8] sm:$0xff]  }
 0x909   : > { %v1421_v17 = vpack.c.bf16 %v1420_v14, %v1420_v14 }
 0x90b   : > { %3123 = vmatmul.mubr.msk.bf16.vlgmr.msra.gmra.mrb[12].mxu0 %vm979_vm3, %v1421_v17 }
 0x90c   : > { %v1515_v18 = vpop.f32.mrb[24].mxu1  ;;  %3134 = vmatprep.mubr.msk.bf16.mxu0 %vm4063_vm0, %v4062_v0  ;;  %3133 = vmatpush3.bf16.msra.mxu0 %v1541_v26 }
 0x90d   : > { %v1516_v19 = vadd.f32 %v1515_v18, %v4771_v22  ;;  %v3130_v20 = vpop.f32.mrb[25].mxu1  ;;  %3144 = vmatprep.subr.bf16.mxu0 %v4062_v0 }
 0x90e   : > { %v1518_v21 = vpop.f32.mrb[26].mxu1 }
 0x90f   : > { %v3131_v23 = vpop.f32.mrb[27].mxu1  ;;  %v1521_v24 = vsel %vm979_vm3, %v1516_v19, -inf  ;;  %v1669_v21 = vsub.s32 6, %v4756_v8 }
 0x910   : > { %1522 = vmax.xlane.f32.xlu1 %v1521_v24 }
 0x911   : > { %v1670_v24 = vrot.slane %v4759_v10, %v1669_v21 }
 0x99d   : > { %v1523_v27 = vpop.xlane.xlu1 %1522 }
 0x99e   : > { %v1524_v28 = vmax.f32 %v1523_v27, -1e+30 }
 0x9a0   : > { %v1528_v29 = vsub.f32 %v1516_v19, %v1524_v28  ;;  %v1525_v41 = vsub.f32 -1e+30, %v1524_v28  ;;  %v1661_v19 = vsub.s32 5, %v4756_v8 }
 0x9a2   : > { %v1529_v30 = vmul.f32 1.442695, %v1528_v29  ;;  %v1526_v42 = vmul.f32 1.442695, %v1525_v41  ;;  %v1662_v20 = vrot.slane %v4759_v10, %v1661_v19  ;;  %v1733_v29 = vld [vmem:[%s4704_s15] sm:$0xf] }
 0x9a3   : > { %v909_v41 = vld [vmem:[%s4719_s25] sm:$0x3] }
 0x9a4   : > { %3454 = vpow2.f32 %v1529_v30  ;;  %v1739_v30 = vsel %vm983_vm2, %v1733_v29, 0 }
 0x9a5   : > { %3456 = vpow2.f32 %v1526_v42  ;;  %v910_v42 = vunpack.c.0.s8 %v909_v41 }
 0x9ae   : > { %v3455_v31 = vpop.eup %3454 }
 0x9af   : > { %v1532_v22 = vsel %vm979_vm3, %v3455_v31, 0.0  ;;  %v1536_v32 = vpack.c.bf16 %v3455_v31, %v3455_v31  ;;  %v3457_v43 = vpop.eup %3456  ;;  %v1675_v31 = vsub.s32 2, %v4756_v8 }
 0x9b0   : > { %1533 = vadd.xlane.f32.xlu1 %v1532_v22  ;;  %v1531_v45 = vmul.f32 0.0, %v3457_v43  ;;  %v911_v43 = vcvt.s32.f32 %v910_v42 }
 0x9b1   : > { %3135 = vmatmul.mubr.msk.bf16.vlgmr.msra.gmra.mrb[16].mxu0 %vm979_vm3, %v1536_v32  ;;  %v1676_v22 = vrot.slane %v4759_v10, %v1675_v31 }
 0x9b2   : > { %3148 = vmatprep.mubr.msk.bf16.mxu0 %vm4063_vm0, %v4062_v0  ;;  %3145 = vmatpush3.bf16.msra.mxu0 %v3428_v6 }
 0x9b3   : > { %3146 = vmatprep.subr.bf16.mxu0 %v4062_v0 }
 0x9b6   : > { %3147 = vmatpush3.bf16.msra.mxu0 %v3429_v7 }
 0x9b7   : > { %3158 = vmatprep.subr.bf16.mxu0 %v4062_v0 }
 0x9de   : > { %v1462_v35 = vpop.f32.mrb[12].mxu0 }
 0x9df   : > { %v1468_v36 = vadd.f32 %v1462_v35, %v4817_v39  ;;  %v3124_v37 = vpop.f32.mrb[13].mxu0  ;;  %v1636_v39 = vsub.s32 1, %v4756_v8 }
 0x9e0   : > { %v1465_v38 = vpop.f32.mrb[14].mxu0 }
 0x9e1   : > { %v3125_v40 = vpop.f32.mrb[15].mxu0  ;;  %v1637_v55 = vrot.slane %v4759_v10, %v1636_v39 }
 0x9e2   : > { %v1858_v40 = vsel %vm983_vm2, %v2969_v33, 0 }
 0xa3d   : > { %v1534_v44 = vpop.xlane.xlu1 %1533 }
 0xa3e   : > { %v1535_v46 = vadd.f32 %v1534_v44, %v1531_v45  ;;  %v2942_v44 = vadd.f32 -1.0, %v911_v43 }
 0xa40   : > { %3458 = vrcp.f32 %v1535_v46 }
 0xa4a   : > { %v3459_v50 = vpop.eup %3458 }
 0xa84   : > { %v1577_v47 = vpop.f32.mrb[16].mxu0 }
 0xa85   : > { %v1583_v48 = vadd.f32 %v1577_v47, %v1531_v45  ;;  %v3136_v49 = vpop.f32.mrb[17].mxu0  ;;  %v4898_v45 = vmul.f32 1e+09, %v2942_v44 }
 0xa86   : > { %v1580_v51 = vpop.f32.mrb[18].mxu0 }
 0xa87   : > { %v1585_v52 = vmul.f32 %v3459_v50, %v1583_v48  ;;  %v3137_v53 = vpop.f32.mrb[19].mxu0 }
 0xa89   : > { %v1586_v54 = vpack.c.bf16 %v1585_v52, %v1585_v52  ;;  %v1734_v52 = vld [vmem:[%s4711_s21] sm:$0xf] }
 0xa8a   : > { %v1801_v53 = vsel %vm983_vm2, %v1734_v52, 0 }
 0xa8b   : > { %3141 = vmatmul.mubr.msk.bf16.vlgmr.msra.gmra.mrb[28].mxu1 %vm979_vm3, %v1586_v54 }
 0xa8c   : > { %3154 = vmatprep.mubr.msk.bf16.mxu1 %vm4063_vm0, %v4062_v0  ;;  %3153 = vmatpush3.bf16.msra.mxu1 %v1739_v30 }
 0xa8d   : > { %3164 = vmatprep.subr.bf16.mxu1 %v4062_v0 }
 0xb5e   : > { %v1627_v56 = vpop.f32.mrb[28].mxu1 }
 0xb5f   : > { %v1633_v57 = vadd.f32 %v1627_v56, %v1468_v36  ;;  %v3142_v58 = vpop.f32.mrb[29].mxu1 }
 0xb60   : > { %v1630_v59 = vpop.f32.mrb[30].mxu1 }
 0xb61   : > { %v1638_v16 = vadd.f32 %v1637_v55, %v1633_v57  ;;  %v3143_v60 = vpop.f32.mrb[31].mxu1 }
 0xb63   : > { %v1639_v61 = vadd.f32 %v1638_v16, %v4744_v3 }
 0xb65   : > { %v1640_v62 = vsel %vm932_vm1, %v1639_v61, 0.0 }
 0xb66   : > { %1641 = vadd.xlane.f32.xlu1 %v1640_v62 }
 0xbf3   : > { %v1642_v63 = vpop.xlane.xlu1 %1641 }
 0xbf4   : > { %v1644_v1 = vmul.f32 0.03125, %v1642_v63  ;;  %v2970_v63 = vld [vmem:[%s4711_s21 + $0x4] sm:$0xf] }
 0xbf6   : > { %v1645_v2 = vsub.f32 %v1639_v61, %v1644_v1 }
 0xbf8   : > { %v1646_v4 = vmul.f32 %v1645_v2, %v1645_v2  ;;  %v1663_v23 = vmul.f32 %v1662_v20, %v1645_v2  ;;  %v886_v20 = vld [vmem:[#allocation19 + $0x4] sm:$0xf] }
 0xbf9   : > { %v1970_v21 = vsel %vm983_vm2, %v886_v20, 0 }
 0xbfa   : > { %v1647_v5 = vsel %vm932_vm1, %v1646_v4, 0.0  ;;  %v1920_v4 = vsel %vm983_vm2, %v2970_v63, 0 }
 0xbfb   : > { %1648 = vadd.xlane.f32.xlu1 %v1647_v5 }
 0xc88   : > { %v1649_v11 = vpop.xlane.xlu1 %1648 }
 0xc89   : > { %v1651_v3 = vmul.f32 0.032258064, %v1649_v11 }
 0xc8b   : > { %3460 = vrsqrt.f32 %v1651_v3  ;;  %vm1654_vm4 = vcmp.eq.f32.partialorder %v1651_v3, inf  ;;  %v1657_v14 = vand.u32 2147483648, %v1651_v3  ;;  %vm1656_vm5 = vcmp.eq.f32.partialorder %v1651_v3, 0.0 }
 0xc95   : > { %v3461_v12 = vpop.eup %3460 }
 0xc96   : > { %v1653_v13 = vmul.f32 %v3461_v12, %v1651_v3 }
 0xc98   : > { %v1655_v15 = vsel %vm1654_vm4, %v1651_v3, %v1653_v13 }
 0xc99   : > { %v1658_v17 = vsel %vm1656_vm5, %v1657_v14, %v1655_v15 }
 0xc9a   : > { %v1664_v18 = vadd.f32 1e-06, %v1658_v17 }
 0xc9c   : > { %3462 = vrcp.f32 %v1664_v18  ;;  %v885_v18 = vld [vmem:[#allocation19] sm:$0xf] }
 0xc9d   : > { %v2016_v19 = vsel %vm983_vm2, %v885_v18, 0 }
 0xca6   : > { %v3463_v25 = vpop.eup %3462 }
 0xca7   : > { %v1666_v26 = vmul.f32 %v3463_v25, %v1663_v23 }
 0xca9   : > { %v4869_v27 = vadd.f32 %v1670_v24, %v1666_v26 }
 0xcab   : > { %v1672_v28 = vpack.c.bf16 %v4869_v27, %v4869_v27 }
 0xcad   : > { %3149 = vmatmul.mubr.msk.bf16.vlgmr.msra.gmra.mrb[20].mxu0 %vm932_vm1, %v1672_v28 }
 0xcae   : > { %3160 = vmatprep.mubr.msk.bf16.mxu0 %vm4063_vm0, %v4062_v0  ;;  %3159 = vmatpush3.bf16.msra.mxu0 %v1801_v53 }
 0xcaf   : > { %3170 = vmatprep.subr.bf16.mxu0 %v4062_v0 }
 0xd80   : > { %v1726_v32 = vpop.f32.mrb[20].mxu0 }
 0xd81   : > { %v1727_v34 = vadd.f32 %v1726_v32, %v1676_v22  ;;  %v3150_v35 = vpop.f32.mrb[21].mxu0 }
 0xd82   : > { %v1729_v36 = vpop.f32.mrb[22].mxu0 }
 0xd83   : > { %v4884_v37 = vpack.c.bf16 %v1727_v34, %v1727_v34  ;;  %v3151_v38 = vpop.f32.mrb[23].mxu0 }
 0xd85   : > { %1852 = vrot.lane.b32.xlu0 %v4884_v37, %s4064_s29  ;;  %3155 = vmatmul.mubr.msk.bf16.vlgmr.msra.gmra.mrb[32].mxu1 %vm979_vm3, %v4884_v37 }
 0xd86   : > { %3165 = vmatpush3.bf16.msra.mxu1 %v1858_v40  ;;  %3166 = vmatprep.mubr.msk.bf16.mxu1 %vm4063_vm0, %v4062_v0 }
 0xd87   : > { %3176 = vmatprep.subr.bf16.mxu1 %v4062_v0 }
 0xdf7   : > { %v1853_v10 = vpop.permute.xlu0 %1852 }
 0xdf8   : > { %3167 = vmatmul.mubr.msk.bf16.vlgmr.msra.gmra.mrb[36].mxu1 %vm979_vm3, %v1853_v10 }
 0xdf9   : > { %3178 = vmatprep.mubr.msk.bf16.mxu1 %vm4063_vm0, %v4062_v0  ;;  %3177 = vmatpush3.bf16.msra.mxu1 %v1970_v21  ;;  %v887_v21 = vld [vmem:[#allocation19 + $0x8] sm:$0xf] }
 0xdfa   : > { %3188 = vmatprep.subr.bf16.mxu1 %v4062_v0 }
 0xe58   : > { %v1775_v46 = vpop.f32.mrb[32].mxu1 }
 0xe59   : > { %v1776_v47 = vadd.f32 %v1775_v46, %v4898_v45  ;;  %v3156_v48 = vpop.f32.mrb[33].mxu1 }
 0xe5a   : > { %v1778_v49 = vpop.f32.mrb[34].mxu1 }
 0xe5b   : > { %v3157_v50 = vpop.f32.mrb[35].mxu1  ;;  %v1781_v51 = vsel %vm979_vm3, %v1776_v47, -inf }
 0xe5c   : > { %1782 = vmax.xlane.f32.xlu1 %v1781_v51  ;;  %v2975_v50 = vld [vmem:[%s4704_s15 + $0x8] sm:$0xf] }
 0xecb   : > { %v1894_v54 = vpop.f32.mrb[36].mxu1 }
 0xecc   : > { %v1895_v55 = vadd.f32 %v1894_v54, %v4898_v45  ;;  %v3168_v56 = vpop.f32.mrb[37].mxu1  ;;  %v2068_v54 = vsel %vm983_vm2, %v2975_v50, 0 }
 0xecd   : > { %v1897_v57 = vpop.f32.mrb[38].mxu1 }
 0xece   : > { %v3169_v58 = vpop.f32.mrb[39].mxu1  ;;  %v1900_v59 = vsel %vm979_vm3, %v1895_v55, -inf }
 0xecf   : > { %1901 = vmax.xlane.f32.xlu0 %v1900_v59 }
 0xee9   : > { %v1783_v16 = vpop.xlane.xlu1 %1782 }
 0xeea   : > { %v1784_v60 = vmax.f32 %v1783_v16, -1e+30 }
 0xeec   : > { %v1788_v61 = vsub.f32 %v1776_v47, %v1784_v60  ;;  %v1785_v15 = vsub.f32 -1e+30, %v1784_v60 }
 0xeee   : > { %v1789_v62 = vmul.f32 1.442695, %v1788_v61  ;;  %v1786_v17 = vmul.f32 1.442695, %v1785_v15  ;;  %v2980_v15 = vld [vmem:[%s4704_s15 + $0xc] sm:$0xf] }
 0xeef   : > { %v2233_v20 = vsel %vm983_vm2, %v2980_v15, 0 }
 0xef0   : > { %3464 = vpow2.f32 %v1789_v62 }
 0xefa   : > { %v3465_v1 = vpop.eup %3464 }
 0xefb   : > { %v1796_v2 = vpack.c.bf16 %v3465_v1, %v3465_v1  ;;  %v1792_v14 = vsel %vm979_vm3, %v3465_v1, 0.0 }
 0xefd   : > { %3161 = vmatmul.mubr.msk.bf16.vlgmr.msra.gmra.mrb[24].mxu0 %vm979_vm3, %v1796_v2 }
 0xefe   : > { %3171 = vmatpush3.bf16.msra.mxu0 %v1920_v4  ;;  %3172 = vmatprep.mubr.msk.bf16.mxu0 %vm4063_vm0, %v4062_v0 }
 0xeff   : > { %3182 = vmatprep.subr.bf16.mxu0 %v4062_v0 }
 0xf5c   : > { %v1902_v5 = vpop.xlane.xlu0 %1901 }
 0xf5d   : > { %v1903_v6 = vmax.f32 %v1902_v5, -1e+30 }
 0xf5f   : > { %v1907_v7 = vsub.f32 %v1895_v55, %v1903_v6  ;;  %v1904_v22 = vsub.f32 -1e+30, %v1903_v6 }
 0xf61   : > { %v1908_v11 = vmul.f32 1.442695, %v1907_v7  ;;  %v1905_v32 = vmul.f32 1.442695, %v1904_v22  ;;  %v2976_v7 = vld [vmem:[%s4711_s21 + $0x8] sm:$0xf] }
 0xf63   : > { %3466 = vpow2.f32 %v1908_v11  ;;  %v2130_v11 = vsel %vm983_vm2, %v2976_v7, 0 }
 0xf64   : > { %3468 = vpow2.f32 %v1786_v17 }
 0xf65   : > { %3470 = vpow2.f32 %v1905_v32 }
 0xf6d   : > { %v3467_v3 = vpop.eup %3466 }
 0xf6e   : > { %v1911_v12 = vsel %vm979_vm3, %v3467_v3, 0.0  ;;  %v1915_v13 = vpack.c.bf16 %v3467_v3, %v3467_v3  ;;  %v3469_v23 = vpop.eup %3468 }
 0xf6f   : > { %1912 = vadd.xlane.f32.xlu1 %v1911_v12  ;;  %v1791_v24 = vmul.f32 0.0, %v3469_v23  ;;  %v3471_v36 = vpop.eup %3470  ;;  %v2180_v23 = vsel %vm983_vm2, %v887_v21, 0 }
 0xf70   : > { %3173 = vmatmul.mubr.msk.bf16.vlgmr.msra.gmra.mrb[28].mxu0 %vm979_vm3, %v1915_v13  ;;  %v1910_v40 = vmul.f32 0.0, %v3471_v36 }
 0xf71   : > { %3184 = vmatprep.mubr.msk.bf16.mxu0 %vm4063_vm0, %v4062_v0  ;;  %3183 = vmatpush3.bf16.msra.mxu0 %v2016_v19 }
 0xf72   : > { %3194 = vmatprep.subr.bf16.mxu0 %v4062_v0 }
 0xf80   : > { %2062 = vrot.lane.b32.xlu1 %v4884_v37, %s4065_s11 }
 0xfa4   : > { %1793 = vadd.xlane.f32.xlu1 %v1792_v14 }
 0xfd0   : > { %v1837_v25 = vpop.f32.mrb[24].mxu0 }
 0xfd1   : > { %v1843_v26 = vadd.f32 %v1837_v25, %v1791_v24  ;;  %v3162_v28 = vpop.f32.mrb[25].mxu0 }
 0xfd2   : > { %v1840_v29 = vpop.f32.mrb[26].mxu0 }
 0xfd3   : > { %v3163_v30 = vpop.f32.mrb[27].mxu0 }
 0xffc   : > { %v1913_v33 = vpop.xlane.xlu1 %1912 }
 0xffd   : > { %v1914_v10 = vadd.f32 %v1913_v33, %v1910_v40 }
0x1000   : > { %v2063_v34 = vpop.permute.xlu1 %2062 }
0x1031   : > { %v1794_v35 = vpop.xlane.xlu1 %1793 }
0x1032   : > { %v1795_v38 = vadd.f32 %v1794_v35, %v1791_v24 }
0x1034   : > { %3472 = vrcp.f32 %v1795_v38 }
0x1035   : > { %3474 = vrcp.f32 %v1914_v10 }
0x103e   : > { %v3473_v41 = vpop.eup %3472 }
0x103f   : > { %v1845_v42 = vmul.f32 %v3473_v41, %v1843_v26  ;;  %v3475_v48 = vpop.eup %3474 }
0x1041   : > { %v1846_v43 = vpack.c.bf16 %v1845_v42, %v1845_v42 }
0x1043   : > { %v1956_v44 = vpop.f32.mrb[28].mxu0  ;;  %3185 = vmatmul.mubr.msk.bf16.vlgmr.msra.gmra.mrb[32].mxu0 %vm979_vm3, %v1846_v43 }
0x1044   : > { %v1962_v46 = vadd.f32 %v1956_v44, %v1910_v40  ;;  %v3174_v47 = vpop.f32.mrb[29].mxu0  ;;  %3196 = vmatprep.mubr.msk.bf16.mxu0 %vm4063_vm0, %v4062_v0  ;;  %3195 = vmatpush3.bf16.msra.mxu0 %v2130_v11 }
0x1045   : > { %v1959_v49 = vpop.f32.mrb[30].mxu0  ;;  %3206 = vmatprep.subr.bf16.mxu0 %v4062_v0  ;;  %v2981_v47 = vld [vmem:[%s4711_s21 + $0xc] sm:$0xf] }
0x1046   : > { %v1964_v51 = vmul.f32 %v3475_v48, %v1962_v46  ;;  %v3175_v52 = vpop.f32.mrb[31].mxu0  ;;  %v2295_v48 = vsel %vm983_vm2, %v2981_v47, 0 }
0x1048   : > { %v1965_v53 = vpack.c.bf16 %v1964_v51, %v1964_v51 }
0x104a   : > { %3179 = vmatmul.mubr.msk.bf16.vlgmr.msra.gmra.mrb[40].mxu1 %vm979_vm3, %v1965_v53 }
0x104b   : > { %3189 = vmatpush3.bf16.msra.mxu1 %v2068_v54  ;;  %3190 = vmatprep.mubr.msk.bf16.mxu1 %vm4063_vm0, %v4062_v0 }
0x104c   : > { %3200 = vmatprep.subr.bf16.mxu1 %v4062_v0 }
0x1052   : > { %3191 = vmatmul.mubr.msk.bf16.vlgmr.msra.gmra.mrb[44].mxu1 %vm979_vm3, %v2063_v34 }
0x1053   : > { %3202 = vmatprep.mubr.msk.bf16.mxu1 %vm4063_vm0, %v4062_v0  ;;  %3201 = vmatpush3.bf16.msra.mxu1 %v2180_v23 }
0x1054   : > { %3212 = vmatprep.subr.bf16.mxu1 %v4062_v0 }
0x1116   : > { %v2052_v55 = vpop.f32.mrb[32].mxu0 }
0x1117   : > { %v3186_v56 = vpop.f32.mrb[33].mxu0 }
0x1118   : > { %v2055_v57 = vpop.f32.mrb[34].mxu0 }
0x1119   : > { %v3187_v58 = vpop.f32.mrb[35].mxu0 }
0x111d   : > { %v2006_v59 = vpop.f32.mrb[40].mxu1 }
0x111e   : > { %v4936_v16 = vadd.f32 %v2052_v55, %v2006_v59  ;;  %v3180_v60 = vpop.f32.mrb[41].mxu1  ;;  %v888_v55 = vld [vmem:[#allocation19 + $0xc] sm:$0xf] }
0x111f   : > { %v2009_v61 = vpop.f32.mrb[42].mxu1  ;;  %v2345_v56 = vsel %vm983_vm2, %v888_v55, 0  ;;  %v3435_v55 = vld [vmem:[#allocation23 + $0x18] sm:$0xff]  }
0x1120   : > { %v3181_v62 = vpop.f32.mrb[43].mxu1 }
0x1125   : > { %v2104_v63 = vpop.f32.mrb[44].mxu1 }
0x1126   : > { %v2105_v1 = vadd.f32 %v2104_v63, %v4898_v45  ;;  %v3192_v2 = vpop.f32.mrb[45].mxu1 }
0x1127   : > { %v2107_v4 = vpop.f32.mrb[46].mxu1 }
0x1128   : > { %v3193_v5 = vpop.f32.mrb[47].mxu1  ;;  %v2110_v6 = vsel %vm979_vm3, %v2105_v1, -inf }
0x1129   : > { %2111 = vmax.xlane.f32.xlu0 %v2110_v6 }
0x113f   : > { %2227 = vrot.lane.b32.xlu0 %v4884_v37, %s4066_s14 }
0x11b6   : > { %v2112_v3 = vpop.xlane.xlu0 %2111 }
0x11b7   : > { %v2113_v12 = vmax.f32 %v2112_v3, -1e+30 }
0x11b9   : > { %v2117_v13 = vsub.f32 %v2105_v1, %v2113_v12  ;;  %v2114_v24 = vsub.f32 -1e+30, %v2113_v12 }
0x11ba   : > { %v2228_v37 = vpop.permute.xlu0 %2227 }
0x11bb   : > { %v2118_v14 = vmul.f32 1.442695, %v2117_v13  ;;  %v2115_v25 = vmul.f32 1.442695, %v2114_v24 }
0x11bd   : > { %3476 = vpow2.f32 %v2118_v14 }
0x11be   : > { %3478 = vpow2.f32 %v2115_v25 }
0x11c7   : > { %v3477_v17 = vpop.eup %3476 }
0x11c8   : > { %v2121_v18 = vsel %vm979_vm3, %v3477_v17, 0.0  ;;  %v2125_v19 = vpack.c.bf16 %v3477_v17, %v3477_v17  ;;  %v3479_v26 = vpop.eup %3478  ;;  %v4976_v17 = vld [vmem:[#allocation25] sm:$0xff] }
0x11c9   : > { %2122 = vadd.xlane.f32.xlu0 %v2121_v18  ;;  %v2120_v29 = vmul.f32 0.0, %v3479_v26 }
0x11ca   : > { %3197 = vmatmul.mubr.msk.bf16.vlgmr.msra.gmra.mrb[36].mxu0 %vm979_vm3, %v2125_v19 }
0x11cb   : > { %3207 = vmatpush3.bf16.msra.mxu0 %v2233_v20  ;;  %3208 = vmatprep.mubr.msk.bf16.mxu0 %vm4063_vm0, %v4062_v0 }
0x11cc   : > { %3218 = vmatprep.subr.bf16.mxu0 %v4062_v0 }
0x11d2   : > { %3209 = vmatmul.mubr.msk.bf16.vlgmr.msra.gmra.mrb[40].mxu0 %vm979_vm3, %v2228_v37 }
0x11d3   : > { %3220 = vmatprep.mubr.msk.bf16.mxu0 %vm4063_vm0, %v4062_v0  ;;  %3219 = vmatpush3.bf16.msra.mxu0 %v2345_v56  ;;  %v2985_v56 = vld [vmem:[#allocation22] ss:$0 sm:$0xff] }
0x11d4   : > { %3232 = vmatprep.subr.bf16.mxu0 %v4062_v0 }
0x1256   : > { %v2123_v28 = vpop.xlane.xlu0 %2122 }
0x1257   : > { %v2124_v30 = vadd.f32 %v2123_v28, %v2120_v29 }
0x1259   : > { %3480 = vrcp.f32 %v2124_v30 }
0x1263   : > { %v3481_v34 = vpop.eup %3480 }
0x129d   : > { %v2166_v22 = vpop.f32.mrb[36].mxu0 }
0x129e   : > { %v2172_v32 = vadd.f32 %v2166_v22, %v2120_v29  ;;  %v3198_v33 = vpop.f32.mrb[37].mxu0 }
0x129f   : > { %v2169_v35 = vpop.f32.mrb[38].mxu0  ;;  %v3430_v33 = vld [vmem:[#allocation20] sm:$0xff]  }
0x12a0   : > { %v2174_v36 = vmul.f32 %v3481_v34, %v2172_v32  ;;  %v3199_v38 = vpop.f32.mrb[39].mxu0  ;;  %v3431_v34 = vld [vmem:[#allocation20 + $0x8] sm:$0xff]   ;;  %v3432_v35 = vld [vmem:[#allocation23] sm:$0xff]  }
0x12a2   : > { %v2175_v40 = vpack.c.bf16 %v2174_v36, %v2174_v36  ;;  %v3433_v36 = vld [vmem:[#allocation23 + $0x8] sm:$0xff]  }
0x12a4   : > { %3203 = vmatmul.mubr.msk.bf16.vlgmr.msra.gmra.mrb[48].mxu1 %vm979_vm3, %v2175_v40 }
0x12a5   : > { %v2269_v10 = vpop.f32.mrb[40].mxu0  ;;  %3214 = vmatprep.mubr.msk.bf16.mxu1 %vm4063_vm0, %v4062_v0  ;;  %3213 = vmatpush3.bf16.msra.mxu1 %v2295_v48  ;;  %v903_v48 = vld [vmem:[#allocation25 + $0x8] sm:$0x7] }
0x12a6   : > { %v2270_v41 = vadd.f32 %v2269_v10, %v4898_v45  ;;  %v3210_v42 = vpop.f32.mrb[41].mxu0  ;;  %3224 = vmatprep.subr.bf16.mxu1 %v4062_v0 }
0x12a7   : > { %v2272_v43 = vpop.f32.mrb[42].mxu0 }
0x12a8   : > { %v3211_v44 = vpop.f32.mrb[43].mxu0  ;;  %v2275_v46 = vsel %vm979_vm3, %v2270_v41, -inf }
0x12a9   : > { %2276 = vmax.xlane.f32.xlu1 %v2275_v46  ;;  %v2413_v46 = vsub.s32 7, %v4756_v8 }
0x12ab   : > { %v2414_v47 = vrot.slane %v4976_v17, %v2413_v46 }
0x1336   : > { %v2277_v49 = vpop.xlane.xlu1 %2276 }
0x1337   : > { %v2278_v50 = vmax.f32 %v2277_v49, -1e+30  ;;  %v2422_v49 = vrot.slane %v903_v48, %v918_v9 }
0x1339   : > { %v2282_v51 = vsub.f32 %v2270_v41, %v2278_v50  ;;  %v2279_v62 = vsub.f32 -1e+30, %v2278_v50 }
0x133b   : > { %v2283_v52 = vmul.f32 1.442695, %v2282_v51  ;;  %v2280_v63 = vmul.f32 1.442695, %v2279_v62 }
0x133d   : > { %3482 = vpow2.f32 %v2283_v52 }
0x133e   : > { %3484 = vpow2.f32 %v2280_v63  ;;  %v2490_v63 = vsub.s32 4, %v4756_v8 }
0x1347   : > { %v3483_v53 = vpop.eup %3482 }
0x1348   : > { %v2286_v45 = vsel %vm979_vm3, %v3483_v53, 0.0  ;;  %v2290_v54 = vpack.c.bf16 %v3483_v53, %v3483_v53  ;;  %v3485_v1 = vpop.eup %3484 }
0x1349   : > { %2287 = vadd.xlane.f32.xlu1 %v2286_v45  ;;  %v2285_v4 = vmul.f32 0.0, %v3485_v1  ;;  %v2491_v1 = vrot.slane %v4976_v17, %v2490_v63 }
0x134a   : > { %3215 = vmatmul.mubr.msk.bf16.vlgmr.msra.gmra.mrb[52].mxu1 %vm979_vm3, %v2290_v54  ;;  %v3434_v54 = vld [vmem:[#allocation23 + $0x10] sm:$0xff]  }
0x134b   : > { %3228 = vmatprep.mubr.msk.bf16.mxu1 %vm4063_vm0, %v4062_v0  ;;  %3225 = vmatpush3.bf16.msra.mxu1 %v3430_v33 }
0x134c   : > { %3226 = vmatprep.subr.bf16.mxu1 %v4062_v0 }
0x134f   : > { %3227 = vmatpush3.bf16.msra.mxu1 %v3431_v34 }
0x1377   : > { %v2216_v57 = vpop.f32.mrb[48].mxu1 }
0x1378   : > { %v2222_v58 = vadd.f32 %v2216_v57, %v4936_v16  ;;  %v3204_v59 = vpop.f32.mrb[49].mxu1  ;;  %v2390_v16 = vsub.s32 3, %v4756_v8 }
0x1379   : > { %v2219_v60 = vpop.f32.mrb[50].mxu1 }
0x137a   : > { %v3205_v61 = vpop.f32.mrb[51].mxu1  ;;  %v2391_v18 = vrot.slane %v4976_v17, %v2390_v16 }
0x13d6   : > { %v2288_v2 = vpop.xlane.xlu1 %2287 }
0x13d7   : > { %v2289_v5 = vadd.f32 %v2288_v2, %v2285_v4 }
0x13d9   : > { %3486 = vrcp.f32 %v2289_v5 }
0x13e3   : > { %v3487_v3 = vpop.eup %3486 }
0x141d   : > { %v2331_v6 = vpop.f32.mrb[52].mxu1 }
0x141e   : > { %v2337_v7 = vadd.f32 %v2331_v6, %v2285_v4  ;;  %v3216_v11 = vpop.f32.mrb[53].mxu1 }
0x141f   : > { %v2334_v12 = vpop.f32.mrb[54].mxu1 }
0x1420   : > { %v2339_v13 = vmul.f32 %v3487_v3, %v2337_v7  ;;  %v3217_v14 = vpop.f32.mrb[55].mxu1 }
0x1422   : > { %v2340_v15 = vpack.c.bf16 %v2339_v13, %v2339_v13 }
0x1424   : > { %3221 = vmatmul.mubr.msk.bf16.vlgmr.msra.gmra.mrb[44].mxu0 %vm979_vm3, %v2340_v15 }
0x1425   : > { %3240 = vmatprep.mubr.msk.bf16.mxu0 %vm4063_vm0, %v4062_v0  ;;  %3233 = vmatpush3.bf16.msra.mxu0 %v3432_v35 }
0x1426   : > { %3234 = vmatprep.subr.bf16.mxu0 %v4062_v0 }
0x1429   : > { %3235 = vmatpush3.bf16.msra.mxu0 %v3433_v36 }
0x142a   : > { %3236 = vmatprep.subr.bf16.mxu0 %v4062_v0 }
0x142d   : > { %3237 = vmatpush3.bf16.msra.mxu0 %v3434_v54 }
0x142e   : > { %3238 = vmatprep.subr.bf16.mxu0 %v4062_v0 }
0x1431   : > { %3239 = vmatpush3.bf16.msra.mxu0 %v3435_v55 }
0x14f7   : > { %v2381_v19 = vpop.f32.mrb[44].mxu0 }
0x14f8   : > { %v2387_v20 = vadd.f32 %v2381_v19, %v2222_v58  ;;  %v3222_v37 = vpop.f32.mrb[45].mxu0 }
0x14f9   : > { %v2384_v21 = vpop.f32.mrb[46].mxu0 }
0x14fa   : > { %v2392_v23 = vadd.f32 %v2391_v18, %v2387_v20  ;;  %v3223_v24 = vpop.f32.mrb[47].mxu0 }
0x14fb   : > { %v2581_v24 = vrot.slane %v903_v48, %v1636_v39 }
0x14fc   : > { %v2393_v25 = vadd.f32 %v2392_v23, %v4869_v27 }
0x14fe   : > { %v2394_v26 = vsel %vm932_vm1, %v2393_v25, 0.0 }
0x14ff   : > { %2395 = vadd.xlane.f32.xlu1 %v2394_v26 }
0x158c   : > { %v2396_v28 = vpop.xlane.xlu1 %2395 }
0x158d   : > { %v2397_v29 = vmul.f32 0.03125, %v2396_v28 }
0x158f   : > { %v2398_v30 = vsub.f32 %v2393_v25, %v2397_v29  ;;  %v2589_v25 = vrot.slane %v903_v48, %v1675_v31 }
0x1591   : > { %v2399_v22 = vmul.f32 %v2398_v30, %v2398_v30  ;;  %v2415_v50 = vmul.f32 %v2414_v47, %v2398_v30 }
0x1593   : > { %v2400_v32 = vsel %vm932_vm1, %v2399_v22, 0.0 }
0x1594   : > { %2401 = vadd.xlane.f32.xlu1 %v2400_v32 }
0x1621   : > { %v2402_v27 = vpop.xlane.xlu1 %2401 }
0x1622   : > { %v2403_v38 = vmul.f32 0.032258064, %v2402_v27 }
0x1624   : > { %3488 = vrsqrt.f32 %v2403_v38  ;;  %vm2406_vm6 = vcmp.eq.f32.partialorder %v2403_v38, inf  ;;  %v2409_v41 = vand.u32 2147483648, %v2403_v38  ;;  %vm2408_vm7 = vcmp.eq.f32.partialorder %v2403_v38, 0.0 }
0x162e   : > { %v3489_v40 = vpop.eup %3488 }
0x162f   : > { %v2405_v10 = vmul.f32 %v3489_v40, %v2403_v38 }
0x1631   : > { %v2407_v42 = vsel %vm2406_vm6, %v2403_v38, %v2405_v10 }
0x1632   : > { %v2410_v43 = vsel %vm2408_vm7, %v2409_v41, %v2407_v42 }
0x1633   : > { %v2416_v44 = vadd.f32 1e-06, %v2410_v43 }
0x1635   : > { %3490 = vrcp.f32 %v2416_v44 }
0x163f   : > { %v3491_v51 = vpop.eup %3490 }
0x1640   : > { %v2418_v52 = vmul.f32 %v3491_v51, %v2415_v50 }
0x1642   : > { %v2423_v53 = vadd.f32 %v2422_v49, %v2418_v52 }
0x1644   : > { %v2424_v45 = vpack.c.bf16 %v2423_v53, %v2423_v53 }
0x1646   : > { %3229 = vmatmul.mubr.msk.bf16.vlgmr.msra.gmra.mrb[56].mxu1 %vm932_vm1, %v2424_v45 }
0x1719   : > { %v2480_v57 = vpop.f32.mrb[56].mxu1 }
0x171a   : > { %v2481_v58 = vadd.f32 %v2985_v56, %v2480_v57  ;;  %v3230_v59 = vpop.f32.mrb[57].mxu1 }
0x171b   : > { %v2483_v60 = vpop.f32.mrb[58].mxu1 }
0x171c   : > { %v2486_v61 = vmax.f32 %v2481_v58, 0.0  ;;  %v3231_v9 = vpop.f32.mrb[59].mxu1 }
0x171e   : > { %v2487_v62 = vpack.c.bf16 %v2486_v61, %v2486_v61 }
0x1720   : > { %3241 = vmatmul.mubr.msk.bf16.vlgmr.msra.gmra.mrb[48].mxu0 %vm2516_vm8, %v2487_v62 }
0x17f3   : > { %v2554_v2 = vpop.f32.mrb[48].mxu0 }
0x17f4   : > { %v2555_v4 = vadd.f32 %v2554_v2, %v2491_v1  ;;  %v3242_v5 = vpop.f32.mrb[49].mxu0 }
0x17f5   : > { %v2557_v0 = vpop.f32.mrb[50].mxu0 }
0x17f6   : > { %v3243_v6 = vpop.f32.mrb[51].mxu0  ;;  %v2560_v7 = vadd.f32 %v2555_v4, %v2423_v53 }
0x17f8   : > { %v2561_v11 = vsel %vm932_vm1, %v2560_v7, 0.0 }
0x17f9   : > { %2562 = vadd.xlane.f32.xlu1 %v2561_v11 }
0x1886   : > { %v2563_v3 = vpop.xlane.xlu1 %2562 }
0x1887   : > { %v2564_v12 = vmul.f32 0.03125, %v2563_v3 }
0x1889   : > { %v2565_v13 = vsub.f32 %v2560_v7, %v2564_v12 }
0x188b   : > { %v2566_v14 = vmul.f32 %v2565_v13, %v2565_v13  ;;  %v2582_v26 = vmul.f32 %v2581_v24, %v2565_v13 }
0x188d   : > { %v2567_v15 = vsel %vm932_vm1, %v2566_v14, 0.0 }
0x188e   : > { %2568 = vadd.xlane.f32.xlu1 %v2567_v15 }
0x191b   : > { %v2569_v16 = vpop.xlane.xlu1 %2568 }
0x191c   : > { %v2570_v18 = vmul.f32 0.032258064, %v2569_v16 }
0x191e   : > { %3492 = vrsqrt.f32 %v2570_v18  ;;  %vm2573_vm9 = vcmp.eq.f32.partialorder %v2570_v18, inf  ;;  %v2576_v20 = vand.u32 2147483648, %v2570_v18  ;;  %vm2575_vm10 = vcmp.eq.f32.partialorder %v2570_v18, 0.0 }
0x1928   : > { %v3493_v17 = vpop.eup %3492 }
0x1929   : > { %v2572_v19 = vmul.f32 %v3493_v17, %v2570_v18 }
0x192b   : > { %v2574_v37 = vsel %vm2573_vm9, %v2570_v18, %v2572_v19 }
0x192c   : > { %v2577_v21 = vsel %vm2575_vm10, %v2576_v20, %v2574_v37 }
0x192d   : > { %v2583_v23 = vadd.f32 1e-06, %v2577_v21 }
0x192f   : > { %3494 = vrcp.f32 %v2583_v23 }
0x1939   : > { %v3495_v28 = vpop.eup %3494 }
0x193a   : > { %v2585_v29 = vmul.f32 %v3495_v28, %v2582_v26 }
0x193c   : > { %v2590_v30 = vadd.f32 %v2589_v25, %v2585_v29 }
0x193e   : > { %2591 = vst.msk [vmem:[%s871_s23] sm:$0xff] %vm932_vm1, %v2590_v30 }
0x193f   : > { %3944 = shalt.err (!%p3941_p4)
}
0x1940   : > { %s3945_s13 = scalar_lea.hbm %s5005_s20, 128  ;;  %s3949_s21 = scalar_lea.hbm %s5188_s0, 256 }
0x1941   : > { %p3946_p8 = scmp.ne.s32.totalorder %s5005_s20, %s3945_s13  ;;  %p3950_p10 = scmp.lt.u32.totalorder %s5005_s20, %s5188_s0 }
0x1942   : > { %p3951_p0 = scmp.lt.u32.totalorder %s3949_s21, %s3945_s13  ;;  %p3953_p7 = scmp.lt.u32.totalorder %s3945_s13, %s5005_s20 }
0x1943   : > { %p3947_p9 = pnand %p3946_p8, %p5189_p5 }
0x1944   : > { %p3952_p1 = por %p3951_p0, %p3950_p10 }
0x1945   : > { %p3948_p6 = pneg %p3947_p9 }
0x1946   : > { %p3954_p3 = por %p3953_p7, %p3952_p1 }
0x1948   : > { %p3955_p2 = pnand %p3954_p3, %p3948_p6 }
0x194a   : > { %3958 = shalt.err (!%p3955_p2)
}
0x194b   : > { %3290 = dma.vmem_to_hbm [thread:$0]  (%p5189_p5), %s5007_s17, 128, %s5005_s20, %s2593_s7  }
0x194c PF: > { %s5190_s25 = sld [smem:[#allocation36_spill]]  ;;  %s5191_s29 = sld [smem:[#allocation45_spill]] }
0x194d   : > { %s5192_s11 = sld [smem:[#allocation39_spill]] }
0x1952   : > { %s2619_s14 = sand.u32 1, %s5190_s25   ;;  %p5193_p12 = scmp.ne.s32.totalorder %s5191_s29, 0 }
0x1953   : > { %p5194_p11 = scmp.ge.s32.totalorder %s5192_s11, 2  ;;  %s2620_s2 = scalar_lea.sflag [#allocation4], %s2619_s14 }
0x1955   : > { %p3340_p13 = pnand %p5194_p11, %p5193_p12 }
0x1957   : > { %4016 = dma.done.wait (!%p3340_p13), %s2620_s2, 128  }
0x1958   : > { %4018 = vsyncadd (!%p3340_p13), %s2620_s2, 4294967168  ;;  %s44_s23 = sadd.s32 1, %s5192_s11   ;;  %s5195_s5 = sld [smem:[#allocation37_spill]] }
0x1959   : > { %p41_p4 = scmp.ge.s32.totalorder %s44_s23, 4   ;;  %s5196_s20 = sld [smem:[#allocation44_spill]] }
0x195a   : > { %s5197_s26 = sld [smem:[#allocation42_spill]]  ;;  %s5198_s18 = smov %s4025_s19 }
0x195b   : > { %s5200_s21 = smov %s4037_s22  ;;  %43 = sbr.rel (!%p41_p4) target bundleno = 32 (0x20), region = 241 }
0x195e   : > { %s5199_s19 = smov %s5195_s5 }
0x1960   : > { %s5201_s22 = smov %s5197_s26 }
0x1962   :  { %2625 = vsyncpa [#allocation3], 1 }
0x1963   :  { %2627 = vsyncpa [#allocation3 + $0x1], 1 }
0x1964   :  { %2628 = vsyncpa [#allocation6], 1 }
0x1965   :  { %2630 = vsyncpa [#allocation6 + $0x1], 1 }
0x1966   :  { %2631 = vsyncpa [#allocation9], 1 }
0x1967   :  { %2633 = vsyncpa [#allocation9 + $0x1], 1 }
0x1968   :  { %2634 = vsyncpa [#allocation12], 1 }
0x1969   :  { %2636 = vsyncpa [#allocation12 + $0x1], 1 }
0x196a   :  { %2637 = vsyncpa [#allocation15], 1 }
0x196b   :  { %2638 = vsyncpa [#allocation18], 1 }
0x196c   :  { %2639 = vsyncpa [#allocation21], 1 }
0x196d   :  { %2640 = vsyncpa [#allocation24], 1 }
0x196e   :  { %2641 = vsyncpa [#allocation4], 1 }
0x196f   :  { %2643 = vsyncpa [#allocation4 + $0x1], 1 }

// kernel: tpu_custom_call.1
= control target key start
LH: loop header
LB: loop body
LE: loop exit
PB: predicated region body
PF: predicated region fallthrough
CT: control target
= control target key end

     0   :  { %s5055_s0 = inlined_call_operand.hbm [shape: f32[2,8,32], index: 0, kind: input, shape index: {}]   ;;  %s5056_s1 = inlined_call_operand.hbm [shape: bf16[2,4,8,8], index: 1, kind: input, shape index: {}]   ;;  %s5057_s2 = inlined_call_operand.hbm [shape: bf16[2,4,8,8], index: 2, kind: input, shape index: {}]   ;;  %s5058_s3 = inlined_call_operand.hbm [shape: bf16[2,4,8,8], index: 3, kind: input, shape index: {}]   ;;  %s5059_s4 = inlined_call_operand.hbm [shape: bf16[2,4,8,8], index: 4, kind: input, shape index: {}]   ;;  %s5060_s5 = inlined_call_operand.hbm [shape: s8[2,8,8], index: 5, kind: input, shape index: {}]   ;;  %s5061_s6 = inlined_call_operand.hbm [shape: s8[2,8,8], index: 6, kind: input, shape index: {}]   ;;  %s5062_s7 = inlined_call_operand.hbm [shape: bf16[32,32], index: 7, kind: input, shape index: {}]   ;;  %s5063_s8 = inlined_call_operand.hbm [shape: bf16[32,32], index: 8, kind: input, shape index: {}]   ;;  %s5064_s9 = inlined_call_operand.hbm [shape: bf16[32,32], index: 9, kind: input, shape index: {}]   ;;  %s5065_s10 = inlined_call_operand.hbm [shape: bf16[32,32], index: 10, kind: input, shape index: {}]   ;;  %s5066_s11 = inlined_call_operand.hbm [shape: bf16[32,64], index: 11, kind: input, shape index: {}]   ;;  %s5067_s12 = inlined_call_operand.hbm [shape: f32[1,64], index: 12, kind: input, shape index: {}]   ;;  %s5068_s13 = inlined_call_operand.hbm [shape: bf16[64,32], index: 13, kind: input, shape index: {}]   ;;  %s5069_s14 = inlined_call_operand.hbm [shape: f32[11,32], index: 14, kind: input, shape index: {}]   ;;  %s5070_s15 = inlined_call_operand.hbm [shape: f32[2,8,32], index: 15, kind: output, shape index: {}]  }
   0x1   :  { %5111 = sst [smem:[#allocation46_spill]] %s5055_s0 }
   0x2   :  { %5112 = sst [smem:[#allocation47_spill]] %s5056_s1 }
   0x3   :  { %5113 = sst [smem:[#allocation48_spill]] %s5057_s2 }
   0x4   :  { %5114 = sst [smem:[#allocation49_spill]] %s5058_s3 }
   0x5   :  { %5115 = sst [smem:[#allocation50_spill]] %s5059_s4 }
   0x6   :  { %5116 = sst [smem:[#allocation51_spill]] %s5060_s5 }
   0x7   :  { %5117 = sst [smem:[#allocation52_spill]] %s5062_s7 }
   0x8   :  { %5118 = sst [smem:[#allocation53_spill]] %s5063_s8 }
   0x9   :  { %5119 = sst [smem:[#allocation54_spill]] %s5064_s9 }
   0xa   :  { %5120 = sst [smem:[#allocation55_spill]] %s5065_s10 }
   0xb   :  { %5121 = sst [smem:[#allocation56_spill]] %s5066_s11 }
   0xc   :  { %5122 = sst [smem:[#allocation57_spill]] %s5067_s12 }
   0xd   :  { %5123 = sst [smem:[#allocation58_spill]] %s5068_s13 }
   0xe   :  { %5124 = sst [smem:[#allocation59_spill]] %s5069_s14 }
   0xf   :  { %5125 = sst [smem:[#allocation60_spill]] %s5070_s15 }
  0x10   :  { %20 = vsyncpa [#allocation3], 0 }
  0x11   :  { %22 = vsyncpa [#allocation3 + $0x1], 0 }
  0x12   :  { %23 = vsyncpa [#allocation6], 0 }
  0x13   :  { %25 = vsyncpa [#allocation6 + $0x1], 0 }
  0x14   :  { %26 = vsyncpa [#allocation9], 0 }
  0x15   :  { %28 = vsyncpa [#allocation9 + $0x1], 0 }
  0x16   :  { %29 = vsyncpa [#allocation12], 0 }
  0x17   :  { %31 = vsyncpa [#allocation12 + $0x1], 0 }
  0x18   :  { %32 = vsyncpa [#allocation15], 0 }
  0x19   :  { %33 = vsyncpa [#allocation18], 0 }
  0x1a   :  { %34 = vsyncpa [#allocation21], 0 }
  0x1b   :  { %35 = vsyncpa [#allocation24], 0 }
  0x1c   :  { %36 = vsyncpa [#allocation4], 0 }
  0x1d   :  { %38 = vsyncpa [#allocation4 + $0x1], 0  ;;  %s4148_s18 = smov 0   ;;  %s4150_s19 = smov 0  }
  0x1e   :  { %s4152_s20 = smov 0   ;;  %s4154_s21 = smov 0  }
  0x1f   :  { %s4156_s22 = smov 0   ;;  %s4158_s23 = smov 0  }
  0x20 LB: > { %5126 = sst [smem:[#allocation36_spill]] %s4021_s18  ;;  %s4179_s24 = sadd.s32 4294967295, %s4041_s23   ;;  %s4041_s23 = sphi %s4158_s23, %s44_s23   ;;  %s4037_s22 = sphi %s4156_s22, %s5201_s22   ;;  %s4033_s21 = sphi %s4154_s21, %s5200_s21   ;;  %s4029_s20 = sphi %s4152_s20, %s5196_s20   ;;  %s4025_s19 = sphi %s4150_s19, %s5199_s19   ;;  %s4021_s18 = sphi %s4148_s18, %s5198_s18  }
  0x21   : > { %5127 = sst [smem:[#allocation37_spill]] %s4029_s20  ;;  %p2896_p0 = scmp.ge.s32.totalorder %s4041_s23, 1 }
  0x22   : > { %5128 = sst [smem:[#allocation38_spill]] %s4033_s21  ;;  %p5079_p1 = scmp.eq.s32.totalorder %s4179_s24, 0 }
  0x23   : > { %5129 = sst [smem:[#allocation39_spill]] %s4041_s23  ;;  %p445_p2 = scmp.lt.s32.totalorder %s4041_s23, 3 }
  0x24   : > { %5130 = sst [smem:[#allocation40_spill]] %s4179_s24  ;;  %s4043_s26 = smov [#allocation14]  }
  0x25   : > { %p4184_p3 = pnand %p2896_p0, %p445_p2  ;;  %s457_s27 = sshll.u32 %s4043_s26, 4  ;;  %s4188_s27 = int_to_ptr.vmem [resolvable:$true] %s457_s27 }
  0x26   : > { %s4044_s29 = smov [#allocation17]   ;;  %s4045_s16 = smov [#allocation20]  }
  0x27   : > { %s5131_s25 = scalar_select %p4184_p3, 1, 0 }
  0x28   : > { %p3292_p4 = pneg %p4184_p3  ;;  %s483_s30 = sshll.u32 %s4044_s29, 4  ;;  %s4199_s30 = int_to_ptr.vmem [resolvable:$true] %s483_s30 }
  0x29   : > { %5132 = sst [smem:[#allocation41_spill]] %s5131_s25  ;;  %s4201_s17 = sshll.u32 %s4045_s16, 4  ;;  %s510_s17 = int_to_ptr.vmem [resolvable:$true] %s4201_s17 }
  0x2a   : > { %p4195_p6 = pnand %p3292_p4, %p5079_p1  ;;  %s5134_s7 = sld [smem:[#allocation52_spill]] }
  0x2c   : > { %s5133_s28 = scalar_select %p4195_p6, 1, 0 }
  0x2d   : > { %p4211_p8 = pneg %p4195_p6 }
  0x2f   : > { %s5135_s2 = scalar_select %p4211_p8, 1, 0 }
  0x30   : > { %s3497_s21 = scalar_lea.hbm %s5134_s7, 256 }
  0x31   : > { %p3498_p7 = scmp.ne.s32.totalorder %s5134_s7, %s3497_s21  ;;  %p3504_p11 = scmp.lt.u32.totalorder %s3497_s21, %s5134_s7 }
  0x33   : > { %p3500_p9 = pnand %p4211_p8, %p3498_p7 }
  0x35   : > { %p3501_p10 = pneg %p3500_p9 }
  0x37   : > { %p3506_p12 = pnand %p3504_p11, %p3501_p10 }
  0x39   : > { %3509 = shalt.err (!%p3506_p12)
}
  0x3a   : > { %s3510_s4 = scalar_lea.vmem %s4188_s27, 256  ;;  %p3518_p4 = scmp.lt.s32.totalorder %s4188_s27, %s4188_s27 }
  0x3b   : > { %p3511_p13 = scmp.ne.s32.totalorder %s4188_s27, %s3510_s4  ;;  %p3519_p5 = scmp.lt.s32.totalorder %s3510_s4, %s3510_s4 }
  0x3d   : > { %p3513_p0 = pnand %p3511_p13, %p4211_p8  ;;  %p3520_p7 = por %p3519_p5, %p3518_p4 }
  0x3f   : > { %p3514_p2 = pneg %p3513_p0 }
  0x41   : > { %p3521_p9 = pnand %p3520_p7, %p3514_p2 }
  0x43   : > { %3524 = shalt.err (!%p3521_p9)
}
  0x44   : > { %s5081_s15 = smov 64   ;;  %s5083_s21 = smov 4  }
  0x45   : > { %3295 = dma.hbm_to_vmem [thread:$0]  (!%p4195_p6), %s5134_s7, 256, %s4188_s27, [#allocation15], %s5081_s15, %s5081_s15, %s5083_s21  }
  0x46   : > { %s5136_s9 = sld [smem:[#allocation54_spill]] }
  0x4c   : > { %s3525_s4 = scalar_lea.hbm %s5136_s9, 256 }
  0x4d   : > { %p3526_p5 = scmp.ne.s32.totalorder %s5136_s9, %s3525_s4  ;;  %p3532_p12 = scmp.lt.u32.totalorder %s3525_s4, %s5136_s9 }
  0x4f   : > { %p3528_p10 = pnand %p3526_p5, %p4211_p8 }
  0x51   : > { %p3529_p11 = pneg %p3528_p10 }
  0x53   : > { %p3534_p13 = pnand %p3532_p12, %p3529_p11 }
  0x55   : > { %3537 = shalt.err (!%p3534_p13)
}
  0x56   : > { %s3538_s27 = scalar_lea.vmem %s4199_s30, 256  ;;  %p3546_p7 = scmp.lt.s32.totalorder %s4199_s30, %s4199_s30 }
  0x57   : > { %p3539_p0 = scmp.ne.s32.totalorder %s4199_s30, %s3538_s27  ;;  %p3547_p9 = scmp.lt.s32.totalorder %s3538_s27, %s3538_s27 }
  0x59   : > { %p3541_p2 = pnand %p3539_p0, %p4211_p8  ;;  %p3548_p5 = por %p3547_p9, %p3546_p7 }
  0x5b   : > { %p3542_p4 = pneg %p3541_p2 }
  0x5d   : > { %p3549_p10 = pnand %p3548_p5, %p3542_p4 }
  0x5f   : > { %3552 = shalt.err (!%p3549_p10)
}
  0x60   : > { %3301 = dma.hbm_to_vmem [thread:$0]  (!%p4195_p6), %s5136_s9, 256, %s4199_s30, [#allocation18], %s5081_s15, %s5081_s15, %s5083_s21  }
  0x61   : > { %s5137_s11 = sld [smem:[#allocation56_spill]] }
  0x67   : > { %s3553_s25 = scalar_lea.hbm %s5137_s11, 256 }
  0x68   : > { %p3554_p11 = scmp.ne.s32.totalorder %s5137_s11, %s3553_s25  ;;  %p3560_p0 = scmp.lt.u32.totalorder %s3553_s25, %s5137_s11 }
  0x6a   : > { %p3556_p12 = pnand %p3554_p11, %p4211_p8 }
  0x6c   : > { %p3557_p13 = pneg %p3556_p12 }
  0x6e   : > { %p3562_p2 = pnand %p3560_p0, %p3557_p13 }
  0x70   : > { %3565 = shalt.err (!%p3562_p2)
}
  0x71   : > { %s3566_s27 = scalar_lea.vmem %s510_s17, 256  ;;  %p3574_p5 = scmp.lt.s32.totalorder %s510_s17, %s510_s17 }
  0x72   : > { %p3567_p4 = scmp.ne.s32.totalorder %s510_s17, %s3566_s27  ;;  %p3575_p10 = scmp.lt.s32.totalorder %s3566_s27, %s3566_s27 }
  0x74   : > { %p3569_p7 = pnand %p3567_p4, %p4211_p8  ;;  %p3576_p1 = por %p3575_p10, %p3574_p5 }
  0x76   : > { %p3570_p9 = pneg %p3569_p7 }
  0x78   : > { %p3577_p3 = pnand %p3576_p1, %p3570_p9 }
  0x7a   : > { %3580 = shalt.err (!%p3577_p3)
}
  0x7b   : > { %3307 = dma.hbm_to_vmem [thread:$0]  (!%p4195_p6), %s5137_s11, 256, %s510_s17, [#allocation21], %s5081_s15, %s5081_s15, %s5083_s21  }
  0x7c   : > { %s4048_s10 = smov [#allocation23]   ;;  %s5138_s13 = sld [smem:[#allocation58_spill]] }
  0x7d   : > { %s533_s12 = sshll.u32 %s4048_s10, 4  ;;  %s534_s12 = int_to_ptr.vmem [resolvable:$true] %s533_s12 }
  0x82   : > { %s3581_s26 = scalar_lea.hbm %s5138_s13, 512 }
  0x83   : > { %p3582_p1 = scmp.ne.s32.totalorder %s5138_s13, %s3581_s26  ;;  %p3588_p12 = scmp.lt.u32.totalorder %s3581_s26, %s5138_s13 }
  0x85   : > { %p3584_p3 = pnand %p3582_p1, %p4211_p8 }
  0x87   : > { %p3585_p11 = pneg %p3584_p3 }
  0x89   : > { %p3590_p13 = pnand %p3588_p12, %p3585_p11 }
  0x8b   : > { %3593 = shalt.err (!%p3590_p13)
}
  0x8c   : > { %s3594_s17 = scalar_lea.vmem %s534_s12, 512  ;;  %p3602_p7 = scmp.lt.s32.totalorder %s534_s12, %s534_s12 }
  0x8d   : > { %p3595_p0 = scmp.ne.s32.totalorder %s534_s12, %s3594_s17  ;;  %p3603_p9 = scmp.lt.s32.totalorder %s3594_s17, %s3594_s17 }
  0x8f   : > { %p3597_p2 = pnand %p3595_p0, %p4211_p8  ;;  %p3604_p5 = por %p3603_p9, %p3602_p7 }
  0x91   : > { %p3598_p4 = pneg %p3597_p2 }
  0x93   : > { %p3605_p10 = pnand %p3604_p5, %p3598_p4 }
  0x95   : > { %3608 = shalt.err (!%p3605_p10)
}
  0x96   : > { %3313 = dma.hbm_to_vmem [thread:$0]  (!%p4195_p6), %s5138_s13, 512, %s534_s12, [#allocation24], %s5081_s15, %s5081_s15, %s5083_s21  }
  0x97   : > { %s2895_s10 = sadd.s32 4294967294, %s4041_s23   ;;  %s56_s14 = sadd.s32 1, %s4037_s22 }
  0x98   : > { %p58_p1 = scmp.ge.s32.totalorder %s56_s14, 2  ;;  %s65_s25 = sadd.s32 1, %s4029_s20 }
  0x99   : > { %p72_p3 = scmp.ne.s32.totalorder %s4029_s20, %s4025_s19  ;;  %p73_p11 = scmp.eq.s32.totalorder %s4041_s23, 0 }
  0x9a   : > { %s5203_s14 = smov (%p58_p1, %s56_s14), 0  ;;  %p78_p13 = scmp.ne.s32.totalorder %s4025_s19, %s4021_s18 }
  0x9b   : > { %5139 = sst [smem:[#allocation42_spill]] %s5203_s14  ;;  %p4312_p12 = por %p73_p11, %p72_p3 }
  0x9c   : > { %s60_s12 = ssub.s32 %s4037_s22, %s5203_s14  ;;  %p432_p0 = scmp.eq.s32.totalorder %s4179_s24, 1 }
  0x9d   : > { %p63_p2 = scmp.eq.s32.totalorder %s60_s12, 0  ;;  %p5141_p4 = scmp.eq.s32.totalorder %s4179_s24, 0 }
  0x9e   : > { %p4327_p9 = por %p432_p0, %p72_p3  ;;  %p438_p5 = scmp.eq.s32.totalorder %s2895_s10, 1 }
  0x9f   : > { %p4323_p7 = por %p5141_p4, %p78_p13  ;;  %p3351_p1 = scmp.lt.s32.totalorder %s4041_s23, 2 }
  0xa0   : > { %s5143_s16 = scalar_select %p4327_p9, 1, 0 }
  0xa1   : > { %s5142_s29 = scalar_select %p4323_p7, 1, 0 }
  0xa2   : > { %5144 = sst [smem:[#allocation43_spill]] %s5143_s16  ;;  %p4334_p10 = por %p438_p5, %p78_p13 }
  0xa3   : > { %s4332_s4 = scalar_select %p63_p2, %s4029_s20, %s65_s25  }
  0xa4   : > { %s5146_s27 = scalar_select %p4334_p10, 1, 0 }
  0xa5   : > { %5145 = sst [smem:[#allocation44_spill]] %s4332_s4  ;;  %s4340_s17 = sand.u32 1, %s4029_s20  }
  0xa6   : > { %5147 = sst [smem:[#allocation45_spill]] %s5146_s27  ;;  %s4343_s30 = sand.u32 1, %s4041_s23  }
  0xa7   : > { %p4347_p11 = pnand %p3351_p1, %p4312_p12  ;;  %s4352_s10 = sshll.u32 %s4340_s17, 4 }
  0xa8   : > { %s4355_s25 = sshll.u32 %s4037_s22, 8  ;;  %s5149_s1 = sld [smem:[#allocation47_spill]] }
  0xa9   : > { %s5148_s0 = scalar_select %p4347_p11, 1, 0 }
  0xaa   : > { %s583_s26 = scalar_lea.vmem [#allocation5], %s4352_s10  ;;  %p4371_p12 = pneg %p4347_p11 }
  0xab   : > { %s590_s7 = sshll.u32 %s583_s26, 4  ;;  %s4364_s7 = int_to_ptr.vmem [resolvable:$true] %s590_s7 }
  0xac   : > { %s5150_s13 = scalar_select %p4371_p12, 1, 0 }
  0xae   : > { %s4361_s21 = scalar_lea.hbm %s5149_s1, %s4355_s25  ;;  %s3614_s14 = scalar_lea.hbm %s5149_s1, 512 }
  0xaf   : > { %s3609_s11 = scalar_lea.hbm %s4361_s21, 256  ;;  %p3615_p2 = scmp.lt.u32.totalorder %s4361_s21, %s5149_s1 }
  0xb0   : > { %p3610_p3 = scmp.ne.s32.totalorder %s4361_s21, %s3609_s11  ;;  %p3616_p4 = scmp.lt.u32.totalorder %s3614_s14, %s3609_s11 }
  0xb1   : > { %p3618_p1 = scmp.lt.u32.totalorder %s3609_s11, %s4361_s21 }
  0xb2   : > { %p3612_p13 = pnand %p4371_p12, %p3610_p3  ;;  %p3617_p5 = por %p3616_p4, %p3615_p2 }
  0xb4   : > { %p3613_p0 = pneg %p3612_p13  ;;  %p3619_p10 = por %p3618_p1, %p3617_p5 }
  0xb6   : > { %p3620_p9 = pnand %p3619_p10, %p3613_p0 }
  0xb8   : > { %3623 = shalt.err (!%p3620_p9)
}
  0xb9   : > { %s3624_s9 = scalar_lea.vmem %s4364_s7, 256  ;;  %s4049_s15 = smov [#allocation5]  }
  0xba   : > { %p3625_p3 = scmp.ne.s32.totalorder %s4364_s7, %s3624_s9  ;;  %s3629_s12 = sshll.u32 %s4049_s15, 4  ;;  %s3630_s12 = int_to_ptr.vmem [resolvable:$false] %s3629_s12 }
  0xbb   : > { %s3631_s4 = scalar_lea.vmem %s3630_s12, 512  ;;  %p3632_p6 = scmp.lt.s32.totalorder %s4364_s7, %s3630_s12 }
  0xbc   : > { %p3627_p13 = pnand %p3625_p3, %p4371_p12  ;;  %p3633_p8 = scmp.lt.s32.totalorder %s3631_s4, %s3624_s9 }
  0xbe   : > { %p3628_p7 = pneg %p3627_p13  ;;  %p3634_p2 = por %p3633_p8, %p3632_p6 }
  0xc0   : > { %p3635_p4 = pnand %p3634_p2, %p3628_p7 }
  0xc2   : > { %3638 = shalt.err (!%p3635_p4)
}
  0xc3   : > { %s5151_s11 = smov 4   ;;  %s5152_s14 = smov 64  }
  0xc4   : > { %s5153_s26 = scalar_lea.sflag [#allocation6], %s4343_s30  ;;  %s5154_s3 = sld [smem:[#allocation49_spill]] }
  0xc5   : > { %3323 = dma.hbm_to_vmem [thread:$0]  (!%p4347_p11), %s4361_s21, 256, %s4364_s7, %s5153_s26, %s5152_s14, %s5152_s14, %s5151_s11  }
  0xc6   : > { %s625_s4 = scalar_lea.vmem [#allocation8], %s4352_s10  ;;  %s5097_s20 = sshll.u32 %s4340_s17, 1 }
  0xc7   : > { %s632_s1 = sshll.u32 %s625_s4, 4  ;;  %s5096_s23 = scalar_lea.sflag [#allocation9], %s4343_s30  ;;  %s4406_s1 = int_to_ptr.vmem [resolvable:$true] %s632_s1 }
  0xca   : > { %s4403_s12 = scalar_lea.hbm %s5154_s3, %s4355_s25  ;;  %s3644_s26 = scalar_lea.hbm %s5154_s3, 512 }
  0xcb   : > { %s3639_s27 = scalar_lea.hbm %s4403_s12, 256  ;;  %p3645_p9 = scmp.lt.u32.totalorder %s4403_s12, %s5154_s3 }
  0xcc   : > { %p3640_p6 = scmp.ne.s32.totalorder %s4403_s12, %s3639_s27  ;;  %p3646_p10 = scmp.lt.u32.totalorder %s3644_s26, %s3639_s27 }
  0xcd   : > { %p3648_p5 = scmp.lt.u32.totalorder %s3639_s27, %s4403_s12 }
  0xce   : > { %p3642_p8 = pnand %p3640_p6, %p4371_p12  ;;  %p3647_p0 = por %p3646_p10, %p3645_p9 }
  0xd0   : > { %p3643_p7 = pneg %p3642_p8  ;;  %p3649_p1 = por %p3648_p5, %p3647_p0 }
  0xd2   : > { %p3650_p3 = pnand %p3649_p1, %p3643_p7 }
  0xd4   : > { %3653 = shalt.err (!%p3650_p3)
}
  0xd5   : > { %s3654_s4 = scalar_lea.vmem %s4406_s1, 256  ;;  %s4050_s7 = smov [#allocation8]  }
  0xd6   : > { %p3655_p13 = scmp.ne.s32.totalorder %s4406_s1, %s3654_s4  ;;  %s3659_s21 = sshll.u32 %s4050_s7, 4  ;;  %s3660_s21 = int_to_ptr.vmem [resolvable:$false] %s3659_s21 }
  0xd7   : > { %s3661_s15 = scalar_lea.vmem %s3660_s21, 512  ;;  %p3662_p6 = scmp.lt.s32.totalorder %s4406_s1, %s3660_s21 }
  0xd8   : > { %p3657_p2 = pnand %p3655_p13, %p4371_p12  ;;  %p3663_p8 = scmp.lt.s32.totalorder %s3661_s15, %s3654_s4 }
  0xda   : > { %p3658_p4 = pneg %p3657_p2  ;;  %p3664_p9 = por %p3663_p8, %p3662_p6 }
  0xdc   : > { %p3665_p10 = pnand %p3664_p9, %p3658_p4 }
  0xde   : > { %3668 = shalt.err (!%p3665_p10)
}
  0xdf   : > { %3329 = dma.hbm_to_vmem [thread:$0]  (!%p4347_p11), %s4403_s12, 256, %s4406_s1, %s5096_s23, %s5152_s14, %s5152_s14, %s5151_s11  }
  0xe0   : > { %s5098_s27 = sshll.u32 %s4037_s22, 5  ;;  %s5155_s5 = sld [smem:[#allocation51_spill]] }
  0xe1   : > { %s667_s7 = scalar_lea.vmem [#allocation11], %s5097_s20  ;;  %s5108_s15 = scalar_lea.sflag [#allocation12], %s4343_s30 }
  0xe2   : > { %s675_s21 = sshll.u32 %s667_s7, 4  ;;  %s676_s21 = int_to_ptr.vmem [resolvable:$true] %s675_s21 }
  0xe6   : > { %s4442_s4 = scalar_lea.hbm %s5155_s5, %s5098_s27  ;;  %s3674_s26 = scalar_lea.hbm %s5155_s5, 64 }
  0xe7   : > { %s3669_s3 = scalar_lea.hbm %s4442_s4, 32  ;;  %p3675_p1 = scmp.lt.u32.totalorder %s4442_s4, %s5155_s5 }
  0xe8   : > { %p3670_p7 = scmp.ne.s32.totalorder %s4442_s4, %s3669_s3  ;;  %p3676_p3 = scmp.lt.u32.totalorder %s3674_s26, %s3669_s3 }
  0xe9   : > { %p3678_p2 = scmp.lt.u32.totalorder %s3669_s3, %s4442_s4 }
  0xea   : > { %p3672_p0 = pnand %p3670_p7, %p4371_p12  ;;  %p3677_p13 = por %p3676_p3, %p3675_p1 }
  0xec   : > { %p3673_p5 = pneg %p3672_p0  ;;  %p3679_p4 = por %p3678_p2, %p3677_p13 }
  0xee   : > { %p3680_p6 = pnand %p3679_p4, %p3673_p5 }
  0xf0   : > { %3683 = shalt.err (!%p3680_p6)
}
  0xf1   : > { %s3684_s7 = scalar_lea.vmem %s676_s21, 32  ;;  %s4051_s20 = smov [#allocation11]  }
  0xf2   : > { %p3685_p8 = scmp.ne.s32.totalorder %s676_s21, %s3684_s7  ;;  %s3689_s27 = sshll.u32 %s4051_s20, 4  ;;  %s3690_s27 = int_to_ptr.vmem [resolvable:$false] %s3689_s27 }
  0xf3   : > { %s3691_s1 = scalar_lea.vmem %s3690_s27, 64  ;;  %p3692_p7 = scmp.lt.s32.totalorder %s676_s21, %s3690_s27 }
  0xf4   : > { %p3687_p9 = pnand %p3685_p8, %p4371_p12  ;;  %p3693_p0 = scmp.lt.s32.totalorder %s3691_s1, %s3684_s7 }
  0xf6   : > { %p3688_p10 = pneg %p3687_p9  ;;  %p3694_p11 = por %p3693_p0, %p3692_p7 }
  0xf8   : > { %p3695_p1 = pnand %p3694_p11, %p3688_p10 }
  0xfa   : > { %3698 = shalt.err (!%p3695_p1)
}
  0xfb   : > { %p5156_p3 = scmp.ne.s32.totalorder %s5148_s0, 0  ;;  %s5157_s3 = sshll.u32 %s4037_s22, 5 }
  0xfc   : > { %s4471_s20 = scalar_lea.hbm %s5061_s6, %s5157_s3  ;;  %s4052_s26 = smov [#allocation16]  }
  0xfd   : > { %3335 = dma.hbm_to_vmem [thread:$0]  (!%p5156_p3), %s4442_s4, 32, %s676_s21, %s5108_s15  }
  0xfe   : > { %s470_s27 = sshll.u32 %s4052_s26, 4  ;;  %s4053_s9 = smov [#allocation19]   ;;  %s471_s27 = int_to_ptr.vmem [resolvable:$true] %s470_s27 }
  0xff   : > { %s496_s7 = sshll.u32 %s4053_s9, 4  ;;  %s5158_s8 = sld [smem:[#allocation53_spill]]  ;;  %s497_s7 = int_to_ptr.vmem [resolvable:$true] %s496_s7 }
 0x100   : > { %p5159_p5 = scmp.ne.s32.totalorder %s5135_s2, 0 }
 0x105   : > { %s3699_s18 = scalar_lea.hbm %s5158_s8, 256 }
 0x106   : > { %p3700_p11 = scmp.ne.s32.totalorder %s5158_s8, %s3699_s18  ;;  %p3706_p4 = scmp.lt.u32.totalorder %s3699_s18, %s5158_s8 }
 0x108   : > { %p3702_p13 = pnand %p3700_p11, %p5159_p5 }
 0x10a   : > { %p3703_p2 = pneg %p3702_p13 }
 0x10c   : > { %p3708_p6 = pnand %p3706_p4, %p3703_p2 }
 0x10e   : > { %3711 = shalt.err (!%p3708_p6)
}
 0x10f   : > { %s3712_s3 = scalar_lea.vmem %s471_s27, 256  ;;  %p3720_p7 = scmp.lt.s32.totalorder %s471_s27, %s471_s27 }
 0x110   : > { %p3713_p8 = scmp.ne.s32.totalorder %s471_s27, %s3712_s3  ;;  %p3721_p0 = scmp.lt.s32.totalorder %s3712_s3, %s3712_s3 }
 0x112   : > { %p3715_p9 = pnand %p3713_p8, %p5159_p5  ;;  %p3722_p1 = por %p3721_p0, %p3720_p7 }
 0x114   : > { %p3716_p10 = pneg %p3715_p9 }
 0x116   : > { %p3723_p3 = pnand %p3722_p1, %p3716_p10 }
 0x118   : > { %3726 = shalt.err (!%p3723_p3)
}
 0x119   : > { %p5160_p11 = scmp.ne.s32.totalorder %s5133_s28, 0  ;;  %s5161_s23 = sld [smem:[#allocation55_spill]] }
 0x11b   : > { %3298 = dma.hbm_to_vmem [thread:$0]  (!%p5160_p11), %s5158_s8, 256, %s471_s27, [#allocation15], %s5152_s14, %s5152_s14, %s5151_s11  }
 0x11f   : > { %s5162_s12 = smov %s5161_s23  ;;  %s3727_s26 = scalar_lea.hbm %s5161_s23, 256 }
 0x120   : > { %p3728_p13 = scmp.ne.s32.totalorder %s5162_s12, %s3727_s26  ;;  %p3734_p4 = scmp.lt.u32.totalorder %s3727_s26, %s5162_s12 }
 0x122   : > { %p3730_p3 = pnand %p3728_p13, %p5159_p5 }
 0x124   : > { %p3731_p2 = pneg %p3730_p3 }
 0x126   : > { %p3736_p6 = pnand %p3734_p4, %p3731_p2 }
 0x128   : > { %3739 = shalt.err (!%p3736_p6)
}
 0x129   : > { %s3740_s3 = scalar_lea.vmem %s497_s7, 256  ;;  %p3748_p7 = scmp.lt.s32.totalorder %s497_s7, %s497_s7 }
 0x12a   : > { %p3741_p8 = scmp.ne.s32.totalorder %s497_s7, %s3740_s3  ;;  %p3749_p0 = scmp.lt.s32.totalorder %s3740_s3, %s3740_s3 }
 0x12c   : > { %p3743_p9 = pnand %p3741_p8, %p5159_p5  ;;  %p3750_p1 = por %p3749_p0, %p3748_p7 }
 0x12e   : > { %p3744_p10 = pneg %p3743_p9 }
 0x130   : > { %p3751_p12 = pnand %p3750_p1, %p3744_p10 }
 0x132   : > { %3754 = shalt.err (!%p3751_p12)
}
 0x133   : > { %3304 = dma.hbm_to_vmem [thread:$0]  (!%p5160_p11), %s5162_s12, 256, %s497_s7, [#allocation18], %s5152_s14, %s5152_s14, %s5151_s11  }
 0x134   : > { %s4054_s18 = smov [#allocation22]   ;;  %s4055_s16 = smov [#allocation25]  }
 0x135   : > { %s523_s24 = sshll.u32 %s4054_s18, 4  ;;  %s546_s23 = sshll.u32 %s4055_s16, 4  ;;  %s524_s24 = int_to_ptr.vmem [resolvable:$true] %s523_s24  ;;  %s547_s23 = int_to_ptr.vmem [resolvable:$true] %s546_s23 }
 0x136   : > { %s5163_s1 = sld [smem:[#allocation57_spill]] }
 0x13c   : > { %s3755_s4 = scalar_lea.hbm %s5163_s1, 16 }
 0x13d   : > { %p3756_p12 = scmp.ne.s32.totalorder %s5163_s1, %s3755_s4  ;;  %p3762_p2 = scmp.lt.u32.totalorder %s3755_s4, %s5163_s1 }
 0x13f   : > { %p3758_p13 = pnand %p3756_p12, %p5159_p5 }
 0x141   : > { %p3759_p3 = pneg %p3758_p13 }
 0x143   : > { %p3764_p4 = pnand %p3762_p2, %p3759_p3 }
 0x145   : > { %3767 = shalt.err (!%p3764_p4)
}
 0x146   : > { %s3768_s7 = scalar_lea.vmem %s524_s24, 16  ;;  %s3775_s5 = scalar_lea.vmem %s524_s24, 32 }
 0x147   : > { %p3769_p6 = scmp.ne.s32.totalorder %s524_s24, %s3768_s7  ;;  %p3776_p10 = scmp.lt.s32.totalorder %s524_s24, %s524_s24 }
 0x148   : > { %p3777_p7 = scmp.lt.s32.totalorder %s3775_s5, %s3768_s7 }
 0x149   : > { %p3771_p8 = pnand %p3769_p6, %p5159_p5 }
 0x14a   : > { %p3778_p0 = por %p3777_p7, %p3776_p10 }
 0x14b   : > { %p3772_p9 = pneg %p3771_p8 }
 0x14d   : > { %p3779_p1 = pnand %p3778_p0, %p3772_p9 }
 0x14f   : > { %3782 = shalt.err (!%p3779_p1)
}
 0x150   : > { %3310 = dma.hbm_to_vmem [thread:$0]  (!%p5160_p11), %s5163_s1, 16, %s524_s24, [#allocation21]  }
 0x151   : > { %s5164_s9 = sld [smem:[#allocation59_spill]] }
 0x157   : > { %s3783_s4 = scalar_lea.hbm %s5164_s9, 256 }
 0x158   : > { %p3784_p12 = scmp.ne.s32.totalorder %s5164_s9, %s3783_s4  ;;  %p3790_p2 = scmp.lt.u32.totalorder %s3783_s4, %s5164_s9 }
 0x15a   : > { %p3786_p13 = pnand %p3784_p12, %p5159_p5 }
 0x15c   : > { %p3787_p3 = pneg %p3786_p13 }
 0x15e   : > { %p3792_p4 = pnand %p3790_p2, %p3787_p3 }
 0x160   : > { %3795 = shalt.err (!%p3792_p4)
}
 0x161   : > { %s3796_s5 = scalar_lea.vmem %s547_s23, 256  ;;  %p3804_p10 = scmp.lt.s32.totalorder %s547_s23, %s547_s23 }
 0x162   : > { %p3797_p6 = scmp.ne.s32.totalorder %s547_s23, %s3796_s5  ;;  %p3805_p7 = scmp.lt.s32.totalorder %s3796_s5, %s3796_s5 }
 0x164   : > { %p3799_p8 = pnand %p3797_p6, %p5159_p5  ;;  %p3806_p0 = por %p3805_p7, %p3804_p10 }
 0x166   : > { %p3800_p9 = pneg %p3799_p8 }
 0x168   : > { %p3807_p1 = pnand %p3806_p0, %p3800_p9 }
 0x16a   : > { %3810 = shalt.err (!%p3807_p1)
}
 0x16b   : > { %s4056_s24 = smov 128   ;;  %s4057_s18 = smov 8  }
 0x16c   : > { %3316 = dma.hbm_to_vmem [thread:$0]  (!%p5160_p11), %s5164_s9, 256, %s547_s23, [#allocation24], %s4056_s24, %s4056_s24, %s4057_s18  }
 0x16d   : > { %s2906_s2 = sshll.u32 %s4340_s17, 3  ;;  %s2907_s26 = sshll.u32 %s4037_s22, 7 }
 0x16e   : > { %s5165_s3 = sld [smem:[#allocation46_spill]]  ;;  %s564_s7 = scalar_lea.vmem [#allocation2], %s2906_s2 }
 0x16f   : > { %s572_s5 = sshll.u32 %s564_s7, 4  ;;  %s5166_s8 = sld [smem:[#allocation48_spill]]  ;;  %s4558_s5 = int_to_ptr.vmem [resolvable:$true] %s572_s5 }
 0x170   : > { %s561_s23 = scalar_lea.sflag [#allocation3], %s4340_s17  ;;  %p5167_p11 = scmp.ne.s32.totalorder %s5150_s13, 0 }
 0x174   : > { %s4556_s27 = scalar_lea.hbm %s5165_s3, %s2907_s26  ;;  %s3816_s26 = scalar_lea.hbm %s5165_s3, 256 }
 0x175   : > { %s4564_s16 = scalar_lea.hbm %s5166_s8, %s4355_s25  ;;  %s3811_s24 = scalar_lea.hbm %s4556_s27, 128 }
 0x176   : > { %p3812_p5 = scmp.ne.s32.totalorder %s4556_s27, %s3811_s24  ;;  %p3817_p3 = scmp.lt.u32.totalorder %s4556_s27, %s5165_s3 }
 0x177   : > { %p3818_p2 = scmp.lt.u32.totalorder %s3816_s26, %s3811_s24  ;;  %p3820_p6 = scmp.lt.u32.totalorder %s3811_s24, %s4556_s27 }
 0x178   : > { %p3814_p12 = pnand %p3812_p5, %p5167_p11 }
 0x179   : > { %p3819_p4 = por %p3818_p2, %p3817_p3 }
 0x17a   : > { %p3815_p13 = pneg %p3814_p12 }
 0x17b   : > { %p3821_p8 = por %p3820_p6, %p3819_p4 }
 0x17d   : > { %p3822_p9 = pnand %p3821_p8, %p3815_p13 }
 0x17f   : > { %3825 = shalt.err (!%p3822_p9)
}
 0x180   : > { %s3826_s1 = scalar_lea.vmem %s4558_s5, 128  ;;  %s4058_s21 = smov [#allocation2]  }
 0x181   : > { %p3827_p10 = scmp.ne.s32.totalorder %s4558_s5, %s3826_s1  ;;  %s3831_s7 = sshll.u32 %s4058_s21, 4  ;;  %s3832_s7 = int_to_ptr.vmem [resolvable:$false] %s3831_s7 }
 0x182   : > { %s3833_s28 = scalar_lea.vmem %s3832_s7, 256  ;;  %p3834_p1 = scmp.lt.s32.totalorder %s4558_s5, %s3832_s7 }
 0x183   : > { %p3829_p7 = pnand %p3827_p10, %p5167_p11  ;;  %p3835_p5 = scmp.lt.s32.totalorder %s3833_s28, %s3826_s1 }
 0x185   : > { %p3830_p0 = pneg %p3829_p7  ;;  %p3836_p12 = por %p3835_p5, %p3834_p1 }
 0x187   : > { %p3837_p3 = pnand %p3836_p12, %p3830_p0 }
 0x189   : > { %3840 = shalt.err (!%p3837_p3)
}
 0x18a   : > { %p5168_p13 = scmp.ne.s32.totalorder %s5148_s0, 0  ;;  %s604_s24 = scalar_lea.vmem [#allocation7], %s4352_s10 }
 0x18b   : > { %s611_s18 = sshll.u32 %s604_s24, 4  ;;  %s5169_s4 = sld [smem:[#allocation50_spill]]  ;;  %s4589_s18 = int_to_ptr.vmem [resolvable:$true] %s611_s18 }
 0x18c   : > { %3320 = dma.hbm_to_vmem [thread:$0]  (!%p5168_p13), %s4556_s27, 128, %s4558_s5, %s561_s23  }
 0x18d   : > { %s3841_s1 = scalar_lea.hbm %s4564_s16, 256  ;;  %s3846_s28 = scalar_lea.hbm %s5166_s8, 512 }
 0x18e   : > { %p3842_p2 = scmp.ne.s32.totalorder %s4564_s16, %s3841_s1  ;;  %p3847_p8 = scmp.lt.u32.totalorder %s4564_s16, %s5166_s8 }
 0x18f   : > { %p3848_p9 = scmp.lt.u32.totalorder %s3846_s28, %s3841_s1  ;;  %p3850_p7 = scmp.lt.u32.totalorder %s3841_s1, %s4564_s16 }
 0x190   : > { %p3844_p4 = pnand %p3842_p2, %p5167_p11 }
 0x191   : > { %s4595_s2 = scalar_lea.hbm %s5169_s4, %s4355_s25  ;;  %p3849_p10 = por %p3848_p9, %p3847_p8 }
 0x192   : > { %p3845_p6 = pneg %p3844_p4 }
 0x193   : > { %p3851_p0 = por %p3850_p7, %p3849_p10 }
 0x195   : > { %p3852_p1 = pnand %p3851_p0, %p3845_p6 }
 0x197   : > { %3855 = shalt.err (!%p3852_p1)
}
 0x198   : > { %s3856_s25 = scalar_lea.vmem %s4589_s18, 256  ;;  %s4059_s5 = smov [#allocation7]  }
 0x199   : > { %p3857_p5 = scmp.ne.s32.totalorder %s4589_s18, %s3856_s25  ;;  %s3861_s23 = sshll.u32 %s4059_s5, 4  ;;  %s3862_s23 = int_to_ptr.vmem [resolvable:$false] %s3861_s23 }
 0x19a   : > { %s3863_s3 = scalar_lea.vmem %s3862_s23, 512  ;;  %p3864_p2 = scmp.lt.s32.totalorder %s4589_s18, %s3862_s23 }
 0x19b   : > { %p3859_p12 = pnand %p3857_p5, %p5167_p11  ;;  %p3865_p4 = scmp.lt.s32.totalorder %s3863_s3, %s3856_s25 }
 0x19d   : > { %p3860_p3 = pneg %p3859_p12  ;;  %p3866_p8 = por %p3865_p4, %p3864_p2 }
 0x19f   : > { %p3867_p9 = pnand %p3866_p8, %p3860_p3 }
 0x1a1   : > { %3870 = shalt.err (!%p3867_p9)
}
 0x1a2   : > { %s5170_s24 = scalar_lea.sflag [#allocation6], %s4343_s30  ;;  %s646_s15 = scalar_lea.vmem [#allocation10], %s4352_s10 }
 0x1a3   : > { %3326 = dma.hbm_to_vmem [thread:$0]  (!%p5168_p13), %s4564_s16, 256, %s4589_s18, %s5170_s24, %s5152_s14, %s5152_s14, %s5151_s11  }
 0x1a4   : > { %s653_s26 = sshll.u32 %s646_s15, 4  ;;  %s5171_s1 = sshll.u32 %s4340_s17, 1  ;;  %s4626_s26 = int_to_ptr.vmem [resolvable:$true] %s653_s26 }
 0x1a5   : > { %s686_s21 = scalar_lea.vmem [#allocation13], %s5171_s1  ;;  %s3871_s28 = scalar_lea.hbm %s4595_s2, 256 }
 0x1a6   : > { %s694_s7 = sshll.u32 %s686_s21, 4  ;;  %p3872_p6 = scmp.ne.s32.totalorder %s4595_s2, %s3871_s28  ;;  %s4628_s7 = int_to_ptr.vmem [resolvable:$true] %s694_s7 }
 0x1a7   : > { %s3876_s5 = scalar_lea.hbm %s5169_s4, 512  ;;  %p3877_p0 = scmp.lt.u32.totalorder %s4595_s2, %s5169_s4 }
 0x1a8   : > { %p3874_p10 = pnand %p3872_p6, %p5167_p11  ;;  %p3878_p1 = scmp.lt.u32.totalorder %s3876_s5, %s3871_s28 }
 0x1a9   : > { %p3880_p12 = scmp.lt.u32.totalorder %s3871_s28, %s4595_s2 }
 0x1aa   : > { %p3875_p7 = pneg %p3874_p10  ;;  %p3879_p5 = por %p3878_p1, %p3877_p0 }
 0x1ac   : > { %p3881_p3 = por %p3880_p12, %p3879_p5 }
 0x1ae   : > { %p3882_p2 = pnand %p3881_p3, %p3875_p7 }
 0x1b0   : > { %3885 = shalt.err (!%p3882_p2)
}
 0x1b1   : > { %s3886_s17 = scalar_lea.vmem %s4626_s26, 256  ;;  %s4060_s10 = smov [#allocation10]  }
 0x1b2   : > { %p3887_p4 = scmp.ne.s32.totalorder %s4626_s26, %s3886_s17  ;;  %s3891_s18 = sshll.u32 %s4060_s10, 4  ;;  %s3892_s18 = int_to_ptr.vmem [resolvable:$false] %s3891_s18 }
 0x1b3   : > { %s3893_s3 = scalar_lea.vmem %s3892_s18, 512  ;;  %p3894_p6 = scmp.lt.s32.totalorder %s4626_s26, %s3892_s18 }
 0x1b4   : > { %p3889_p8 = pnand %p3887_p4, %p5167_p11  ;;  %p3895_p10 = scmp.lt.s32.totalorder %s3893_s3, %s3886_s17 }
 0x1b6   : > { %p3890_p9 = pneg %p3889_p8  ;;  %p3896_p0 = por %p3895_p10, %p3894_p6 }
 0x1b8   : > { %p3897_p1 = pnand %p3896_p0, %p3890_p9 }
 0x1ba   : > { %3900 = shalt.err (!%p3897_p1)
}
 0x1bb   : > { %s5172_s24 = scalar_lea.sflag [#allocation9], %s4343_s30  ;;  %s3901_s15 = scalar_lea.hbm %s4471_s20, 32 }
 0x1bc   : > { %3332 = dma.hbm_to_vmem [thread:$0]  (!%p5168_p13), %s4595_s2, 256, %s4626_s26, %s5172_s24, %s5152_s14, %s5152_s14, %s5151_s11  }
 0x1bd   : > { %p3902_p7 = scmp.ne.s32.totalorder %s4471_s20, %s3901_s15  ;;  %s3906_s28 = scalar_lea.hbm %s5061_s6, 64 }
 0x1be   : > { %p3907_p3 = scmp.lt.u32.totalorder %s4471_s20, %s5061_s6  ;;  %p3908_p2 = scmp.lt.u32.totalorder %s3906_s28, %s3901_s15 }
 0x1bf   : > { %p3904_p5 = pnand %p3902_p7, %p5167_p11  ;;  %p3910_p8 = scmp.lt.u32.totalorder %s3901_s15, %s4471_s20 }
 0x1c0   : > { %p3909_p4 = por %p3908_p2, %p3907_p3 }
 0x1c1   : > { %p3905_p12 = pneg %p3904_p5 }
 0x1c2   : > { %p3911_p9 = por %p3910_p8, %p3909_p4 }
 0x1c4   : > { %p3912_p6 = pnand %p3911_p9, %p3905_p12 }
 0x1c6   : > { %3915 = shalt.err (!%p3912_p6)
}
 0x1c7   : > { %s3916_s11 = scalar_lea.vmem %s4628_s7, 32  ;;  %s4061_s14 = smov [#allocation13]  }
 0x1c8   : > { %p3917_p10 = scmp.ne.s32.totalorder %s4628_s7, %s3916_s11  ;;  %s3921_s2 = sshll.u32 %s4061_s14, 4  ;;  %s3922_s2 = int_to_ptr.vmem [resolvable:$false] %s3921_s2 }
 0x1c9   : > { %s3923_s26 = scalar_lea.vmem %s3922_s2, 64  ;;  %p3924_p7 = scmp.lt.s32.totalorder %s4628_s7, %s3922_s2 }
 0x1ca   : > { %p3919_p0 = pnand %p3917_p10, %p5167_p11  ;;  %p3925_p5 = scmp.lt.s32.totalorder %s3923_s26, %s3916_s11 }
 0x1cc   : > { %p3920_p1 = pneg %p3919_p0  ;;  %p3926_p3 = por %p3925_p5, %p3924_p7 }
 0x1ce   : > { %p3927_p2 = pnand %p3926_p3, %p3920_p1 }
 0x1d0   : > { %3930 = shalt.err (!%p3927_p2)
}
 0x1d1   : > { %s5173_s5 = scalar_lea.sflag [#allocation12], %s4343_s30  ;;  %s5174_s23 = sld [smem:[#allocation41_spill]] }
 0x1d2   : > { %3338 = dma.hbm_to_vmem [thread:$0]  (!%p5168_p13), %s4471_s20, 32, %s4628_s7, %s5173_s5  }
 0x1d7   : > { %p5175_p12 = scmp.ne.s32.totalorder %s5174_s23, 0 }
 0x1d8   : > { %s4682_s13 = sand.u32 (!%p5175_p12), 1, %s4025_s19   ;;  %p5176_p11 = scmp.ne.s32.totalorder (!%p5175_p12), %s5142_s29, 0 }
 0x1d9   : > { %703 = sbr.rel (%p5175_p12) target bundleno = 6476 (0x194c), region = 80  ;;  %s2925_s16 = sshll.u32 (!%p5175_p12), %s4682_s13, 3 }
 0x1da   : > { %s706_s17 = scalar_lea.sflag (!%p5175_p12), [#allocation3], %s4682_s13  ;;  %s4688_s10 = scalar_lea.vmem (!%p5175_p12), [#allocation2], %s2925_s16 }
 0x1e0   : > { %3984 = dma.done.wait (%p5176_p11), %s706_s17, 128  }
 0x1e1   : > { %3986 = vsyncadd (%p5176_p11), %s706_s17, 4294967168  ;;  %s5177_s30 = sld [smem:[#allocation40_spill]]  ;;  %s2926_s20 = sshll.u32 %s4682_s13, 4 }
 0x1e2   : > { %s4696_s18 = scalar_lea.vmem [#allocation5], %s2926_s20 }
 0x1e7   : > { %s714_s0 = sand.u32 1, %s5177_s30  }
 0x1e8   : > { %s715_s7 = scalar_lea.sflag [#allocation6], %s714_s0 }
 0x1e9   : > { %3988 = dma.done.wait (%p5176_p11), %s715_s7, 512  }
 0x1ea   : > { %3990 = vsyncadd (%p5176_p11), %s715_s7, 4294966784  ;;  %s4702_s3 = scalar_lea.vmem [#allocation7], %s2926_s20  ;;  %s733_s24 = scalar_lea.sflag [#allocation9], %s714_s0 }
 0x1eb   : > { %s4704_s15 = scalar_lea.vmem [#allocation8], %s2926_s20 }
 0x1ec   : > { %3992 = dma.done.wait (%p5176_p11), %s733_s24, 512  }
 0x1ed   : > { %3994 = vsyncadd (%p5176_p11), %s733_s24, 4294966784  ;;  %s2930_s1 = sshll.u32 %s4682_s13, 1  ;;  %s4711_s21 = scalar_lea.vmem [#allocation10], %s2926_s20 }
 0x1ee   : > { %s751_s28 = scalar_lea.sflag [#allocation12], %s714_s0  ;;  %s4713_s27 = scalar_lea.vmem [#allocation11], %s2930_s1 }
 0x1ef   : > { %3996 = dma.done.wait (%p5176_p11), %s751_s28, 64  }
 0x1f0   : > { %3998 = vsyncadd (%p5176_p11), %s751_s28, 4294967232  ;;  %s4719_s25 = scalar_lea.vmem [#allocation13], %s2930_s1  ;;  %p5178_p13 = scmp.eq.s32.totalorder %s5177_s30, 0 }
 0x1f2   : > { %4000 = dma.done.wait (%p5178_p13), [#allocation15], 512   ;;  %p5179_p4 = pmov %p5178_p13 }
 0x1f4   : > { %4002 = vsyncadd (%p5179_p4), [#allocation15], 4294966784  ;;  %p5180_p8 = pmov %p5179_p4 }
 0x1f5   : > { %p5181_p9 = pmov %p5179_p4 }
 0x1f6   : > { %4004 = dma.done.wait (%p5180_p8), [#allocation18], 512  }
 0x1f7   : > { %4006 = vsyncadd (%p5181_p9), [#allocation18], 4294966784  ;;  %p5182_p6 = pmov %p5179_p4 }
 0x1f8   : > { %p5183_p10 = pmov %p5179_p4 }
 0x1f9   : > { %4008 = dma.done.wait (%p5182_p6), [#allocation21], 272  }
 0x1fa   : > { %4010 = vsyncadd (%p5183_p10), [#allocation21], 4294967024  ;;  %p5184_p0 = pmov %p5179_p4 }
 0x1fc   : > { %4012 = dma.done.wait (%p5184_p0), [#allocation24], 768   ;;  %p5185_p1 = pmov %p5184_p0 }
 0x1fd   : > { %v4062_v0 = vmov 0.0   ;;  %vm4063_vm0 = vmmov 0   ;;  %v3426_v1 = vld [vmem:[#allocation14] sm:$0xff]   ;;  %v3427_v2 = vld [vmem:[#allocation14 + $0x8] sm:$0xff]   ;;  %vm932_vm1 = vcmask 261120   ;;  %vm983_vm2 = vcmask 1043456  }
 0x1fe   : > { %4014 = vsyncadd (%p5185_p1), [#allocation24], 4294966528  ;;  %3064 = vmatprep.subr.bf16.mxu0 %v4062_v0  ;;  %3068 = vmatprep.mubr.msk.bf16.mxu0 %vm4063_vm0, %v4062_v0  ;;  %v4744_v3 = vld [vmem:[%s4688_s10] sm:$0xff]  ;;  %v977_v5 = vld [vmem:[%s4696_s18] sm:$0xf]  ;;  %v916_v7 = vlaneseq  ;;  %vm979_vm3 = vcmask 64512  }
 0x1ff   : > { %3072 = vmatprep.subr.bf16.mxu1 %v4062_v0  ;;  %3074 = vmatprep.mubr.msk.bf16.mxu1 %vm4063_vm0, %v4062_v0  ;;  %v915_v4 = vpack.c.bf16 %v4744_v3, %v4744_v3  ;;  %v985_v6 = vsel %vm983_vm2, %v977_v5, 0  ;;  %v4759_v10 = vld [vmem:[#allocation25] sm:$0xff]  ;;  %s4064_s29 = smov 120   ;;  %v2948_v35 = vld [vmem:[%s4696_s18 + $0x4] sm:$0xf]  ;;  %s4065_s11 = smov 112  }
 0x200   : > { %3065 = vmatpush3.bf16.msra.mxu0 %v3426_v1  ;;  %3073 = vmatpush3.bf16.msra.mxu1 %v985_v6  ;;  %v4756_v8 = vshrl.u32 %v916_v7, 7  ;;  %v904_v18 = vld [vmem:[%s4713_s27] sm:$0x3]  ;;  %v1104_v38 = vsel %vm983_vm2, %v2948_v35, 0  ;;  %v2949_v55 = vld [vmem:[%s4702_s3 + $0x4] sm:$0xf] }
 0x201   : > { %3066 = vmatprep.subr.bf16.mxu0 %v4062_v0  ;;  %3078 = vmatprep.subr.bf16.mxu1 %v4062_v0  ;;  %v905_v19 = vunpack.c.0.s8 %v904_v18  ;;  %v978_v29 = vld [vmem:[%s4702_s3] sm:$0xf]  ;;  %v1166_v56 = vsel %vm983_vm2, %v2949_v55, 0  ;;  %v878_v5 = vld [vmem:[#allocation16 + $0x4] sm:$0xf]  ;;  %s4066_s14 = smov 104  }
 0x202   : > { %v918_v9 = vsub.s32 0, %v4756_v8  ;;  %v1047_v30 = vsel %vm983_vm2, %v978_v29, 0  ;;  %v1216_v6 = vsel %vm983_vm2, %v878_v5, 0  ;;  %v2954_v29 = vld [vmem:[%s4696_s18 + $0x8] sm:$0xf]  ;;  %vm2516_vm8 = vcmask 523264  }
 0x203   : > { %v906_v20 = vcvt.s32.f32 %v905_v19  ;;  %v2959_v55 = vld [vmem:[%s4696_s18 + $0xc] sm:$0xf]  ;;  %s5186_s2 = sld [smem:[#allocation38_spill]]  ;;  %s5187_s26 = sld [smem:[#allocation43_spill]] }
 0x204   : > { %3067 = vmatpush3.bf16.msra.mxu0 %v3427_v2  ;;  %v919_v11 = vrot.slane %v4759_v10, %v918_v9  ;;  %v877_v2 = vld [vmem:[#allocation16] sm:$0xf]  ;;  %s871_s23 = scalar_lea.vmem [#allocation26], %s2925_s16  ;;  %s5188_s0 = sld [smem:[#allocation60_spill]] }
 0x205   : > { %3096 = vmatprep.subr.bf16.mxu0 %v4062_v0  ;;  %v2941_v21 = vadd.f32 -1.0, %v906_v20  ;;  %s2607_s17 = sshll.u32 %s871_s23, 4  ;;  %s2593_s7 = scalar_lea.sflag [#allocation4], %s4682_s13  ;;  %s5007_s17 = int_to_ptr.vmem [resolvable:$true] %s2607_s17 }
 0x206   : > { %s3931_s18 = scalar_lea.vmem %s5007_s17, 128  ;;  %s4067_s16 = smov [#allocation26]  }
 0x207   : > { %3069 = vmatmul.mubr.msk.bf16.vlgmr.msra.gmra.mrb[0].mxu0 %vm932_vm1, %v915_v4  ;;  %v4771_v22 = vmul.f32 1e+09, %v2941_v21  ;;  %v1262_v4 = vsel %vm983_vm2, %v877_v2, 0  ;;  %p3932_p7 = scmp.ne.s32.totalorder %s5007_s17, %s3931_s18 }
 0x208   : > { %3098 = vmatprep.mubr.msk.bf16.mxu0 %vm4063_vm0, %v4062_v0  ;;  %3097 = vmatpush3.bf16.msra.mxu0 %v1216_v6 }
 0x209   : > { %3108 = vmatprep.subr.bf16.mxu0 %v4062_v0  ;;  %s2995_s5 = sshll.u32 %s5186_s2, 7  ;;  %p5189_p5 = scmp.ne.s32.totalorder %s5187_s26, 0 }
 0x20a   : > { %s5005_s20 = scalar_lea.hbm %s5188_s0, %s2995_s5 }
 0x20b   : > { %p3933_p3 = pnand %p3932_p7, %p5189_p5 }
 0x20d   : > { %p3934_p2 = pneg %p3933_p3 }
 0x2da   : > { %v970_v12 = vpop.f32.mrb[0].mxu0 }
 0x2db   : > { %v971_v13 = vadd.f32 %v970_v12, %v919_v11  ;;  %v3070_v14 = vpop.f32.mrb[1].mxu0 }
 0x2dc   : > { %v973_v15 = vpop.f32.mrb[2].mxu0 }
 0x2dd   : > { %v4764_v16 = vpack.c.bf16 %v971_v13, %v971_v13  ;;  %v3071_v17 = vpop.f32.mrb[3].mxu0 }
 0x2df   : > { %3075 = vmatmul.mubr.msk.bf16.vlgmr.msra.gmra.mrb[0].mxu1 %vm979_vm3, %v4764_v16 }
 0x2e0   : > { %3080 = vmatprep.mubr.msk.bf16.mxu1 %vm4063_vm0, %v4062_v0  ;;  %3079 = vmatpush3.bf16.msra.mxu1 %v1047_v30 }
 0x2e1   : > { %3084 = vmatprep.subr.bf16.mxu1 %v4062_v0 }
 0x3b2   : > { %v1021_v23 = vpop.f32.mrb[0].mxu1 }
 0x3b3   : > { %v1022_v24 = vadd.f32 %v1021_v23, %v4771_v22  ;;  %v3076_v25 = vpop.f32.mrb[1].mxu1 }
 0x3b4   : > { %v1024_v26 = vpop.f32.mrb[2].mxu1 }
 0x3b5   : > { %v3077_v27 = vpop.f32.mrb[3].mxu1  ;;  %v1027_v28 = vsel %vm979_vm3, %v1022_v24, -inf }
 0x3b6   : > { %1028 = vmax.xlane.f32.xlu0 %v1027_v28 }
 0x3cc   : > { %1098 = vrot.lane.b32.xlu0 %v4764_v16, %s4064_s29 }
 0x443   : > { %v1029_v31 = vpop.xlane.xlu0 %1028 }
 0x444   : > { %v1030_v32 = vmax.f32 %v1029_v31, -1e+30 }
 0x446   : > { %v1034_v33 = vsub.f32 %v1022_v24, %v1030_v32  ;;  %v1031_v40 = vsub.f32 -1e+30, %v1030_v32 }
 0x447   : > { %v1099_v39 = vpop.permute.xlu0 %1098 }
 0x448   : > { %v1035_v34 = vmul.f32 1.442695, %v1034_v33  ;;  %v1032_v41 = vmul.f32 1.442695, %v1031_v40  ;;  %v1314_v33 = vsel %vm983_vm2, %v2954_v29, 0 }
 0x44a   : > { %3436 = vpow2.f32 %v1035_v34 }
 0x44b   : > { %3438 = vpow2.f32 %v1032_v41 }
 0x454   : > { %v3437_v36 = vpop.eup %3436 }
 0x455   : > { %v1042_v37 = vpack.c.bf16 %v3437_v36, %v3437_v36  ;;  %v3439_v42 = vpop.eup %3438  ;;  %v1038_v1 = vsel %vm979_vm3, %v3437_v36, 0.0 }
 0x456   : > { %v1037_v43 = vmul.f32 0.0, %v3439_v42 }
 0x457   : > { %3081 = vmatmul.mubr.msk.bf16.vlgmr.msra.gmra.mrb[4].mxu1 %vm979_vm3, %v1042_v37 }
 0x458   : > { %3085 = vmatpush3.bf16.msra.mxu1 %v1104_v38  ;;  %3086 = vmatprep.mubr.msk.bf16.mxu1 %vm4063_vm0, %v4062_v0 }
 0x459   : > { %3090 = vmatprep.subr.bf16.mxu1 %v4062_v0 }
 0x45f   : > { %3087 = vmatmul.mubr.msk.bf16.vlgmr.msra.gmra.mrb[8].mxu1 %vm979_vm3, %v1099_v39 }
 0x460   : > { %3092 = vmatprep.mubr.msk.bf16.mxu1 %vm4063_vm0, %v4062_v0  ;;  %3091 = vmatpush3.bf16.msra.mxu1 %v1166_v56 }
 0x461   : > { %3102 = vmatprep.subr.bf16.mxu1 %v4062_v0 }
 0x52a   : > { %v1083_v44 = vpop.f32.mrb[4].mxu1 }
 0x52b   : > { %v1089_v45 = vadd.f32 %v1083_v44, %v1037_v43  ;;  %v3082_v46 = vpop.f32.mrb[5].mxu1 }
 0x52c   : > { %v1086_v47 = vpop.f32.mrb[6].mxu1 }
 0x52d   : > { %v3083_v48 = vpop.f32.mrb[7].mxu1 }
 0x532   : > { %v1140_v49 = vpop.f32.mrb[8].mxu1 }
 0x533   : > { %v1141_v50 = vadd.f32 %v1140_v49, %v4771_v22  ;;  %v3088_v51 = vpop.f32.mrb[9].mxu1  ;;  %v2955_v49 = vld [vmem:[%s4702_s3 + $0x8] sm:$0xf] }
 0x534   : > { %v1143_v52 = vpop.f32.mrb[10].mxu1 }
 0x535   : > { %v3089_v53 = vpop.f32.mrb[11].mxu1  ;;  %v1146_v54 = vsel %vm979_vm3, %v1141_v50, -inf }
 0x536   : > { %1147 = vmax.xlane.f32.xlu1 %v1146_v54 }
 0x5c3   : > { %v1148_v57 = vpop.xlane.xlu1 %1147 }
 0x5c4   : > { %v1149_v58 = vmax.f32 %v1148_v57, -1e+30 }
 0x5c6   : > { %v1153_v59 = vsub.f32 %v1141_v50, %v1149_v58  ;;  %v1150_v7 = vsub.f32 -1e+30, %v1149_v58  ;;  %v1376_v50 = vsel %vm983_vm2, %v2955_v49, 0 }
 0x5c8   : > { %v1154_v60 = vmul.f32 1.442695, %v1153_v59  ;;  %v1151_v11 = vmul.f32 1.442695, %v1150_v7  ;;  %v1479_v59 = vsel %vm983_vm2, %v2959_v55, 0 }
 0x5ca   : > { %3440 = vpow2.f32 %v1154_v60  ;;  %v879_v60 = vld [vmem:[#allocation16 + $0x8] sm:$0xf] }
 0x5cb   : > { %3442 = vpow2.f32 %v1151_v11 }
 0x5d4   : > { %v3441_v61 = vpop.eup %3440 }
 0x5d5   : > { %v1157_v62 = vsel %vm979_vm3, %v3441_v61, 0.0  ;;  %v1161_v63 = vpack.c.bf16 %v3441_v61, %v3441_v61  ;;  %v3443_v15 = vpop.eup %3442  ;;  %v1426_v61 = vsel %vm983_vm2, %v879_v60, 0 }
 0x5d6   : > { %1158 = vadd.xlane.f32.xlu1 %v1157_v62  ;;  %v1156_v18 = vmul.f32 0.0, %v3443_v15 }
 0x5d7   : > { %3093 = vmatmul.mubr.msk.bf16.vlgmr.msra.gmra.mrb[12].mxu1 %vm979_vm3, %v1161_v63 }
 0x5d8   : > { %3104 = vmatprep.mubr.msk.bf16.mxu1 %vm4063_vm0, %v4062_v0  ;;  %3103 = vmatpush3.bf16.msra.mxu1 %v1262_v4 }
 0x5d9   : > { %3114 = vmatprep.subr.bf16.mxu1 %v4062_v0 }
 0x5e7   : > { %1308 = vrot.lane.b32.xlu1 %v4764_v16, %s4065_s11 }
 0x60b   : > { %1039 = vadd.xlane.f32.xlu1 %v1038_v1 }
 0x663   : > { %v1159_v12 = vpop.xlane.xlu1 %1158 }
 0x664   : > { %v1160_v19 = vadd.f32 %v1159_v12, %v1156_v18 }
 0x667   : > { %v1309_v13 = vpop.permute.xlu1 %1308 }
 0x698   : > { %v1040_v14 = vpop.xlane.xlu1 %1039 }
 0x699   : > { %v1041_v17 = vadd.f32 %v1040_v14, %v1037_v43 }
 0x69b   : > { %3444 = vrcp.f32 %v1041_v17 }
 0x69c   : > { %3446 = vrcp.f32 %v1160_v19 }
 0x6a5   : > { %v3445_v20 = vpop.eup %3444 }
 0x6a6   : > { %v1091_v21 = vmul.f32 %v3445_v20, %v1089_v45  ;;  %v3447_v27 = vpop.eup %3446 }
 0x6a8   : > { %v1092_v23 = vpack.c.bf16 %v1091_v21, %v1091_v21 }
 0x6aa   : > { %v1202_v24 = vpop.f32.mrb[12].mxu1  ;;  %3105 = vmatmul.mubr.msk.bf16.vlgmr.msra.gmra.mrb[16].mxu1 %vm979_vm3, %v1092_v23 }
 0x6ab   : > { %v1208_v25 = vadd.f32 %v1202_v24, %v1156_v18  ;;  %v3094_v26 = vpop.f32.mrb[13].mxu1  ;;  %3116 = vmatprep.mubr.msk.bf16.mxu1 %vm4063_vm0, %v4062_v0  ;;  %3115 = vmatpush3.bf16.msra.mxu1 %v1376_v50 }
 0x6ac   : > { %v1205_v28 = vpop.f32.mrb[14].mxu1  ;;  %3126 = vmatprep.subr.bf16.mxu1 %v4062_v0 }
 0x6ad   : > { %v1210_v30 = vmul.f32 %v3447_v27, %v1208_v25  ;;  %v3095_v31 = vpop.f32.mrb[15].mxu1  ;;  %v2960_v25 = vld [vmem:[%s4702_s3 + $0xc] sm:$0xf]  ;;  %s3935_s3 = sshll.u32 %s4067_s16, 4  ;;  %s3936_s3 = int_to_ptr.vmem [resolvable:$false] %s3935_s3 }
 0x6ae   : > { %v1541_v26 = vsel %vm983_vm2, %v2960_v25, 0  ;;  %s3937_s24 = scalar_lea.vmem %s3936_s3, 256  ;;  %p3938_p12 = scmp.lt.s32.totalorder %s5007_s17, %s3936_s3 }
 0x6af   : > { %v1211_v32 = vpack.c.bf16 %v1210_v30, %v1210_v30  ;;  %p3939_p11 = scmp.lt.s32.totalorder %s3937_s24, %s3931_s18 }
 0x6b1   : > { %3099 = vmatmul.mubr.msk.bf16.vlgmr.msra.gmra.mrb[4].mxu0 %vm979_vm3, %v1211_v32  ;;  %p3940_p13 = por %p3939_p11, %p3938_p12 }
 0x6b2   : > { %3109 = vmatpush3.bf16.msra.mxu0 %v1314_v33  ;;  %3110 = vmatprep.mubr.msk.bf16.mxu0 %vm4063_vm0, %v4062_v0  ;;  %v880_v33 = vld [vmem:[#allocation16 + $0xc] sm:$0xf] }
 0x6b3   : > { %3120 = vmatprep.subr.bf16.mxu0 %v4062_v0  ;;  %p3941_p4 = pnand %p3940_p13, %p3934_p2 }
 0x6b9   : > { %3111 = vmatmul.mubr.msk.bf16.vlgmr.msra.gmra.mrb[8].mxu0 %vm979_vm3, %v1309_v13 }
 0x6ba   : > { %3122 = vmatprep.mubr.msk.bf16.mxu0 %vm4063_vm0, %v4062_v0  ;;  %3121 = vmatpush3.bf16.msra.mxu0 %v1426_v61 }
 0x6bb   : > { %3132 = vmatprep.subr.bf16.mxu0 %v4062_v0 }
 0x77d   : > { %v1298_v34 = vpop.f32.mrb[16].mxu1 }
 0x77e   : > { %v3106_v35 = vpop.f32.mrb[17].mxu1 }
 0x77f   : > { %v1301_v36 = vpop.f32.mrb[18].mxu1 }
 0x780   : > { %v3107_v37 = vpop.f32.mrb[19].mxu1 }
 0x784   : > { %v1252_v38 = vpop.f32.mrb[4].mxu0 }
 0x785   : > { %v4817_v39 = vadd.f32 %v1298_v34, %v1252_v38  ;;  %v3100_v40 = vpop.f32.mrb[5].mxu0  ;;  %v1591_v34 = vsel %vm983_vm2, %v880_v33, 0  ;;  %v2969_v33 = vld [vmem:[%s4704_s15 + $0x4] sm:$0xf] }
 0x786   : > { %v1255_v41 = vpop.f32.mrb[6].mxu0 }
 0x787   : > { %v3101_v42 = vpop.f32.mrb[7].mxu0 }
 0x78c   : > { %v1350_v43 = vpop.f32.mrb[8].mxu0 }
 0x78d   : > { %v1351_v44 = vadd.f32 %v1350_v43, %v4771_v22  ;;  %v3112_v45 = vpop.f32.mrb[9].mxu0 }
 0x78e   : > { %v1353_v46 = vpop.f32.mrb[10].mxu0 }
 0x78f   : > { %v3113_v47 = vpop.f32.mrb[11].mxu0  ;;  %v1356_v48 = vsel %vm979_vm3, %v1351_v44, -inf }
 0x790   : > { %1357 = vmax.xlane.f32.xlu0 %v1356_v48 }
 0x7a6   : > { %1473 = vrot.lane.b32.xlu0 %v4764_v16, %s4066_s14 }
 0x81d   : > { %v1358_v51 = vpop.xlane.xlu0 %1357 }
 0x81e   : > { %v1359_v52 = vmax.f32 %v1358_v51, -1e+30 }
 0x820   : > { %v1363_v53 = vsub.f32 %v1351_v44, %v1359_v52  ;;  %v1360_v62 = vsub.f32 -1e+30, %v1359_v52 }
 0x821   : > { %v1474_v16 = vpop.permute.xlu0 %1473 }
 0x822   : > { %v1364_v54 = vmul.f32 1.442695, %v1363_v53  ;;  %v1361_v63 = vmul.f32 1.442695, %v1360_v62 }
 0x824   : > { %3448 = vpow2.f32 %v1364_v54 }
 0x825   : > { %3450 = vpow2.f32 %v1361_v63 }
 0x82e   : > { %v3449_v56 = vpop.eup %3448 }
 0x82f   : > { %v1367_v57 = vsel %vm979_vm3, %v3449_v56, 0.0  ;;  %v1371_v58 = vpack.c.bf16 %v3449_v56, %v3449_v56  ;;  %v3451_v1 = vpop.eup %3450 }
 0x830   : > { %1368 = vadd.xlane.f32.xlu1 %v1367_v57  ;;  %v1366_v4 = vmul.f32 0.0, %v3451_v1 }
 0x831   : > { %3117 = vmatmul.mubr.msk.bf16.vlgmr.msra.gmra.mrb[20].mxu1 %vm979_vm3, %v1371_v58 }
 0x832   : > { %3127 = vmatpush3.bf16.msra.mxu1 %v1479_v59  ;;  %3128 = vmatprep.mubr.msk.bf16.mxu1 %vm4063_vm0, %v4062_v0 }
 0x833   : > { %3138 = vmatprep.subr.bf16.mxu1 %v4062_v0 }
 0x839   : > { %3129 = vmatmul.mubr.msk.bf16.vlgmr.msra.gmra.mrb[24].mxu1 %vm979_vm3, %v1474_v16 }
 0x83a   : > { %3140 = vmatprep.mubr.msk.bf16.mxu1 %vm4063_vm0, %v4062_v0  ;;  %3139 = vmatpush3.bf16.msra.mxu1 %v1591_v34 }
 0x83b   : > { %3152 = vmatprep.subr.bf16.mxu1 %v4062_v0 }
 0x8bd   : > { %v1369_v2 = vpop.xlane.xlu1 %1368 }
 0x8be   : > { %v1370_v5 = vadd.f32 %v1369_v2, %v1366_v4 }
 0x8c0   : > { %3452 = vrcp.f32 %v1370_v5 }
 0x8ca   : > { %v3453_v12 = vpop.eup %3452 }
 0x904   : > { %v1412_v6 = vpop.f32.mrb[20].mxu1 }
 0x905   : > { %v1418_v7 = vadd.f32 %v1412_v6, %v1366_v4  ;;  %v3118_v11 = vpop.f32.mrb[21].mxu1  ;;  %v3428_v6 = vld [vmem:[#allocation17] sm:$0xff]  }
 0x906   : > { %v1415_v13 = vpop.f32.mrb[22].mxu1 }
 0x907   : > { %v1420_v14 = vmul.f32 %v3453_v12, %v1418_v7  ;;  %v3119_v15 = vpop.f32.mrb[23].mxu1  ;;  %v3429_v7 = vld [vmem:[#allocation17 + $0x8] sm:$0xff]  }
 0x909   : > { %v1421_v17 = vpack.c.bf16 %v1420_v14, %v1420_v14 }
 0x90b   : > { %3123 = vmatmul.mubr.msk.bf16.vlgmr.msra.gmra.mrb[12].mxu0 %vm979_vm3, %v1421_v17 }
 0x90c   : > { %v1515_v18 = vpop.f32.mrb[24].mxu1  ;;  %3134 = vmatprep.mubr.msk.bf16.mxu0 %vm4063_vm0, %v4062_v0  ;;  %3133 = vmatpush3.bf16.msra.mxu0 %v1541_v26 }
 0x90d   : > { %v1516_v19 = vadd.f32 %v1515_v18, %v4771_v22  ;;  %v3130_v20 = vpop.f32.mrb[25].mxu1  ;;  %3144 = vmatprep.subr.bf16.mxu0 %v4062_v0 }
 0x90e   : > { %v1518_v21 = vpop.f32.mrb[26].mxu1 }
 0x90f   : > { %v3131_v23 = vpop.f32.mrb[27].mxu1  ;;  %v1521_v24 = vsel %vm979_vm3, %v1516_v19, -inf  ;;  %v1669_v21 = vsub.s32 6, %v4756_v8 }
 0x910   : > { %1522 = vmax.xlane.f32.xlu1 %v1521_v24 }
 0x911   : > { %v1670_v24 = vrot.slane %v4759_v10, %v1669_v21 }
 0x99d   : > { %v1523_v27 = vpop.xlane.xlu1 %1522 }
 0x99e   : > { %v1524_v28 = vmax.f32 %v1523_v27, -1e+30 }
 0x9a0   : > { %v1528_v29 = vsub.f32 %v1516_v19, %v1524_v28  ;;  %v1525_v41 = vsub.f32 -1e+30, %v1524_v28  ;;  %v1661_v19 = vsub.s32 5, %v4756_v8 }
 0x9a2   : > { %v1529_v30 = vmul.f32 1.442695, %v1528_v29  ;;  %v1526_v42 = vmul.f32 1.442695, %v1525_v41  ;;  %v1662_v20 = vrot.slane %v4759_v10, %v1661_v19  ;;  %v1733_v29 = vld [vmem:[%s4704_s15] sm:$0xf] }
 0x9a3   : > { %v909_v41 = vld [vmem:[%s4719_s25] sm:$0x3] }
 0x9a4   : > { %3454 = vpow2.f32 %v1529_v30  ;;  %v1739_v30 = vsel %vm983_vm2, %v1733_v29, 0 }
 0x9a5   : > { %3456 = vpow2.f32 %v1526_v42  ;;  %v910_v42 = vunpack.c.0.s8 %v909_v41 }
 0x9ae   : > { %v3455_v31 = vpop.eup %3454 }
 0x9af   : > { %v1532_v22 = vsel %vm979_vm3, %v3455_v31, 0.0  ;;  %v1536_v32 = vpack.c.bf16 %v3455_v31, %v3455_v31  ;;  %v3457_v43 = vpop.eup %3456  ;;  %v1675_v31 = vsub.s32 2, %v4756_v8 }
 0x9b0   : > { %1533 = vadd.xlane.f32.xlu1 %v1532_v22  ;;  %v1531_v45 = vmul.f32 0.0, %v3457_v43  ;;  %v911_v43 = vcvt.s32.f32 %v910_v42 }
 0x9b1   : > { %3135 = vmatmul.mubr.msk.bf16.vlgmr.msra.gmra.mrb[16].mxu0 %vm979_vm3, %v1536_v32  ;;  %v1676_v22 = vrot.slane %v4759_v10, %v1675_v31 }
 0x9b2   : > { %3148 = vmatprep.mubr.msk.bf16.mxu0 %vm4063_vm0, %v4062_v0  ;;  %3145 = vmatpush3.bf16.msra.mxu0 %v3428_v6 }
 0x9b3   : > { %3146 = vmatprep.subr.bf16.mxu0 %v4062_v0 }
 0x9b6   : > { %3147 = vmatpush3.bf16.msra.mxu0 %v3429_v7 }
 0x9b7   : > { %3158 = vmatprep.subr.bf16.mxu0 %v4062_v0 }
 0x9de   : > { %v1462_v35 = vpop.f32.mrb[12].mxu0 }
 0x9df   : > { %v1468_v36 = vadd.f32 %v1462_v35, %v4817_v39  ;;  %v3124_v37 = vpop.f32.mrb[13].mxu0  ;;  %v1636_v39 = vsub.s32 1, %v4756_v8 }
 0x9e0   : > { %v1465_v38 = vpop.f32.mrb[14].mxu0 }
 0x9e1   : > { %v3125_v40 = vpop.f32.mrb[15].mxu0  ;;  %v1637_v55 = vrot.slane %v4759_v10, %v1636_v39 }
 0x9e2   : > { %v1858_v40 = vsel %vm983_vm2, %v2969_v33, 0 }
 0xa3d   : > { %v1534_v44 = vpop.xlane.xlu1 %1533 }
 0xa3e   : > { %v1535_v46 = vadd.f32 %v1534_v44, %v1531_v45  ;;  %v2942_v44 = vadd.f32 -1.0, %v911_v43 }
 0xa40   : > { %3458 = vrcp.f32 %v1535_v46 }
 0xa4a   : > { %v3459_v50 = vpop.eup %3458 }
 0xa84   : > { %v1577_v47 = vpop.f32.mrb[16].mxu0 }
 0xa85   : > { %v1583_v48 = vadd.f32 %v1577_v47, %v1531_v45  ;;  %v3136_v49 = vpop.f32.mrb[17].mxu0  ;;  %v4898_v45 = vmul.f32 1e+09, %v2942_v44 }
 0xa86   : > { %v1580_v51 = vpop.f32.mrb[18].mxu0 }
 0xa87   : > { %v1585_v52 = vmul.f32 %v3459_v50, %v1583_v48  ;;  %v3137_v53 = vpop.f32.mrb[19].mxu0 }
 0xa89   : > { %v1586_v54 = vpack.c.bf16 %v1585_v52, %v1585_v52  ;;  %v1734_v52 = vld [vmem:[%s4711_s21] sm:$0xf] }
 0xa8a   : > { %v1801_v53 = vsel %vm983_vm2, %v1734_v52, 0 }
 0xa8b   : > { %3141 = vmatmul.mubr.msk.bf16.vlgmr.msra.gmra.mrb[28].mxu1 %vm979_vm3, %v1586_v54 }
 0xa8c   : > { %3154 = vmatprep.mubr.msk.bf16.mxu1 %vm4063_vm0, %v4062_v0  ;;  %3153 = vmatpush3.bf16.msra.mxu1 %v1739_v30 }
 0xa8d   : > { %3164 = vmatprep.subr.bf16.mxu1 %v4062_v0 }
 0xb5e   : > { %v1627_v56 = vpop.f32.mrb[28].mxu1 }
 0xb5f   : > { %v1633_v57 = vadd.f32 %v1627_v56, %v1468_v36  ;;  %v3142_v58 = vpop.f32.mrb[29].mxu1 }
 0xb60   : > { %v1630_v59 = vpop.f32.mrb[30].mxu1 }
 0xb61   : > { %v1638_v16 = vadd.f32 %v1637_v55, %v1633_v57  ;;  %v3143_v60 = vpop.f32.mrb[31].mxu1 }
 0xb63   : > { %v1639_v61 = vadd.f32 %v1638_v16, %v4744_v3 }
 0xb65   : > { %v1640_v62 = vsel %vm932_vm1, %v1639_v61, 0.0 }
 0xb66   : > { %1641 = vadd.xlane.f32.xlu1 %v1640_v62 }
 0xbf3   : > { %v1642_v63 = vpop.xlane.xlu1 %1641 }
 0xbf4   : > { %v1644_v1 = vmul.f32 0.03125, %v1642_v63  ;;  %v2970_v63 = vld [vmem:[%s4711_s21 + $0x4] sm:$0xf] }
 0xbf6   : > { %v1645_v2 = vsub.f32 %v1639_v61, %v1644_v1 }
 0xbf8   : > { %v1646_v4 = vmul.f32 %v1645_v2, %v1645_v2  ;;  %v1663_v23 = vmul.f32 %v1662_v20, %v1645_v2  ;;  %v886_v20 = vld [vmem:[#allocation19 + $0x4] sm:$0xf] }
 0xbf9   : > { %v1970_v21 = vsel %vm983_vm2, %v886_v20, 0 }
 0xbfa   : > { %v1647_v5 = vsel %vm932_vm1, %v1646_v4, 0.0  ;;  %v1920_v4 = vsel %vm983_vm2, %v2970_v63, 0 }
 0xbfb   : > { %1648 = vadd.xlane.f32.xlu1 %v1647_v5 }
 0xc88   : > { %v1649_v11 = vpop.xlane.xlu1 %1648 }
 0xc89   : > { %v1651_v3 = vmul.f32 0.032258064, %v1649_v11 }
 0xc8b   : > { %3460 = vrsqrt.f32 %v1651_v3  ;;  %vm1654_vm4 = vcmp.eq.f32.partialorder %v1651_v3, inf  ;;  %v1657_v14 = vand.u32 2147483648, %v1651_v3  ;;  %vm1656_vm5 = vcmp.eq.f32.partialorder %v1651_v3, 0.0 }
 0xc95   : > { %v3461_v12 = vpop.eup %3460 }
 0xc96   : > { %v1653_v13 = vmul.f32 %v3461_v12, %v1651_v3 }
 0xc98   : > { %v1655_v15 = vsel %vm1654_vm4, %v1651_v3, %v1653_v13 }
 0xc99   : > { %v1658_v17 = vsel %vm1656_vm5, %v1657_v14, %v1655_v15 }
 0xc9a   : > { %v1664_v18 = vadd.f32 1e-06, %v1658_v17 }
 0xc9c   : > { %3462 = vrcp.f32 %v1664_v18  ;;  %v885_v18 = vld [vmem:[#allocation19] sm:$0xf] }
 0xc9d   : > { %v2016_v19 = vsel %vm983_vm2, %v885_v18, 0 }
 0xca6   : > { %v3463_v25 = vpop.eup %3462 }
 0xca7   : > { %v1666_v26 = vmul.f32 %v3463_v25, %v1663_v23 }
 0xca9   : > { %v4869_v27 = vadd.f32 %v1670_v24, %v1666_v26 }
 0xcab   : > { %v1672_v28 = vpack.c.bf16 %v4869_v27, %v4869_v27 }
 0xcad   : > { %3149 = vmatmul.mubr.msk.bf16.vlgmr.msra.gmra.mrb[20].mxu0 %vm932_vm1, %v1672_v28 }
 0xcae   : > { %3160 = vmatprep.mubr.msk.bf16.mxu0 %vm4063_vm0, %v4062_v0  ;;  %3159 = vmatpush3.bf16.msra.mxu0 %v1801_v53 }
 0xcaf   : > { %3170 = vmatprep.subr.bf16.mxu0 %v4062_v0 }
 0xd80   : > { %v1726_v32 = vpop.f32.mrb[20].mxu0 }
 0xd81   : > { %v1727_v34 = vadd.f32 %v1726_v32, %v1676_v22  ;;  %v3150_v35 = vpop.f32.mrb[21].mxu0 }
 0xd82   : > { %v1729_v36 = vpop.f32.mrb[22].mxu0 }
 0xd83   : > { %v4884_v37 = vpack.c.bf16 %v1727_v34, %v1727_v34  ;;  %v3151_v38 = vpop.f32.mrb[23].mxu0 }
 0xd85   : > { %1852 = vrot.lane.b32.xlu0 %v4884_v37, %s4064_s29  ;;  %3155 = vmatmul.mubr.msk.bf16.vlgmr.msra.gmra.mrb[32].mxu1 %vm979_vm3, %v4884_v37 }
 0xd86   : > { %3165 = vmatpush3.bf16.msra.mxu1 %v1858_v40  ;;  %3166 = vmatprep.mubr.msk.bf16.mxu1 %vm4063_vm0, %v4062_v0 }
 0xd87   : > { %3176 = vmatprep.subr.bf16.mxu1 %v4062_v0 }
 0xdf7   : > { %v1853_v10 = vpop.permute.xlu0 %1852 }
 0xdf8   : > { %3167 = vmatmul.mubr.msk.bf16.vlgmr.msra.gmra.mrb[36].mxu1 %vm979_vm3, %v1853_v10 }
 0xdf9   : > { %3178 = vmatprep.mubr.msk.bf16.mxu1 %vm4063_vm0, %v4062_v0  ;;  %3177 = vmatpush3.bf16.msra.mxu1 %v1970_v21  ;;  %v887_v21 = vld [vmem:[#allocation19 + $0x8] sm:$0xf] }
 0xdfa   : > { %3188 = vmatprep.subr.bf16.mxu1 %v4062_v0 }
 0xe58   : > { %v1775_v46 = vpop.f32.mrb[32].mxu1 }
 0xe59   : > { %v1776_v47 = vadd.f32 %v1775_v46, %v4898_v45  ;;  %v3156_v48 = vpop.f32.mrb[33].mxu1 }
 0xe5a   : > { %v1778_v49 = vpop.f32.mrb[34].mxu1 }
 0xe5b   : > { %v3157_v50 = vpop.f32.mrb[35].mxu1  ;;  %v1781_v51 = vsel %vm979_vm3, %v1776_v47, -inf }
 0xe5c   : > { %1782 = vmax.xlane.f32.xlu1 %v1781_v51  ;;  %v2975_v50 = vld [vmem:[%s4704_s15 + $0x8] sm:$0xf] }
 0xecb   : > { %v1894_v54 = vpop.f32.mrb[36].mxu1 }
 0xecc   : > { %v1895_v55 = vadd.f32 %v1894_v54, %v4898_v45  ;;  %v3168_v56 = vpop.f32.mrb[37].mxu1  ;;  %v2068_v54 = vsel %vm983_vm2, %v2975_v50, 0 }
 0xecd   : > { %v1897_v57 = vpop.f32.mrb[38].mxu1 }
 0xece   : > { %v3169_v58 = vpop.f32.mrb[39].mxu1  ;;  %v1900_v59 = vsel %vm979_vm3, %v1895_v55, -inf }
 0xecf   : > { %1901 = vmax.xlane.f32.xlu0 %v1900_v59 }
 0xee9   : > { %v1783_v16 = vpop.xlane.xlu1 %1782 }
 0xeea   : > { %v1784_v60 = vmax.f32 %v1783_v16, -1e+30 }
 0xeec   : > { %v1788_v61 = vsub.f32 %v1776_v47, %v1784_v60  ;;  %v1785_v15 = vsub.f32 -1e+30, %v1784_v60 }
 0xeee   : > { %v1789_v62 = vmul.f32 1.442695, %v1788_v61  ;;  %v1786_v17 = vmul.f32 1.442695, %v1785_v15  ;;  %v2980_v15 = vld [vmem:[%s4704_s15 + $0xc] sm:$0xf] }
 0xeef   : > { %v2233_v20 = vsel %vm983_vm2, %v2980_v15, 0 }
 0xef0   : > { %3464 = vpow2.f32 %v1789_v62 }
 0xefa   : > { %v3465_v1 = vpop.eup %3464 }
 0xefb   : > { %v1796_v2 = vpack.c.bf16 %v3465_v1, %v3465_v1  ;;  %v1792_v14 = vsel %vm979_vm3, %v3465_v1, 0.0 }
 0xefd   : > { %3161 = vmatmul.mubr.msk.bf16.vlgmr.msra.gmra.mrb[24].mxu0 %vm979_vm3, %v1796_v2 }
 0xefe   : > { %3171 = vmatpush3.bf16.msra.mxu0 %v1920_v4  ;;  %3172 = vmatprep.mubr.msk.bf16.mxu0 %vm4063_vm0, %v4062_v0 }
 0xeff   : > { %3182 = vmatprep.subr.bf16.mxu0 %v4062_v0 }
 0xf5c   : > { %v1902_v5 = vpop.xlane.xlu0 %1901 }
 0xf5d   : > { %v1903_v6 = vmax.f32 %v1902_v5, -1e+30 }
 0xf5f   : > { %v1907_v7 = vsub.f32 %v1895_v55, %v1903_v6  ;;  %v1904_v22 = vsub.f32 -1e+30, %v1903_v6 }
 0xf61   : > { %v1908_v11 = vmul.f32 1.442695, %v1907_v7  ;;  %v1905_v32 = vmul.f32 1.442695, %v1904_v22  ;;  %v2976_v7 = vld [vmem:[%s4711_s21 + $0x8] sm:$0xf] }
 0xf63   : > { %3466 = vpow2.f32 %v1908_v11  ;;  %v2130_v11 = vsel %vm983_vm2, %v2976_v7, 0 }
 0xf64   : > { %3468 = vpow2.f32 %v1786_v17 }
 0xf65   : > { %3470 = vpow2.f32 %v1905_v32 }
 0xf6d   : > { %v3467_v3 = vpop.eup %3466 }
 0xf6e   : > { %v1911_v12 = vsel %vm979_vm3, %v3467_v3, 0.0  ;;  %v1915_v13 = vpack.c.bf16 %v3467_v3, %v3467_v3  ;;  %v3469_v23 = vpop.eup %3468 }
 0xf6f   : > { %1912 = vadd.xlane.f32.xlu1 %v1911_v12  ;;  %v1791_v24 = vmul.f32 0.0, %v3469_v23  ;;  %v3471_v36 = vpop.eup %3470  ;;  %v2180_v23 = vsel %vm983_vm2, %v887_v21, 0 }
 0xf70   : > { %3173 = vmatmul.mubr.msk.bf16.vlgmr.msra.gmra.mrb[28].mxu0 %vm979_vm3, %v1915_v13  ;;  %v1910_v40 = vmul.f32 0.0, %v3471_v36 }
 0xf71   : > { %3184 = vmatprep.mubr.msk.bf16.mxu0 %vm4063_vm0, %v4062_v0  ;;  %3183 = vmatpush3.bf16.msra.mxu0 %v2016_v19 }
 0xf72   : > { %3194 = vmatprep.subr.bf16.mxu0 %v4062_v0 }
 0xf80   : > { %2062 = vrot.lane.b32.xlu1 %v4884_v37, %s4065_s11 }
 0xfa4   : > { %1793 = vadd.xlane.f32.xlu1 %v1792_v14 }
 0xfd0   : > { %v1837_v25 = vpop.f32.mrb[24].mxu0 }
 0xfd1   : > { %v1843_v26 = vadd.f32 %v1837_v25, %v1791_v24  ;;  %v3162_v28 = vpop.f32.mrb[25].mxu0 }
 0xfd2   : > { %v1840_v29 = vpop.f32.mrb[26].mxu0 }
 0xfd3   : > { %v3163_v30 = vpop.f32.mrb[27].mxu0 }
 0xffc   : > { %v1913_v33 = vpop.xlane.xlu1 %1912 }
 0xffd   : > { %v1914_v10 = vadd.f32 %v1913_v33, %v1910_v40 }
0x1000   : > { %v2063_v34 = vpop.permute.xlu1 %2062 }
0x1031   : > { %v1794_v35 = vpop.xlane.xlu1 %1793 }
0x1032   : > { %v1795_v38 = vadd.f32 %v1794_v35, %v1791_v24 }
0x1034   : > { %3472 = vrcp.f32 %v1795_v38 }
0x1035   : > { %3474 = vrcp.f32 %v1914_v10 }
0x103e   : > { %v3473_v41 = vpop.eup %3472 }
0x103f   : > { %v1845_v42 = vmul.f32 %v3473_v41, %v1843_v26  ;;  %v3475_v48 = vpop.eup %3474 }
0x1041   : > { %v1846_v43 = vpack.c.bf16 %v1845_v42, %v1845_v42 }
0x1043   : > { %v1956_v44 = vpop.f32.mrb[28].mxu0  ;;  %3185 = vmatmul.mubr.msk.bf16.vlgmr.msra.gmra.mrb[32].mxu0 %vm979_vm3, %v1846_v43 }
0x1044   : > { %v1962_v46 = vadd.f32 %v1956_v44, %v1910_v40  ;;  %v3174_v47 = vpop.f32.mrb[29].mxu0  ;;  %3196 = vmatprep.mubr.msk.bf16.mxu0 %vm4063_vm0, %v4062_v0  ;;  %3195 = vmatpush3.bf16.msra.mxu0 %v2130_v11 }
0x1045   : > { %v1959_v49 = vpop.f32.mrb[30].mxu0  ;;  %3206 = vmatprep.subr.bf16.mxu0 %v4062_v0  ;;  %v2981_v47 = vld [vmem:[%s4711_s21 + $0xc] sm:$0xf] }
0x1046   : > { %v1964_v51 = vmul.f32 %v3475_v48, %v1962_v46  ;;  %v3175_v52 = vpop.f32.mrb[31].mxu0  ;;  %v2295_v48 = vsel %vm983_vm2, %v2981_v47, 0 }
0x1048   : > { %v1965_v53 = vpack.c.bf16 %v1964_v51, %v1964_v51 }
0x104a   : > { %3179 = vmatmul.mubr.msk.bf16.vlgmr.msra.gmra.mrb[40].mxu1 %vm979_vm3, %v1965_v53 }
0x104b   : > { %3189 = vmatpush3.bf16.msra.mxu1 %v2068_v54  ;;  %3190 = vmatprep.mubr.msk.bf16.mxu1 %vm4063_vm0, %v4062_v0 }
0x104c   : > { %3200 = vmatprep.subr.bf16.mxu1 %v4062_v0 }
0x1052   : > { %3191 = vmatmul.mubr.msk.bf16.vlgmr.msra.gmra.mrb[44].mxu1 %vm979_vm3, %v2063_v34 }
0x1053   : > { %3202 = vmatprep.mubr.msk.bf16.mxu1 %vm4063_vm0, %v4062_v0  ;;  %3201 = vmatpush3.bf16.msra.mxu1 %v2180_v23 }
0x1054   : > { %3212 = vmatprep.subr.bf16.mxu1 %v4062_v0 }
0x1116   : > { %v2052_v55 = vpop.f32.mrb[32].mxu0 }
0x1117   : > { %v3186_v56 = vpop.f32.mrb[33].mxu0 }
0x1118   : > { %v2055_v57 = vpop.f32.mrb[34].mxu0 }
0x1119   : > { %v3187_v58 = vpop.f32.mrb[35].mxu0 }
0x111d   : > { %v2006_v59 = vpop.f32.mrb[40].mxu1 }
0x111e   : > { %v4936_v16 = vadd.f32 %v2052_v55, %v2006_v59  ;;  %v3180_v60 = vpop.f32.mrb[41].mxu1  ;;  %v888_v55 = vld [vmem:[#allocation19 + $0xc] sm:$0xf] }
0x111f   : > { %v2009_v61 = vpop.f32.mrb[42].mxu1  ;;  %v2345_v56 = vsel %vm983_vm2, %v888_v55, 0  ;;  %v3435_v55 = vld [vmem:[#allocation23 + $0x18] sm:$0xff]  }
0x1120   : > { %v3181_v62 = vpop.f32.mrb[43].mxu1 }
0x1125   : > { %v2104_v63 = vpop.f32.mrb[44].mxu1 }
0x1126   : > { %v2105_v1 = vadd.f32 %v2104_v63, %v4898_v45  ;;  %v3192_v2 = vpop.f32.mrb[45].mxu1 }
0x1127   : > { %v2107_v4 = vpop.f32.mrb[46].mxu1 }
0x1128   : > { %v3193_v5 = vpop.f32.mrb[47].mxu1  ;;  %v2110_v6 = vsel %vm979_vm3, %v2105_v1, -inf }
0x1129   : > { %2111 = vmax.xlane.f32.xlu0 %v2110_v6 }
0x113f   : > { %2227 = vrot.lane.b32.xlu0 %v4884_v37, %s4066_s14 }
0x11b6   : > { %v2112_v3 = vpop.xlane.xlu0 %2111 }
0x11b7   : > { %v2113_v12 = vmax.f32 %v2112_v3, -1e+30 }
0x11b9   : > { %v2117_v13 = vsub.f32 %v2105_v1, %v2113_v12  ;;  %v2114_v24 = vsub.f32 -1e+30, %v2113_v12 }
0x11ba   : > { %v2228_v37 = vpop.permute.xlu0 %2227 }
0x11bb   : > { %v2118_v14 = vmul.f32 1.442695, %v2117_v13  ;;  %v2115_v25 = vmul.f32 1.442695, %v2114_v24 }
0x11bd   : > { %3476 = vpow2.f32 %v2118_v14 }
0x11be   : > { %3478 = vpow2.f32 %v2115_v25 }
0x11c7   : > { %v3477_v17 = vpop.eup %3476 }
0x11c8   : > { %v2121_v18 = vsel %vm979_vm3, %v3477_v17, 0.0  ;;  %v2125_v19 = vpack.c.bf16 %v3477_v17, %v3477_v17  ;;  %v3479_v26 = vpop.eup %3478  ;;  %v4976_v17 = vld [vmem:[#allocation25] sm:$0xff] }
0x11c9   : > { %2122 = vadd.xlane.f32.xlu0 %v2121_v18  ;;  %v2120_v29 = vmul.f32 0.0, %v3479_v26 }
0x11ca   : > { %3197 = vmatmul.mubr.msk.bf16.vlgmr.msra.gmra.mrb[36].mxu0 %vm979_vm3, %v2125_v19 }
0x11cb   : > { %3207 = vmatpush3.bf16.msra.mxu0 %v2233_v20  ;;  %3208 = vmatprep.mubr.msk.bf16.mxu0 %vm4063_vm0, %v4062_v0 }
0x11cc   : > { %3218 = vmatprep.subr.bf16.mxu0 %v4062_v0 }
0x11d2   : > { %3209 = vmatmul.mubr.msk.bf16.vlgmr.msra.gmra.mrb[40].mxu0 %vm979_vm3, %v2228_v37 }
0x11d3   : > { %3220 = vmatprep.mubr.msk.bf16.mxu0 %vm4063_vm0, %v4062_v0  ;;  %3219 = vmatpush3.bf16.msra.mxu0 %v2345_v56  ;;  %v2985_v56 = vld [vmem:[#allocation22] ss:$0 sm:$0xff] }
0x11d4   : > { %3232 = vmatprep.subr.bf16.mxu0 %v4062_v0 }
0x1256   : > { %v2123_v28 = vpop.xlane.xlu0 %2122 }
0x1257   : > { %v2124_v30 = vadd.f32 %v2123_v28, %v2120_v29 }
0x1259   : > { %3480 = vrcp.f32 %v2124_v30 }
0x1263   : > { %v3481_v34 = vpop.eup %3480 }
0x129d   : > { %v2166_v22 = vpop.f32.mrb[36].mxu0 }
0x129e   : > { %v2172_v32 = vadd.f32 %v2166_v22, %v2120_v29  ;;  %v3198_v33 = vpop.f32.mrb[37].mxu0 }
0x129f   : > { %v2169_v35 = vpop.f32.mrb[38].mxu0  ;;  %v3430_v33 = vld [vmem:[#allocation20] sm:$0xff]  }
0x12a0   : > { %v2174_v36 = vmul.f32 %v3481_v34, %v2172_v32  ;;  %v3199_v38 = vpop.f32.mrb[39].mxu0  ;;  %v3431_v34 = vld [vmem:[#allocation20 + $0x8] sm:$0xff]   ;;  %v3432_v35 = vld [vmem:[#allocation23] sm:$0xff]  }
0x12a2   : > { %v2175_v40 = vpack.c.bf16 %v2174_v36, %v2174_v36  ;;  %v3433_v36 = vld [vmem:[#allocation23 + $0x8] sm:$0xff]  }
0x12a4   : > { %3203 = vmatmul.mubr.msk.bf16.vlgmr.msra.gmra.mrb[48].mxu1 %vm979_vm3, %v2175_v40 }
0x12a5   : > { %v2269_v10 = vpop.f32.mrb[40].mxu0  ;;  %3214 = vmatprep.mubr.msk.bf16.mxu1 %vm4063_vm0, %v4062_v0  ;;  %3213 = vmatpush3.bf16.msra.mxu1 %v2295_v48  ;;  %v903_v48 = vld [vmem:[#allocation25 + $0x8] sm:$0x7] }
0x12a6   : > { %v2270_v41 = vadd.f32 %v2269_v10, %v4898_v45  ;;  %v3210_v42 = vpop.f32.mrb[41].mxu0  ;;  %3224 = vmatprep.subr.bf16.mxu1 %v4062_v0 }
0x12a7   : > { %v2272_v43 = vpop.f32.mrb[42].mxu0 }
0x12a8   : > { %v3211_v44 = vpop.f32.mrb[43].mxu0  ;;  %v2275_v46 = vsel %vm979_vm3, %v2270_v41, -inf }
0x12a9   : > { %2276 = vmax.xlane.f32.xlu1 %v2275_v46  ;;  %v2413_v46 = vsub.s32 7, %v4756_v8 }
0x12ab   : > { %v2414_v47 = vrot.slane %v4976_v17, %v2413_v46 }
0x1336   : > { %v2277_v49 = vpop.xlane.xlu1 %2276 }
0x1337   : > { %v2278_v50 = vmax.f32 %v2277_v49, -1e+30  ;;  %v2422_v49 = vrot.slane %v903_v48, %v918_v9 }
0x1339   : > { %v2282_v51 = vsub.f32 %v2270_v41, %v2278_v50  ;;  %v2279_v62 = vsub.f32 -1e+30, %v2278_v50 }
0x133b   : > { %v2283_v52 = vmul.f32 1.442695, %v2282_v51  ;;  %v2280_v63 = vmul.f32 1.442695, %v2279_v62 }
0x133d   : > { %3482 = vpow2.f32 %v2283_v52 }
0x133e   : > { %3484 = vpow2.f32 %v2280_v63  ;;  %v2490_v63 = vsub.s32 4, %v4756_v8 }
0x1347   : > { %v3483_v53 = vpop.eup %3482 }
0x1348   : > { %v2286_v45 = vsel %vm979_vm3, %v3483_v53, 0.0  ;;  %v2290_v54 = vpack.c.bf16 %v3483_v53, %v3483_v53  ;;  %v3485_v1 = vpop.eup %3484 }
0x1349   : > { %2287 = vadd.xlane.f32.xlu1 %v2286_v45  ;;  %v2285_v4 = vmul.f32 0.0, %v3485_v1  ;;  %v2491_v1 = vrot.slane %v4976_v17, %v2490_v63 }
0x134a   : > { %3215 = vmatmul.mubr.msk.bf16.vlgmr.msra.gmra.mrb[52].mxu1 %vm979_vm3, %v2290_v54  ;;  %v3434_v54 = vld [vmem:[#allocation23 + $0x10] sm:$0xff]  }
0x134b   : > { %3228 = vmatprep.mubr.msk.bf16.mxu1 %vm4063_vm0, %v4062_v0  ;;  %3225 = vmatpush3.bf16.msra.mxu1 %v3430_v33 }
0x134c   : > { %3226 = vmatprep.subr.bf16.mxu1 %v4062_v0 }
0x134f   : > { %3227 = vmatpush3.bf16.msra.mxu1 %v3431_v34 }
0x1377   : > { %v2216_v57 = vpop.f32.mrb[48].mxu1 }
0x1378   : > { %v2222_v58 = vadd.f32 %v2216_v57, %v4936_v16  ;;  %v3204_v59 = vpop.f32.mrb[49].mxu1  ;;  %v2390_v16 = vsub.s32 3, %v4756_v8 }
0x1379   : > { %v2219_v60 = vpop.f32.mrb[50].mxu1 }
0x137a   : > { %v3205_v61 = vpop.f32.mrb[51].mxu1  ;;  %v2391_v18 = vrot.slane %v4976_v17, %v2390_v16 }
0x13d6   : > { %v2288_v2 = vpop.xlane.xlu1 %2287 }
0x13d7   : > { %v2289_v5 = vadd.f32 %v2288_v2, %v2285_v4 }
0x13d9   : > { %3486 = vrcp.f32 %v2289_v5 }
0x13e3   : > { %v3487_v3 = vpop.eup %3486 }
0x141d   : > { %v2331_v6 = vpop.f32.mrb[52].mxu1 }
0x141e   : > { %v2337_v7 = vadd.f32 %v2331_v6, %v2285_v4  ;;  %v3216_v11 = vpop.f32.mrb[53].mxu1 }
0x141f   : > { %v2334_v12 = vpop.f32.mrb[54].mxu1 }
0x1420   : > { %v2339_v13 = vmul.f32 %v3487_v3, %v2337_v7  ;;  %v3217_v14 = vpop.f32.mrb[55].mxu1 }
0x1422   : > { %v2340_v15 = vpack.c.bf16 %v2339_v13, %v2339_v13 }
0x1424   : > { %3221 = vmatmul.mubr.msk.bf16.vlgmr.msra.gmra.mrb[44].mxu0 %vm979_vm3, %v2340_v15 }
0x1425   : > { %3240 = vmatprep.mubr.msk.bf16.mxu0 %vm4063_vm0, %v4062_v0  ;;  %3233 = vmatpush3.bf16.msra.mxu0 %v3432_v35 }
0x1426   : > { %3234 = vmatprep.subr.bf16.mxu0 %v4062_v0 }
0x1429   : > { %3235 = vmatpush3.bf16.msra.mxu0 %v3433_v36 }
0x142a   : > { %3236 = vmatprep.subr.bf16.mxu0 %v4062_v0 }
0x142d   : > { %3237 = vmatpush3.bf16.msra.mxu0 %v3434_v54 }
0x142e   : > { %3238 = vmatprep.subr.bf16.mxu0 %v4062_v0 }
0x1431   : > { %3239 = vmatpush3.bf16.msra.mxu0 %v3435_v55 }
0x14f7   : > { %v2381_v19 = vpop.f32.mrb[44].mxu0 }
0x14f8   : > { %v2387_v20 = vadd.f32 %v2381_v19, %v2222_v58  ;;  %v3222_v37 = vpop.f32.mrb[45].mxu0 }
0x14f9   : > { %v2384_v21 = vpop.f32.mrb[46].mxu0 }
0x14fa   : > { %v2392_v23 = vadd.f32 %v2391_v18, %v2387_v20  ;;  %v3223_v24 = vpop.f32.mrb[47].mxu0 }
0x14fb   : > { %v2581_v24 = vrot.slane %v903_v48, %v1636_v39 }
0x14fc   : > { %v2393_v25 = vadd.f32 %v2392_v23, %v4869_v27 }
0x14fe   : > { %v2394_v26 = vsel %vm932_vm1, %v2393_v25, 0.0 }
0x14ff   : > { %2395 = vadd.xlane.f32.xlu1 %v2394_v26 }
0x158c   : > { %v2396_v28 = vpop.xlane.xlu1 %2395 }
0x158d   : > { %v2397_v29 = vmul.f32 0.03125, %v2396_v28 }
0x158f   : > { %v2398_v30 = vsub.f32 %v2393_v25, %v2397_v29  ;;  %v2589_v25 = vrot.slane %v903_v48, %v1675_v31 }
0x1591   : > { %v2399_v22 = vmul.f32 %v2398_v30, %v2398_v30  ;;  %v2415_v50 = vmul.f32 %v2414_v47, %v2398_v30 }
0x1593   : > { %v2400_v32 = vsel %vm932_vm1, %v2399_v22, 0.0 }
0x1594   : > { %2401 = vadd.xlane.f32.xlu1 %v2400_v32 }
0x1621   : > { %v2402_v27 = vpop.xlane.xlu1 %2401 }
0x1622   : > { %v2403_v38 = vmul.f32 0.032258064, %v2402_v27 }
0x1624   : > { %3488 = vrsqrt.f32 %v2403_v38  ;;  %vm2406_vm6 = vcmp.eq.f32.partialorder %v2403_v38, inf  ;;  %v2409_v41 = vand.u32 2147483648, %v2403_v38  ;;  %vm2408_vm7 = vcmp.eq.f32.partialorder %v2403_v38, 0.0 }
0x162e   : > { %v3489_v40 = vpop.eup %3488 }
0x162f   : > { %v2405_v10 = vmul.f32 %v3489_v40, %v2403_v38 }
0x1631   : > { %v2407_v42 = vsel %vm2406_vm6, %v2403_v38, %v2405_v10 }
0x1632   : > { %v2410_v43 = vsel %vm2408_vm7, %v2409_v41, %v2407_v42 }
0x1633   : > { %v2416_v44 = vadd.f32 1e-06, %v2410_v43 }
0x1635   : > { %3490 = vrcp.f32 %v2416_v44 }
0x163f   : > { %v3491_v51 = vpop.eup %3490 }
0x1640   : > { %v2418_v52 = vmul.f32 %v3491_v51, %v2415_v50 }
0x1642   : > { %v2423_v53 = vadd.f32 %v2422_v49, %v2418_v52 }
0x1644   : > { %v2424_v45 = vpack.c.bf16 %v2423_v53, %v2423_v53 }
0x1646   : > { %3229 = vmatmul.mubr.msk.bf16.vlgmr.msra.gmra.mrb[56].mxu1 %vm932_vm1, %v2424_v45 }
0x1719   : > { %v2480_v57 = vpop.f32.mrb[56].mxu1 }
0x171a   : > { %v2481_v58 = vadd.f32 %v2985_v56, %v2480_v57  ;;  %v3230_v59 = vpop.f32.mrb[57].mxu1 }
0x171b   : > { %v2483_v60 = vpop.f32.mrb[58].mxu1 }
0x171c   : > { %v2486_v61 = vmax.f32 %v2481_v58, 0.0  ;;  %v3231_v9 = vpop.f32.mrb[59].mxu1 }
0x171e   : > { %v2487_v62 = vpack.c.bf16 %v2486_v61, %v2486_v61 }
0x1720   : > { %3241 = vmatmul.mubr.msk.bf16.vlgmr.msra.gmra.mrb[48].mxu0 %vm2516_vm8, %v2487_v62 }
0x17f3   : > { %v2554_v2 = vpop.f32.mrb[48].mxu0 }
0x17f4   : > { %v2555_v4 = vadd.f32 %v2554_v2, %v2491_v1  ;;  %v3242_v5 = vpop.f32.mrb[49].mxu0 }
0x17f5   : > { %v2557_v0 = vpop.f32.mrb[50].mxu0 }
0x17f6   : > { %v3243_v6 = vpop.f32.mrb[51].mxu0  ;;  %v2560_v7 = vadd.f32 %v2555_v4, %v2423_v53 }
0x17f8   : > { %v2561_v11 = vsel %vm932_vm1, %v2560_v7, 0.0 }
0x17f9   : > { %2562 = vadd.xlane.f32.xlu1 %v2561_v11 }
0x1886   : > { %v2563_v3 = vpop.xlane.xlu1 %2562 }
0x1887   : > { %v2564_v12 = vmul.f32 0.03125, %v2563_v3 }
0x1889   : > { %v2565_v13 = vsub.f32 %v2560_v7, %v2564_v12 }
0x188b   : > { %v2566_v14 = vmul.f32 %v2565_v13, %v2565_v13  ;;  %v2582_v26 = vmul.f32 %v2581_v24, %v2565_v13 }
0x188d   : > { %v2567_v15 = vsel %vm932_vm1, %v2566_v14, 0.0 }
0x188e   : > { %2568 = vadd.xlane.f32.xlu1 %v2567_v15 }
0x191b   : > { %v2569_v16 = vpop.xlane.xlu1 %2568 }
0x191c   : > { %v2570_v18 = vmul.f32 0.032258064, %v2569_v16 }
0x191e   : > { %3492 = vrsqrt.f32 %v2570_v18  ;;  %vm2573_vm9 = vcmp.eq.f32.partialorder %v2570_v18, inf  ;;  %v2576_v20 = vand.u32 2147483648, %v2570_v18  ;;  %vm2575_vm10 = vcmp.eq.f32.partialorder %v2570_v18, 0.0 }
0x1928   : > { %v3493_v17 = vpop.eup %3492 }
0x1929   : > { %v2572_v19 = vmul.f32 %v3493_v17, %v2570_v18 }
0x192b   : > { %v2574_v37 = vsel %vm2573_vm9, %v2570_v18, %v2572_v19 }
0x192c   : > { %v2577_v21 = vsel %vm2575_vm10, %v2576_v20, %v2574_v37 }
0x192d   : > { %v2583_v23 = vadd.f32 1e-06, %v2577_v21 }
0x192f   : > { %3494 = vrcp.f32 %v2583_v23 }
0x1939   : > { %v3495_v28 = vpop.eup %3494 }
0x193a   : > { %v2585_v29 = vmul.f32 %v3495_v28, %v2582_v26 }
0x193c   : > { %v2590_v30 = vadd.f32 %v2589_v25, %v2585_v29 }
0x193e   : > { %2591 = vst.msk [vmem:[%s871_s23] sm:$0xff] %vm932_vm1, %v2590_v30 }
0x193f   : > { %3944 = shalt.err (!%p3941_p4)
}
0x1940   : > { %s3945_s13 = scalar_lea.hbm %s5005_s20, 128  ;;  %s3949_s21 = scalar_lea.hbm %s5188_s0, 256 }
0x1941   : > { %p3946_p8 = scmp.ne.s32.totalorder %s5005_s20, %s3945_s13  ;;  %p3950_p10 = scmp.lt.u32.totalorder %s5005_s20, %s5188_s0 }
0x1942   : > { %p3951_p0 = scmp.lt.u32.totalorder %s3949_s21, %s3945_s13  ;;  %p3953_p7 = scmp.lt.u32.totalorder %s3945_s13, %s5005_s20 }
0x1943   : > { %p3947_p9 = pnand %p3946_p8, %p5189_p5 }
0x1944   : > { %p3952_p1 = por %p3951_p0, %p3950_p10 }
0x1945   : > { %p3948_p6 = pneg %p3947_p9 }
0x1946   : > { %p3954_p3 = por %p3953_p7, %p3952_p1 }
0x1948   : > { %p3955_p2 = pnand %p3954_p3, %p3948_p6 }
0x194a   : > { %3958 = shalt.err (!%p3955_p2)
}
0x194b   : > { %3290 = dma.vmem_to_hbm [thread:$0]  (%p5189_p5), %s5007_s17, 128, %s5005_s20, %s2593_s7  }
0x194c PF: > { %s5190_s25 = sld [smem:[#allocation36_spill]]  ;;  %s5191_s29 = sld [smem:[#allocation45_spill]] }
0x194d   : > { %s5192_s11 = sld [smem:[#allocation39_spill]] }
0x1952   : > { %s2619_s14 = sand.u32 1, %s5190_s25   ;;  %p5193_p12 = scmp.ne.s32.totalorder %s5191_s29, 0 }
0x1953   : > { %p5194_p11 = scmp.ge.s32.totalorder %s5192_s11, 2  ;;  %s2620_s2 = scalar_lea.sflag [#allocation4], %s2619_s14 }
0x1955   : > { %p3340_p13 = pnand %p5194_p11, %p5193_p12 }
0x1957   : > { %4016 = dma.done.wait (!%p3340_p13), %s2620_s2, 128  }
0x1958   : > { %4018 = vsyncadd (!%p3340_p13), %s2620_s2, 4294967168  ;;  %s44_s23 = sadd.s32 1, %s5192_s11   ;;  %s5195_s5 = sld [smem:[#allocation37_spill]] }
0x1959   : > { %p41_p4 = scmp.ge.s32.totalorder %s44_s23, 4   ;;  %s5196_s20 = sld [smem:[#allocation44_spill]] }
0x195a   : > { %s5197_s26 = sld [smem:[#allocation42_spill]]  ;;  %s5198_s18 = smov %s4025_s19 }
0x195b   : > { %s5200_s21 = smov %s4037_s22  ;;  %43 = sbr.rel (!%p41_p4) target bundleno = 32 (0x20), region = 241 }
0x195e   : > { %s5199_s19 = smov %s5195_s5 }
0x1960   : > { %s5201_s22 = smov %s5197_s26 }
0x1962   :  { %2625 = vsyncpa [#allocation3], 1 }
0x1963   :  { %2627 = vsyncpa [#allocation3 + $0x1], 1 }
0x1964   :  { %2628 = vsyncpa [#allocation6], 1 }
0x1965   :  { %2630 = vsyncpa [#allocation6 + $0x1], 1 }
0x1966   :  { %2631 = vsyncpa [#allocation9], 1 }
0x1967   :  { %2633 = vsyncpa [#allocation9 + $0x1], 1 }
0x1968   :  { %2634 = vsyncpa [#allocation12], 1 }
0x1969   :  { %2636 = vsyncpa [#allocation12 + $0x1], 1 }
0x196a   :  { %2637 = vsyncpa [#allocation15], 1 }
0x196b   :  { %2638 = vsyncpa [#allocation18], 1 }
0x196c   :  { %2639 = vsyncpa [#allocation21], 1 }
0x196d   :  { %2640 = vsyncpa [#allocation24], 1 }
0x196e   :  { %2641 = vsyncpa [#allocation4], 1 }
0x196f   :  { %2643 = vsyncpa [#allocation4 + $0x1], 1 }

</bundles_post_ra>
